<compile_context>
chip_gen: v5e
topology: v5e:2x2
jax: 0.10.0
libtpu: 0.0.40
codegen_flags: <defaults>
</compile_context>

<pallas_src>
import jax
import jax.numpy as jnp
from jax.experimental import pallas as pl
from jax.experimental.pallas import tpu as pltpu

EPS = 1e-5


# ------------------------------ helpers --------------------------------------
def _round_up(x, m):
    return (x + m - 1) // m * m


def _pad_last(x, target, fill=0.0):
    pad = target - x.shape[-1]
    if pad == 0:
        return x
    cfg = [(0, 0)] * (x.ndim - 1) + [(0, pad)]
    return jnp.pad(x, cfg, constant_values=fill)


# ----------------------------- Pallas kernels --------------------------------
def _matmul_stats_kernel(x_ref, w_ref, y_ref, stats_ref):
    """Layer 1: im2col'd 3x3 conv == one MXU matmul, plus BN partial stats.

    x_ref:     (1, H, W, K1)       bf16  im2col'd input (K1 = 9*Cin, zero-pad)
    w_ref:     (K1, Cmid_p)        bf16  reshaped conv1 weights (VMEM-resident)
    y_ref:     (1, H, W, Cmid_p)   bf16  raw conv output (bias dropped: BN cancels)
    stats_ref: (1, 2, Cmid_p)      f32   [sum, sum_sq] over the H*W positions
    """
    _, h, w, k = x_ref.shape
    cout = y_ref.shape[-1]
    x = x_ref[0].reshape(h * w, k)
    acc = jnp.dot(x, w_ref[...], preferred_element_type=jnp.float32)
    y_ref[0] = acc.reshape(h, w, cout).astype(y_ref.dtype)
    stats_ref[0, 0:1, :] = jnp.sum(acc, axis=0, keepdims=True)
    stats_ref[0, 1:2, :] = jnp.sum(acc * acc, axis=0, keepdims=True)


def _conv3x3_prenorm_stats_kernel(y1_ref, w_ref, scale_ref, shift_ref,
                                  y2_ref, stats_ref, xp_ref):
    """Layer 2: fused (BN1 apply + ReLU + VMEM zero-pad) -> 3x3 conv -> BN2 stats.

    y1_ref:      (1, H, W, Cmid_p)     bf16  RAW layer-1 conv output
    w_ref:       (3, 3, Cmid_p, Cout_p) bf16 conv2 weights (VMEM-resident)
    scale/shift: (1, Cmid_p)           f32   folded BN1 affine
    y2_ref:      (1, H, W, Cout_p)     f32   raw conv2 output
    stats_ref:   (1, 2, Cout_p)        f32   [sum, sum_sq]
    xp_ref:      (H+2, W+2, Cmid_p)    f32   scratch: activated + zero-padded input
    """
    _, h, w, cmid = y1_ref.shape
    cout = y2_ref.shape[-1]

    # Fused BN1 apply + ReLU on the raw bf16 conv1 output (f32 math).
    a = jnp.maximum(
        y1_ref[0].astype(jnp.float32) * scale_ref[...] + shift_ref[...], 0.0)

    # "SAME" zero padding of the *activated* tensor, done in VMEM (no HBM copy,
    # no iota border mask).
    xp_ref[...] = jnp.zeros_like(xp_ref)
    xp_ref[1:h + 1, 1:w + 1, :] = a
    x = xp_ref[...]

    # 3x3 conv as 9 shifted MXU matmuls, f32 accumulation.
    # TODO(synk): the dx-shifted slices materialize VMEM copies; a slab-matmul
    # + pltpu.roll realignment would move that work to the XLU.
    acc = None
    for dy in range(3):
        for dx in range(3):
            patch = x[dy:dy + h, dx:dx + w, :].reshape(h * w, cmid)
            prod = jnp.dot(patch.astype(jnp.bfloat16), w_ref[dy, dx],
                           preferred_element_type=jnp.float32)
            acc = prod if acc is None else acc + prod

    y2_ref[0] = acc.reshape(h, w, cout)
    stats_ref[0, 0:1, :] = jnp.sum(acc, axis=0, keepdims=True)
    stats_ref[0, 1:2, :] = jnp.sum(acc * acc, axis=0, keepdims=True)


# --------------------------- pallas_call wrappers -----------------------------
def _conv1_im2col_pallas(xcol, w1col):
    n, h, w, k1 = xcol.shape
    cmid_p = w1col.shape[-1]
    return pl.pallas_call(
        _matmul_stats_kernel,
        out_shape=(jax.ShapeDtypeStruct((n, h, w, cmid_p), jnp.bfloat16),
                   jax.ShapeDtypeStruct((n, 2, cmid_p), jnp.float32)),
        grid=(n,),
        in_specs=[pl.BlockSpec((1, h, w, k1), lambda i: (i, 0, 0, 0)),
                  pl.BlockSpec((k1, cmid_p), lambda i: (0, 0))],   # resident
        out_specs=(pl.BlockSpec((1, h, w, cmid_p), lambda i: (i, 0, 0, 0)),
                   pl.BlockSpec((1, 2, cmid_p), lambda i: (i, 0, 0))),
        compiler_params=pltpu.CompilerParams(
            dimension_semantics=("parallel",)),
    )(xcol, w1col)


def _conv2_fused_pallas(y1_raw, w2, scale1, shift1):
    n, h, w, cmid_p = y1_raw.shape
    cout_p = w2.shape[-1]
    return pl.pallas_call(
        _conv3x3_prenorm_stats_kernel,
        out_shape=(jax.ShapeDtypeStruct((n, h, w, cout_p), jnp.float32),
                   jax.ShapeDtypeStruct((n, 2, cout_p), jnp.float32)),
        grid=(n,),
        in_specs=[pl.BlockSpec((1, h, w, cmid_p), lambda i: (i, 0, 0, 0)),
                  pl.BlockSpec((3, 3, cmid_p, cout_p),
                               lambda i: (0, 0, 0, 0)),            # resident
                  pl.BlockSpec((1, cmid_p), lambda i: (0, 0)),
                  pl.BlockSpec((1, cmid_p), lambda i: (0, 0))],
        out_specs=(pl.BlockSpec((1, h, w, cout_p), lambda i: (i, 0, 0, 0)),
                   pl.BlockSpec((1, 2, cout_p), lambda i: (i, 0, 0))),
        scratch_shapes=[pltpu.VMEM((h + 2, w + 2, cmid_p), jnp.float32)],
        compiler_params=pltpu.CompilerParams(
            dimension_semantics=("parallel",)),
    )(y1_raw, w2, scale1, shift1)


def _affine_from_stats(stats, count, gamma, beta):
    """Fold training-mode BN into per-channel scale/shift from [sum, sum_sq]."""
    total = jnp.sum(stats, axis=0)                   # (2, C)
    mean = total[0] / count
    var = jnp.maximum(total[1] / count - mean * mean, 0.0)
    scale = gamma * jax.lax.rsqrt(var + EPS)
    shift = beta - mean * scale
    return scale, shift


# ------------------------------ forward pass ----------------------------------
@jax.jit
def conv_block_forward(x_nchw, params):
    """Forward pass matching convBlock(in_dim, out_dim) on NCHW input."""
    n, cin, h, w = x_nchw.shape
    cmid = params["w1"].shape[-1]
    cout = params["w2"].shape[-1]
    # 128-lane channel padding (pad to 256 on v6e/v7x only for real C >= 256).
    cmid_p = _round_up(cmid, 128)
    cout_p = _round_up(cout, 128)
    count = n * h * w                                # BN batch-stat count

    # NCHW -> NHWC once at the module boundary.
    x = jnp.transpose(x_nchw, (0, 2, 3, 1)).astype(jnp.float32)

    # ---- layer 1: conv3x3 + BN1 partial stats (im2col'd, Cin is tiny) ----
    k1 = 9 * cin
    k1p = _round_up(k1, 8)
    xpad = jnp.pad(x, ((0, 0), (1, 1), (1, 1), (0, 0)))
    xcol = jnp.concatenate(
        [xpad[:, dy:dy + h, dx:dx + w, :] for dy in range(3) for dx in range(3)],
        axis=-1)                                     # (N, H, W, 9*Cin), tiny
    xcol = _pad_last(xcol, k1p).astype(jnp.bfloat16)
    w1col = params["w1"].reshape(k1, cmid)
    w1col = jnp.pad(w1col,
                    ((0, k1p - k1), (0, cmid_p - cmid))).astype(jnp.bfloat16)

    # Conv bias dropped: training-mode BN mean subtraction cancels it exactly.
    y1_raw, stats1 = _conv1_im2col_pallas(xcol, w1col)   # bf16 raw conv1 output

    g1 = _pad_last(params["g1"].reshape(-1), cmid_p, fill=1.0)
    b1 = _pad_last(params["bt1"].reshape(-1), cmid_p)
    scale1, shift1 = _affine_from_stats(stats1, count, g1, b1)

    # ---- layer 2: fused (BN1 apply + ReLU) -> conv3x3 + BN2 partial stats ----
    w2 = jnp.pad(params["w2"],
                 ((0, 0), (0, 0), (0, cmid_p - cmid), (0, cout_p - cout))
                 ).astype(jnp.bfloat16)
    y2_raw, stats2 = _conv2_fused_pallas(
        y1_raw, w2, scale1.reshape(1, -1), shift1.reshape(1, -1))

    scale2, shift2 = _affine_from_stats(
        stats2[..., :cout], count,
        params["g2"].reshape(-1), params["bt2"].reshape(-1))

    # ---- final BN2 apply + ReLU + channel slice + NCHW transpose: plain XLA
    #      (fuses into one pass; avoids a 16x lane-padded Pallas write when
    #      cout << 128).
    y2 = y2_raw[..., :cout]
    out = jnp.maximum(y2 * scale2.reshape(1, 1, 1, -1)
                      + shift2.reshape(1, 1, 1, -1), 0.0)
    return jnp.transpose(out, (0, 3, 1, 2))


# -------------------------- reference (plain JAX, f32) ------------------------
def _ref_forward(x_nchw, params):
    x = jnp.transpose(x_nchw, (0, 2, 3, 1)).astype(jnp.float32)

    def conv(x, w, b):
        y = jax.lax.conv_general_dilated(
            x, w, window_strides=(1, 1), padding="SAME",
            dimension_numbers=("NHWC", "HWIO", "NHWC"),
            precision=jax.lax.Precision.HIGHEST)
        return y + b.reshape(1, 1, 1, -1)

    def bn_relu(y, g, bt):
        m = jnp.mean(y, axis=(0, 1, 2), keepdims=True)
        v = jnp.mean(jnp.square(y - m), axis=(0, 1, 2), keepdims=True)
        z = (y - m) * jax.lax.rsqrt(v + EPS) * g.reshape(1, 1, 1, -1) \
            + bt.reshape(1, 1, 1, -1)
        return jnp.maximum(z, 0.0)

    y = bn_relu(conv(x, params["w1"], params["b1"]), params["g1"], params["bt1"])
    y = bn_relu(conv(y, params["w2"], params["b2"]), params["g2"], params["bt2"])
    return jnp.transpose(y, (0, 3, 1, 2))


# --------------------------------- main ---------------------------------------
def _init_params(key, in_dim, out_dim, mid_dim=None):
    if not mid_dim:
        mid_dim = out_dim
    ks = jax.random.split(key, 8)
    return {
        # conv weights stored HWIO: (3, 3, Cin, Cout)
        "w1": 0.1 * jax.random.normal(ks[0], (3, 3, in_dim, mid_dim), jnp.float32),
        "b1": 0.1 * jax.random.normal(ks[1], (1, mid_dim), jnp.float32),
        "g1": 1.0 + 0.1 * jax.random.normal(ks[2], (1, mid_dim), jnp.float32),
        "bt1": 0.1 * jax.random.normal(ks[3], (1, mid_dim), jnp.float32),
        "w2": 0.1 * jax.random.normal(ks[4], (3, 3, mid_dim, out_dim), jnp.float32),
        "b2": 0.1 * jax.random.normal(ks[5], (1, out_dim), jnp.float32),
        "g2": 1.0 + 0.1 * jax.random.normal(ks[6], (1, out_dim), jnp.float32),
        "bt2": 0.1 * jax.random.normal(ks[7], (1, out_dim), jnp.float32),
    }


if __name__ == "__main__":
    key = jax.random.PRNGKey(0)
    k_x, k_p = jax.random.split(key)

    batch, in_dim, out_dim, hw = 2, 4, 8, 16
    x = jax.random.normal(k_x, (batch, in_dim, hw, hw), jnp.float32)  # NCHW
    params = _init_params(k_p, in_dim, out_dim)

    out = jax.block_until_ready(conv_block_forward(x, params))
    ref = jax.block_until_ready(_ref_forward(x, params))

    assert out.shape == (batch, out_dim, hw, hw), out.shape
    max_err = float(jnp.max(jnp.abs(out - ref)))
    # Tolerance for bf16 MXU inputs + bf16-stored intermediate vs. an f32
    # reference: ~3 unit-scale bf16 roundings propagated through conv2 + BN2.
    assert max_err < 4e-2, max_err

    print("KERNEL_OK")
</pallas_src>

<mosaic_0001>
module attributes {stable_mosaic.version = 11 : i64} {
  func.func @_matmul_stats_kernel(%arg0: i32, %arg1: memref<1x16x16x40xbf16, #tpu.memory_space<vmem>>, %arg2: memref<40x128xbf16, #tpu.memory_space<vmem>>, %arg3: memref<1x16x16x128xbf16, #tpu.memory_space<vmem>>, %arg4: memref<1x2x128xf32, #tpu.memory_space<vmem>>) attributes {dimension_semantics = [#tpu.dimension_semantics<parallel>], iteration_bounds = array<i64: 2>, scalar_prefetch = 0 : i64, scratch_operands = 0 : i64, tpu.core_type = #tpu.core_type<tc>, window_params = [{transform_indices = @transform_0, window_bounds = array<i64: 1, 16, 16, 40>}, {pipeline_mode = #tpu.pipeline_mode<synchronous>, transform_indices = @transform_1, window_bounds = array<i64: 40, 128>}, {transform_indices = @transform_2, window_bounds = array<i64: 1, 16, 16, 128>}, {transform_indices = @transform_3, window_bounds = array<i64: 1, 2, 128>}]} {
    %c0 = arith.constant 0 : index
    %c0_0 = arith.constant 0 : index
    %c0_1 = arith.constant 0 : index
    %c0_2 = arith.constant 0 : index
    %0 = vector.load %arg1[%c0, %c0_0, %c0_1, %c0_2] : memref<1x16x16x40xbf16, #tpu.memory_space<vmem>>, vector<1x16x16x40xbf16>
    %1 = vector.shape_cast %0 : vector<1x16x16x40xbf16> to vector<16x16x40xbf16>
    %2 = vector.shape_cast %1 : vector<16x16x40xbf16> to vector<256x40xbf16>
    %c0_3 = arith.constant 0 : index
    %c0_4 = arith.constant 0 : index
    %3 = vector.load %arg2[%c0_3, %c0_4] : memref<40x128xbf16, #tpu.memory_space<vmem>>, vector<40x128xbf16>
    %cst = arith.constant dense<0.000000e+00> : vector<256x128xf32>
    %4 = tpu.matmul %2, %3, %cst {dimension_numbers = #tpu.dot_dimension_numbers<[1], [0], [0], [1], [0, 0, 1, 1], [], []>} : vector<256x40xbf16>, vector<40x128xbf16>, vector<256x128xf32> -> vector<256x128xf32>
    %5 = vector.shape_cast %4 : vector<256x128xf32> to vector<16x16x128xf32>
    %6 = arith.truncf %5 : vector<16x16x128xf32> to vector<16x16x128xbf16>
    %c0_5 = arith.constant 0 : index
    %c0_6 = arith.constant 0 : index
    %c0_7 = arith.constant 0 : index
    %c0_8 = arith.constant 0 : index
    %7 = vector.load %arg3[%c0_5, %c0_6, %c0_7, %c0_8] : memref<1x16x16x128xbf16, #tpu.memory_space<vmem>>, vector<1x16x16x128xbf16>
    %8 = vector.shape_cast %7 : vector<1x16x16x128xbf16> to vector<16x16x128xbf16>
    %9 = vector.shape_cast %6 : vector<16x16x128xbf16> to vector<1x16x16x128xbf16>
    tpu.vector_store %arg3[%c0_5, %c0_6, %c0_7, %c0_8], %9 {strides = array<i32>} : memref<1x16x16x128xbf16, #tpu.memory_space<vmem>>, vector<1x16x16x128xbf16>,
    %cst_9 = arith.constant dense<0.000000e+00> : vector<128xf32>
    %10 = vector.multi_reduction <add>, %4, %cst_9 [0] : vector<256x128xf32> to vector<128xf32>
    %11 = vector.shape_cast %10 : vector<128xf32> to vector<1x128xf32>
    %c0_10 = arith.constant 0 : index
    %c0_11 = arith.constant 0 : index
    %c0_12 = arith.constant 0 : index
    %12 = vector.load %arg4[%c0_10, %c0_11, %c0_12] : memref<1x2x128xf32, #tpu.memory_space<vmem>>, vector<1x1x128xf32>
    %13 = vector.shape_cast %12 : vector<1x1x128xf32> to vector<1x128xf32>
    %14 = vector.shape_cast %11 : vector<1x128xf32> to vector<1x1x128xf32>
    tpu.vector_store %arg4[%c0_10, %c0_11, %c0_12], %14 {strides = array<i32>} : memref<1x2x128xf32, #tpu.memory_space<vmem>>, vector<1x1x128xf32>,
    %15 = arith.mulf %4, %4 : vector<256x128xf32>
    %cst_13 = arith.constant dense<0.000000e+00> : vector<128xf32>
    %16 = vector.multi_reduction <add>, %15, %cst_13 [0] : vector<256x128xf32> to vector<128xf32>
    %17 = vector.shape_cast %16 : vector<128xf32> to vector<1x128xf32>
    %c0_14 = arith.constant 0 : index
    %c1 = arith.constant 1 : index
    %c0_15 = arith.constant 0 : index
    %18 = vector.load %arg4[%c0_14, %c1, %c0_15] : memref<1x2x128xf32, #tpu.memory_space<vmem>>, vector<1x1x128xf32>
    %19 = vector.shape_cast %18 : vector<1x1x128xf32> to vector<1x128xf32>
    %20 = vector.shape_cast %17 : vector<1x128xf32> to vector<1x1x128xf32>
    tpu.vector_store %arg4[%c0_14, %c1, %c0_15], %20 {strides = array<i32>} : memref<1x2x128xf32, #tpu.memory_space<vmem>>, vector<1x1x128xf32>,
    return
  }
  func.func @transform_0(%arg0: i32) -> (i32, i32, i32, i32) {
    %c0_i32 = arith.constant 0 : i32
    %c0_i32_0 = arith.constant 0 : i32
    %c0_i32_1 = arith.constant 0 : i32
    %c0_i32_2 = arith.constant 0 : i32
    return %arg0, %c0_i32, %c0_i32_0, %c0_i32_1 : i32, i32, i32, i32
  }
  func.func @transform_1(%arg0: i32) -> (i32, i32) {
    %c0_i32 = arith.constant 0 : i32
    %c0_i32_0 = arith.constant 0 : i32
    %c0_i32_1 = arith.constant 0 : i32
    return %c0_i32, %c0_i32_0 : i32, i32
  }
  func.func @transform_2(%arg0: i32) -> (i32, i32, i32, i32) {
    %c0_i32 = arith.constant 0 : i32
    %c0_i32_0 = arith.constant 0 : i32
    %c0_i32_1 = arith.constant 0 : i32
    %c0_i32_2 = arith.constant 0 : i32
    return %arg0, %c0_i32, %c0_i32_0, %c0_i32_1 : i32, i32, i32, i32
  }
  func.func @transform_3(%arg0: i32) -> (i32, i32, i32) {
    %c0_i32 = arith.constant 0 : i32
    %c0_i32_0 = arith.constant 0 : i32
    %c0_i32_1 = arith.constant 0 : i32
    return %arg0, %c0_i32, %c0_i32_0 : i32, i32, i32
  }
}

module attributes {stable_mosaic.version = 11 : i64} {
  func.func @_conv3x3_prenorm_stats_kernel(%arg0: i32, %arg1: memref<1x16x16x128xbf16, #tpu.memory_space<vmem>>, %arg2: memref<3x3x128x128xbf16, #tpu.memory_space<vmem>>, %arg3: memref<1x128xf32, #tpu.memory_space<vmem>>, %arg4: memref<1x128xf32, #tpu.memory_space<vmem>>, %arg5: memref<1x16x16x128xf32, #tpu.memory_space<vmem>>, %arg6: memref<1x2x128xf32, #tpu.memory_space<vmem>>, %arg7: memref<18x18x128xf32, #tpu.memory_space<vmem>>) attributes {dimension_semantics = [#tpu.dimension_semantics<parallel>], iteration_bounds = array<i64: 2>, scalar_prefetch = 0 : i64, scratch_operands = 1 : i64, tpu.core_type = #tpu.core_type<tc>, window_params = [{transform_indices = @transform_0, window_bounds = array<i64: 1, 16, 16, 128>}, {pipeline_mode = #tpu.pipeline_mode<synchronous>, transform_indices = @transform_1, window_bounds = array<i64: 3, 3, 128, 128>}, {pipeline_mode = #tpu.pipeline_mode<synchronous>, transform_indices = @transform_2, window_bounds = array<i64: 1, 128>}, {pipeline_mode = #tpu.pipeline_mode<synchronous>, transform_indices = @transform_3, window_bounds = array<i64: 1, 128>}, {transform_indices = @transform_4, window_bounds = array<i64: 1, 16, 16, 128>}, {transform_indices = @transform_5, window_bounds = array<i64: 1, 2, 128>}]} {
    %c0 = arith.constant 0 : index
    %c0_0 = arith.constant 0 : index
    %c0_1 = arith.constant 0 : index
    %c0_2 = arith.constant 0 : index
    %0 = vector.load %arg1[%c0, %c0_0, %c0_1, %c0_2] : memref<1x16x16x128xbf16, #tpu.memory_space<vmem>>, vector<1x16x16x128xbf16>
    %1 = vector.shape_cast %0 : vector<1x16x16x128xbf16> to vector<16x16x128xbf16>
    %2 = arith.extf %1 : vector<16x16x128xbf16> to vector<16x16x128xf32>
    %c0_3 = arith.constant 0 : index
    %c0_4 = arith.constant 0 : index
    %3 = vector.load %arg3[%c0_3, %c0_4] : memref<1x128xf32, #tpu.memory_space<vmem>>, vector<1x128xf32>
    %4 = vector.shape_cast %3 : vector<1x128xf32> to vector<1x1x128xf32>
    %5 = vector.broadcast %4 : vector<1x1x128xf32> to vector<16x16x128xf32>
    %6 = arith.mulf %2, %5 : vector<16x16x128xf32>
    %c0_5 = arith.constant 0 : index
    %c0_6 = arith.constant 0 : index
    %7 = vector.load %arg4[%c0_5, %c0_6] : memref<1x128xf32, #tpu.memory_space<vmem>>, vector<1x128xf32>
    %8 = vector.shape_cast %7 : vector<1x128xf32> to vector<1x1x128xf32>
    %9 = vector.broadcast %8 : vector<1x1x128xf32> to vector<16x16x128xf32>
    %10 = arith.addf %6, %9 : vector<16x16x128xf32>
    %cst = arith.constant 0.000000e+00 : f32
    %11 = vector.broadcast %cst : f32 to vector<16x16x128xf32>
    %12 = arith.maximumf %10, %11 : vector<16x16x128xf32>
    %cst_7 = arith.constant 0.000000e+00 : f32
    %13 = vector.broadcast %cst_7 : f32 to vector<18x18x128xf32>
    %c0_8 = arith.constant 0 : index
    %c0_9 = arith.constant 0 : index
    %c0_10 = arith.constant 0 : index
    %14 = vector.load %arg7[%c0_8, %c0_9, %c0_10] : memref<18x18x128xf32, #tpu.memory_space<vmem>>, vector<18x18x128xf32>
    tpu.vector_store %arg7[%c0_8, %c0_9, %c0_10], %13 {strides = array<i32>} : memref<18x18x128xf32, #tpu.memory_space<vmem>>, vector<18x18x128xf32>,
    %c1 = arith.constant 1 : index
    %c1_11 = arith.constant 1 : index
    %c0_12 = arith.constant 0 : index
    %15 = vector.load %arg7[%c1, %c1_11, %c0_12] : memref<18x18x128xf32, #tpu.memory_space<vmem>>, vector<16x16x128xf32>
    tpu.vector_store %arg7[%c1, %c1_11, %c0_12], %12 {strides = array<i32>} : memref<18x18x128xf32, #tpu.memory_space<vmem>>, vector<16x16x128xf32>,
    %c0_13 = arith.constant 0 : index
    %c0_14 = arith.constant 0 : index
    %c0_15 = arith.constant 0 : index
    %16 = vector.load %arg7[%c0_13, %c0_14, %c0_15] : memref<18x18x128xf32, #tpu.memory_space<vmem>>, vector<18x18x128xf32>
    %17 = vector.extract_strided_slice %16 {offsets = [0, 0, 0], sizes = [16, 16, 128], strides = [1, 1, 1]} : vector<18x18x128xf32> to vector<16x16x128xf32>
    %18 = vector.shape_cast %17 : vector<16x16x128xf32> to vector<256x128xf32>
    %19 = arith.truncf %18 : vector<256x128xf32> to vector<256x128xbf16>
    %c0_16 = arith.constant 0 : index
    %c0_17 = arith.constant 0 : index
    %c0_18 = arith.constant 0 : index
    %c0_19 = arith.constant 0 : index
    %20 = vector.load %arg2[%c0_16, %c0_17, %c0_18, %c0_19] : memref<3x3x128x128xbf16, #tpu.memory_space<vmem>>, vector<1x1x128x128xbf16>
    %21 = vector.shape_cast %20 : vector<1x1x128x128xbf16> to vector<128x128xbf16>
    %cst_20 = arith.constant dense<0.000000e+00> : vector<256x128xf32>
    %22 = tpu.matmul %19, %21, %cst_20 {dimension_numbers = #tpu.dot_dimension_numbers<[1], [0], [0], [1], [0, 0, 1, 1], [], []>} : vector<256x128xbf16>, vector<128x128xbf16>, vector<256x128xf32> -> vector<256x128xf32>
    %23 = vector.extract_strided_slice %16 {offsets = [0, 1, 0], sizes = [16, 16, 128], strides = [1, 1, 1]} : vector<18x18x128xf32> to vector<16x16x128xf32>
    %24 = vector.shape_cast %23 : vector<16x16x128xf32> to vector<256x128xf32>
    %25 = arith.truncf %24 : vector<256x128xf32> to vector<256x128xbf16>
    %c0_21 = arith.constant 0 : index
    %c1_22 = arith.constant 1 : index
    %c0_23 = arith.constant 0 : index
    %c0_24 = arith.constant 0 : index
    %26 = vector.load %arg2[%c0_21, %c1_22, %c0_23, %c0_24] : memref<3x3x128x128xbf16, #tpu.memory_space<vmem>>, vector<1x1x128x128xbf16>
    %27 = vector.shape_cast %26 : vector<1x1x128x128xbf16> to vector<128x128xbf16>
    %cst_25 = arith.constant dense<0.000000e+00> : vector<256x128xf32>
    %28 = tpu.matmul %25, %27, %cst_25 {dimension_numbers = #tpu.dot_dimension_numbers<[1], [0], [0], [1], [0, 0, 1, 1], [], []>} : vector<256x128xbf16>, vector<128x128xbf16>, vector<256x128xf32> -> vector<256x128xf32>
    %29 = arith.addf %22, %28 : vector<256x128xf32>
    %30 = vector.extract_strided_slice %16 {offsets = [0, 2, 0], sizes = [16, 16, 128], strides = [1, 1, 1]} : vector<18x18x128xf32> to vector<16x16x128xf32>
    %31 = vector.shape_cast %30 : vector<16x16x128xf32> to vector<256x128xf32>
    %32 = arith.truncf %31 : vector<256x128xf32> to vector<256x128xbf16>
    %c0_26 = arith.constant 0 : index
    %c2 = arith.constant 2 : index
    %c0_27 = arith.constant 0 : index
    %c0_28 = arith.constant 0 : index
    %33 = vector.load %arg2[%c0_26, %c2, %c0_27, %c0_28] : memref<3x3x128x128xbf16, #tpu.memory_space<vmem>>, vector<1x1x128x128xbf16>
    %34 = vector.shape_cast %33 : vector<1x1x128x128xbf16> to vector<128x128xbf16>
    %cst_29 = arith.constant dense<0.000000e+00> : vector<256x128xf32>
    %35 = tpu.matmul %32, %34, %cst_29 {dimension_numbers = #tpu.dot_dimension_numbers<[1], [0], [0], [1], [0, 0, 1, 1], [], []>} : vector<256x128xbf16>, vector<128x128xbf16>, vector<256x128xf32> -> vector<256x128xf32>
    %36 = arith.addf %29, %35 : vector<256x128xf32>
    %37 = vector.extract_strided_slice %16 {offsets = [1, 0, 0], sizes = [16, 16, 128], strides = [1, 1, 1]} : vector<18x18x128xf32> to vector<16x16x128xf32>
    %38 = vector.shape_cast %37 : vector<16x16x128xf32> to vector<256x128xf32>
    %39 = arith.truncf %38 : vector<256x128xf32> to vector<256x128xbf16>
    %c1_30 = arith.constant 1 : index
    %c0_31 = arith.constant 0 : index
    %c0_32 = arith.constant 0 : index
    %c0_33 = arith.constant 0 : index
    %40 = vector.load %arg2[%c1_30, %c0_31, %c0_32, %c0_33] : memref<3x3x128x128xbf16, #tpu.memory_space<vmem>>, vector<1x1x128x128xbf16>
    %41 = vector.shape_cast %40 : vector<1x1x128x128xbf16> to vector<128x128xbf16>
    %cst_34 = arith.constant dense<0.000000e+00> : vector<256x128xf32>
    %42 = tpu.matmul %39, %41, %cst_34 {dimension_numbers = #tpu.dot_dimension_numbers<[1], [0], [0], [1], [0, 0, 1, 1], [], []>} : vector<256x128xbf16>, vector<128x128xbf16>, vector<256x128xf32> -> vector<256x128xf32>
    %43 = arith.addf %36, %42 : vector<256x128xf32>
    %44 = vector.extract_strided_slice %16 {offsets = [1, 1, 0], sizes = [16, 16, 128], strides = [1, 1, 1]} : vector<18x18x128xf32> to vector<16x16x128xf32>
    %45 = vector.shape_cast %44 : vector<16x16x128xf32> to vector<256x128xf32>
    %46 = arith.truncf %45 : vector<256x128xf32> to vector<256x128xbf16>
    %c1_35 = arith.constant 1 : index
    %c1_36 = arith.constant 1 : index
    %c0_37 = arith.constant 0 : index
    %c0_38 = arith.constant 0 : index
    %47 = vector.load %arg2[%c1_35, %c1_36, %c0_37, %c0_38] : memref<3x3x128x128xbf16, #tpu.memory_space<vmem>>, vector<1x1x128x128xbf16>
    %48 = vector.shape_cast %47 : vector<1x1x128x128xbf16> to vector<128x128xbf16>
    %cst_39 = arith.constant dense<0.000000e+00> : vector<256x128xf32>
    %49 = tpu.matmul %46, %48, %cst_39 {dimension_numbers = #tpu.dot_dimension_numbers<[1], [0], [0], [1], [0, 0, 1, 1], [], []>} : vector<256x128xbf16>, vector<128x128xbf16>, vector<256x128xf32> -> vector<256x128xf32>
    %50 = arith.addf %43, %49 : vector<256x128xf32>
    %51 = vector.extract_strided_slice %16 {offsets = [1, 2, 0], sizes = [16, 16, 128], strides = [1, 1, 1]} : vector<18x18x128xf32> to vector<16x16x128xf32>
    %52 = vector.shape_cast %51 : vector<16x16x128xf32> to vector<256x128xf32>
    %53 = arith.truncf %52 : vector<256x128xf32> to vector<256x128xbf16>
    %c1_40 = arith.constant 1 : index
    %c2_41 = arith.constant 2 : index
    %c0_42 = arith.constant 0 : index
    %c0_43 = arith.constant 0 : index
    %54 = vector.load %arg2[%c1_40, %c2_41, %c0_42, %c0_43] : memref<3x3x128x128xbf16, #tpu.memory_space<vmem>>, vector<1x1x128x128xbf16>
    %55 = vector.shape_cast %54 : vector<1x1x128x128xbf16> to vector<128x128xbf16>
    %cst_44 = arith.constant dense<0.000000e+00> : vector<256x128xf32>
    %56 = tpu.matmul %53, %55, %cst_44 {dimension_numbers = #tpu.dot_dimension_numbers<[1], [0], [0], [1], [0, 0, 1, 1], [], []>} : vector<256x128xbf16>, vector<128x128xbf16>, vector<256x128xf32> -> vector<256x128xf32>
    %57 = arith.addf %50, %56 : vector<256x128xf32>
    %58 = vector.extract_strided_slice %16 {offsets = [2, 0, 0], sizes = [16, 16, 128], strides = [1, 1, 1]} : vector<18x18x128xf32> to vector<16x16x128xf32>
    %59 = vector.shape_cast %58 : vector<16x16x128xf32> to vector<256x128xf32>
    %60 = arith.truncf %59 : vector<256x128xf32> to vector<256x128xbf16>
    %c2_45 = arith.constant 2 : index
    %c0_46 = arith.constant 0 : index
    %c0_47 = arith.constant 0 : index
    %c0_48 = arith.constant 0 : index
    %61 = vector.load %arg2[%c2_45, %c0_46, %c0_47, %c0_48] : memref<3x3x128x128xbf16, #tpu.memory_space<vmem>>, vector<1x1x128x128xbf16>
    %62 = vector.shape_cast %61 : vector<1x1x128x128xbf16> to vector<128x128xbf16>
    %cst_49 = arith.constant dense<0.000000e+00> : vector<256x128xf32>
    %63 = tpu.matmul %60, %62, %cst_49 {dimension_numbers = #tpu.dot_dimension_numbers<[1], [0], [0], [1], [0, 0, 1, 1], [], []>} : vector<256x128xbf16>, vector<128x128xbf16>, vector<256x128xf32> -> vector<256x128xf32>
    %64 = arith.addf %57, %63 : vector<256x128xf32>
    %65 = vector.extract_strided_slice %16 {offsets = [2, 1, 0], sizes = [16, 16, 128], strides = [1, 1, 1]} : vector<18x18x128xf32> to vector<16x16x128xf32>
    %66 = vector.shape_cast %65 : vector<16x16x128xf32> to vector<256x128xf32>
    %67 = arith.truncf %66 : vector<256x128xf32> to vector<256x128xbf16>
    %c2_50 = arith.constant 2 : index
    %c1_51 = arith.constant 1 : index
    %c0_52 = arith.constant 0 : index
    %c0_53 = arith.constant 0 : index
    %68 = vector.load %arg2[%c2_50, %c1_51, %c0_52, %c0_53] : memref<3x3x128x128xbf16, #tpu.memory_space<vmem>>, vector<1x1x128x128xbf16>
    %69 = vector.shape_cast %68 : vector<1x1x128x128xbf16> to vector<128x128xbf16>
    %cst_54 = arith.constant dense<0.000000e+00> : vector<256x128xf32>
    %70 = tpu.matmul %67, %69, %cst_54 {dimension_numbers = #tpu.dot_dimension_numbers<[1], [0], [0], [1], [0, 0, 1, 1], [], []>} : vector<256x128xbf16>, vector<128x128xbf16>, vector<256x128xf32> -> vector<256x128xf32>
    %71 = arith.addf %64, %70 : vector<256x128xf32>
    %72 = vector.extract_strided_slice %16 {offsets = [2, 2, 0], sizes = [16, 16, 128], strides = [1, 1, 1]} : vector<18x18x128xf32> to vector<16x16x128xf32>
    %73 = vector.shape_cast %72 : vector<16x16x128xf32> to vector<256x128xf32>
    %74 = arith.truncf %73 : vector<256x128xf32> to vector<256x128xbf16>
    %c2_55 = arith.constant 2 : index
    %c2_56 = arith.constant 2 : index
    %c0_57 = arith.constant 0 : index
    %c0_58 = arith.constant 0 : index
    %75 = vector.load %arg2[%c2_55, %c2_56, %c0_57, %c0_58] : memref<3x3x128x128xbf16, #tpu.memory_space<vmem>>, vector<1x1x128x128xbf16>
    %76 = vector.shape_cast %75 : vector<1x1x128x128xbf16> to vector<128x128xbf16>
    %cst_59 = arith.constant dense<0.000000e+00> : vector<256x128xf32>
    %77 = tpu.matmul %74, %76, %cst_59 {dimension_numbers = #tpu.dot_dimension_numbers<[1], [0], [0], [1], [0, 0, 1, 1], [], []>} : vector<256x128xbf16>, vector<128x128xbf16>, vector<256x128xf32> -> vector<256x128xf32>
    %78 = arith.addf %71, %77 : vector<256x128xf32>
    %79 = vector.shape_cast %78 : vector<256x128xf32> to vector<16x16x128xf32>
    %c0_60 = arith.constant 0 : index
    %c0_61 = arith.constant 0 : index
    %c0_62 = arith.constant 0 : index
    %c0_63 = arith.constant 0 : index
    %80 = vector.load %arg5[%c0_60, %c0_61, %c0_62, %c0_63] : memref<1x16x16x128xf32, #tpu.memory_space<vmem>>, vector<1x16x16x128xf32>
    %81 = vector.shape_cast %80 : vector<1x16x16x128xf32> to vector<16x16x128xf32>
    %82 = vector.shape_cast %79 : vector<16x16x128xf32> to vector<1x16x16x128xf32>
    tpu.vector_store %arg5[%c0_60, %c0_61, %c0_62, %c0_63], %82 {strides = array<i32>} : memref<1x16x16x128xf32, #tpu.memory_space<vmem>>, vector<1x16x16x128xf32>,
    %cst_64 = arith.constant dense<0.000000e+00> : vector<128xf32>
    %83 = vector.multi_reduction <add>, %78, %cst_64 [0] : vector<256x128xf32> to vector<128xf32>
    %84 = vector.shape_cast %83 : vector<128xf32> to vector<1x128xf32>
    %c0_65 = arith.constant 0 : index
    %c0_66 = arith.constant 0 : index
    %c0_67 = arith.constant 0 : index
    %85 = vector.load %arg6[%c0_65, %c0_66, %c0_67] : memref<1x2x128xf32, #tpu.memory_space<vmem>>, vector<1x1x128xf32>
    %86 = vector.shape_cast %85 : vector<1x1x128xf32> to vector<1x128xf32>
    %87 = vector.shape_cast %84 : vector<1x128xf32> to vector<1x1x128xf32>
    tpu.vector_store %arg6[%c0_65, %c0_66, %c0_67], %87 {strides = array<i32>} : memref<1x2x128xf32, #tpu.memory_space<vmem>>, vector<1x1x128xf32>,
    %88 = arith.mulf %78, %78 : vector<256x128xf32>
    %cst_68 = arith.constant dense<0.000000e+00> : vector<128xf32>
    %89 = vector.multi_reduction <add>, %88, %cst_68 [0] : vector<256x128xf32> to vector<128xf32>
    %90 = vector.shape_cast %89 : vector<128xf32> to vector<1x128xf32>
    %c0_69 = arith.constant 0 : index
    %c1_70 = arith.constant 1 : index
    %c0_71 = arith.constant 0 : index
    %91 = vector.load %arg6[%c0_69, %c1_70, %c0_71] : memref<1x2x128xf32, #tpu.memory_space<vmem>>, vector<1x1x128xf32>
    %92 = vector.shape_cast %91 : vector<1x1x128xf32> to vector<1x128xf32>
    %93 = vector.shape_cast %90 : vector<1x128xf32> to vector<1x1x128xf32>
    tpu.vector_store %arg6[%c0_69, %c1_70, %c0_71], %93 {strides = array<i32>} : memref<1x2x128xf32, #tpu.memory_space<vmem>>, vector<1x1x128xf32>,
    return
  }
  func.func @transform_0(%arg0: i32) -> (i32, i32, i32, i32) {
    %c0_i32 = arith.constant 0 : i32
    %c0_i32_0 = arith.constant 0 : i32
    %c0_i32_1 = arith.constant 0 : i32
    %c0_i32_2 = arith.constant 0 : i32
    return %arg0, %c0_i32, %c0_i32_0, %c0_i32_1 : i32, i32, i32, i32
  }
  func.func @transform_1(%arg0: i32) -> (i32, i32, i32, i32) {
    %c0_i32 = arith.constant 0 : i32
    %c0_i32_0 = arith.constant 0 : i32
    %c0_i32_1 = arith.constant 0 : i32
    %c0_i32_2 = arith.constant 0 : i32
    %c0_i32_3 = arith.constant 0 : i32
    return %c0_i32, %c0_i32_0, %c0_i32_1, %c0_i32_2 : i32, i32, i32, i32
  }
  func.func @transform_2(%arg0: i32) -> (i32, i32) {
    %c0_i32 = arith.constant 0 : i32
    %c0_i32_0 = arith.constant 0 : i32
    %c0_i32_1 = arith.constant 0 : i32
    return %c0_i32, %c0_i32_0 : i32, i32
  }
  func.func @transform_3(%arg0: i32) -> (i32, i32) {
    %c0_i32 = arith.constant 0 : i32
    %c0_i32_0 = arith.constant 0 : i32
    %c0_i32_1 = arith.constant 0 : i32
    return %c0_i32, %c0_i32_0 : i32, i32
  }
  func.func @transform_4(%arg0: i32) -> (i32, i32, i32, i32) {
    %c0_i32 = arith.constant 0 : i32
    %c0_i32_0 = arith.constant 0 : i32
    %c0_i32_1 = arith.constant 0 : i32
    %c0_i32_2 = arith.constant 0 : i32
    return %arg0, %c0_i32, %c0_i32_0, %c0_i32_1 : i32, i32, i32, i32
  }
  func.func @transform_5(%arg0: i32) -> (i32, i32, i32) {
    %c0_i32 = arith.constant 0 : i32
    %c0_i32_0 = arith.constant 0 : i32
    %c0_i32_1 = arith.constant 0 : i32
    return %arg0, %c0_i32, %c0_i32_0 : i32, i32, i32
  }
}

</mosaic_0001>

<bundles_post_ra>
// kernel: conv_block_forward.2
= control target key start
LH: loop header
LB: loop body
LE: loop exit
PB: predicated region body
PF: predicated region fallthrough
CT: control target
= control target key end

     0   :  { %s975_s12 = smov 0   ;;  %s1178_s0 = inlined_call_operand.vmem [shape: bf16[2,16,16,40], index: 0, kind: input, shape index: {}]   ;;  %s1179_s1 = inlined_call_operand.vmem [shape: bf16[40,128], index: 1, kind: input, shape index: {}]   ;;  %s1180_s2 = inlined_call_operand.vmem [shape: bf16[2,16,16,128], index: 2, kind: output, shape index: {0}]   ;;  %s1181_s3 = inlined_call_operand.vmem [shape: f32[2,2,128], index: 3, kind: output, shape index: {1}]  }
   0x1 LB: > { %s715_s13 = sadd.s32 4294967295, %s953_s12   ;;  %p719_p0 = scmp.ge.s32.totalorder %s953_s12, 1  ;;  %s953_s12 = sphi %s975_s12, %s14_s12  }
   0x2   : > { %p140_p1 = scmp.lt.s32.totalorder %s953_s12, 3 }
   0x4   : > { %p141_p2 = pnand %p719_p0, %p140_p1 }
   0x5   : > { %p168_p3 = scmp.lt.s32.totalorder (!%p141_p2), %s715_s13, 1 }
   0x6   : > { %144 = sbr.rel (%p141_p2) target bundleno = 275 (0x113), region = 28 }
   0xb   : > { %v219_v0 = vld [vmem:[%s1179_s1 + $0x10] sm:$0xf]  ;;  %vm364_vm0 = vcmask 1043456   ;;  %s1183_s13 = smov (!%p168_p3, %s715_s13), 1  ;;  %v834_v4 = vld [vmem:[%s1179_s1 + $0x8] sm:$0xff]  ;;  %v833_v5 = vld [vmem:[%s1179_s1] sm:$0xff] }
   0xc   : > { %v309_v1 = vunpack.c.l.b16 %v219_v0  ;;  %s815_s18 = sshll.u32 %s1183_s13, 7  ;;  %vm315_vm1 = vcmask 326656   ;;  %s724_s27 = sshll.u32 %s1183_s13, 1 }
   0xd   : > { %s1000_s23 = scalar_lea.vmem %s1178_s0, %s815_s18  ;;  %s1043_s26 = scalar_lea.vmem %s1180_s2, %s815_s18 }
   0xe   : > { %v312_v2 = vpack.c.b16 %v309_v1, %v309_v1  ;;  %v817_v6 = vld [vmem:[%s1000_s23] sm:$0xff]  ;;  %v818_v10 = vld [vmem:[%s1000_s23 + $0x8] sm:$0xff]  ;;  %v819_v14 = vld [vmem:[%s1000_s23 + $0x10] sm:$0xff]  ;;  %s181_s30 = scalar_lea.vmem %s1181_s3, %s724_s27 }
   0xf   : > { %v821_v7 = vld [vmem:[%s1000_s23 + $0x20] sm:$0xff]  ;;  %v822_v11 = vld [vmem:[%s1000_s23 + $0x28] sm:$0xff]  ;;  %v823_v15 = vld [vmem:[%s1000_s23 + $0x30] sm:$0xff] }
  0x10   : > { %v366_v3 = vsel %vm364_vm0, %v312_v2, 0  ;;  %v825_v8 = vld [vmem:[%s1000_s23 + $0x40] sm:$0xff]  ;;  %v826_v12 = vld [vmem:[%s1000_s23 + $0x48] sm:$0xff]  ;;  %v827_v16 = vld [vmem:[%s1000_s23 + $0x50] sm:$0xff] }
  0x11   : > { %373 = vmatpush.bf16.msra.mxu0 %v366_v3  ;;  %930 = vmatpush.bf16.msra.mxu1 %v366_v3  ;;  %v829_v9 = vld [vmem:[%s1000_s23 + $0x60] sm:$0xff]  ;;  %v830_v13 = vld [vmem:[%s1000_s23 + $0x68] sm:$0xff]  ;;  %v831_v17 = vld [vmem:[%s1000_s23 + $0x70] sm:$0xff] }
  0x12   : > { %931 = vmatpush.bf16.msra.mxu2 %v366_v3  ;;  %932 = vmatpush.bf16.msra.mxu3 %v366_v3  ;;  %v820_v18 = vld [vmem:[%s1000_s23 + $0x18] sm:$0xff] }
  0x13   : > { %v824_v19 = vld [vmem:[%s1000_s23 + $0x38] sm:$0xff] }
  0x14   : > { %v828_v20 = vld [vmem:[%s1000_s23 + $0x58] sm:$0xff] }
  0x15   : > { %374 = vmatpush.bf16.msra.mxu0 %v834_v4  ;;  %933 = vmatpush.bf16.msra.mxu1 %v834_v4  ;;  %v832_v21 = vld [vmem:[%s1000_s23 + $0x78] sm:$0xff] }
  0x16   : > { %934 = vmatpush.bf16.msra.mxu2 %v834_v4  ;;  %935 = vmatpush.bf16.msra.mxu3 %v834_v4 }
  0x19   : > { %375 = vmatpush.bf16.msra.mxu0 %v833_v5  ;;  %936 = vmatpush.bf16.msra.mxu1 %v833_v5 }
  0x1a   : > { %937 = vmatpush.bf16.msra.mxu2 %v833_v5  ;;  %938 = vmatpush.bf16.msra.mxu3 %v833_v5 }
  0x1c   : > { %797 = vmatmul.msk.bf16.vlgmr.msra.gmra.mxu0 %vm315_vm1, %v817_v6  ;;  %801 = vmatmul.msk.bf16.vlgmr.msra.gmra.mxu1 %vm315_vm1, %v821_v7 }
  0x1d   : > { %805 = vmatmul.msk.bf16.vlgmr.msra.gmra.mxu2 %vm315_vm1, %v825_v8  ;;  %809 = vmatmul.msk.bf16.vlgmr.msra.gmra.mxu3 %vm315_vm1, %v829_v9 }
  0x2c   : > { %798 = vmatmul.msk.bf16.gmra.mxu0 %vm315_vm1, %v818_v10  ;;  %802 = vmatmul.msk.bf16.gmra.mxu1 %vm315_vm1, %v822_v11 }
  0x2d   : > { %806 = vmatmul.msk.bf16.gmra.mxu2 %vm315_vm1, %v826_v12  ;;  %810 = vmatmul.msk.bf16.gmra.mxu3 %vm315_vm1, %v830_v13 }
  0x3c   : > { %799 = vmatmul.msk.bf16.gmra.mxu0 %vm315_vm1, %v819_v14  ;;  %803 = vmatmul.msk.bf16.gmra.mxu1 %vm315_vm1, %v823_v15 }
  0x3d   : > { %807 = vmatmul.msk.bf16.gmra.mxu2 %vm315_vm1, %v827_v16  ;;  %811 = vmatmul.msk.bf16.gmra.mxu3 %vm315_vm1, %v831_v17 }
  0x4c   : > { %800 = vmatmul.msk.bf16.gmra.mxu0 %vm315_vm1, %v820_v18  ;;  %804 = vmatmul.msk.bf16.gmra.mxu1 %vm315_vm1, %v824_v19 }
  0x4d   : > { %808 = vmatmul.msk.bf16.gmra.mxu2 %vm315_vm1, %v828_v20  ;;  %812 = vmatmul.msk.bf16.gmra.mxu3 %vm315_vm1, %v832_v21 }
  0x99   : > { %v377_v22 = vpop.f32.mrf.mxu0  ;;  %v1034_v23 = vpop.f32.mrf.mxu1 }
  0x9a   : > { %v559_v55 = vmul.f32 %v377_v22, %v377_v22 }
  0xa0   : > { %v1036_v24 = vpop.f32.mrf.mxu2  ;;  %v1049_v29 = vpop.f32.mrf.mxu3 }
  0xa1   : > { %v379_v25 = vpop.f32.mrf.mxu0  ;;  %v1045_v26 = vpop.f32.mrf.mxu1 }
  0xa2   : > { %v838_v27 = vpack.c.bf16 %v379_v25, %v377_v22  ;;  %v858_v28 = vpack.c.bf16 %v1045_v26, %v1034_v23  ;;  %v560_v54 = vmul.f32 %v379_v25, %v379_v25  ;;  %v521_v57 = vadd.f32 %v379_v25, %v377_v22 }
  0xa3   : > { %v567_v25 = vmul.f32 %v1034_v23, %v1034_v23 }
  0xa4   : > { %839 = vst [vmem:[%s1043_s26] sm:$0xff] %v838_v27   ;;  %v591_v58 = vadd.f32 %v560_v54, %v559_v55 }
  0xa5   : > { %918 = vst [vmem:[%s1043_s26 + $0x20] sm:$0xff] %v858_v28  }
  0xa8   : > { %v1053_v30 = vpop.f32.mrf.mxu2  ;;  %v1059_v34 = vpop.f32.mrf.mxu3 }
  0xa9   : > { %v382_v31 = vpop.f32.mrf.mxu0  ;;  %v1055_v32 = vpop.f32.mrf.mxu1  ;;  %v878_v33 = vpack.c.bf16 %v1053_v30, %v1036_v24  ;;  %v898_v35 = vpack.c.bf16 %v1059_v34, %v1049_v29 }
  0xaa   : > { %v561_v56 = vmul.f32 %v382_v31, %v382_v31  ;;  %v522_v60 = vadd.f32 %v521_v57, %v382_v31 }
  0xab   : > { %922 = vst [vmem:[%s1043_s26 + $0x40] sm:$0xff] %v878_v33  }
  0xac   : > { %926 = vst [vmem:[%s1043_s26 + $0x60] sm:$0xff] %v898_v35   ;;  %v592_v62 = vadd.f32 %v591_v58, %v561_v56 }
  0xb0   : > { %v1065_v36 = vpop.f32.mrf.mxu2  ;;  %v1071_v41 = vpop.f32.mrf.mxu3 }
  0xb1   : > { %v384_v37 = vpop.f32.mrf.mxu0  ;;  %v1067_v38 = vpop.f32.mrf.mxu1 }
  0xb2   : > { %v843_v39 = vpack.c.bf16 %v384_v37, %v382_v31  ;;  %v863_v40 = vpack.c.bf16 %v1067_v38, %v1055_v32  ;;  %v562_v59 = vmul.f32 %v384_v37, %v384_v37  ;;  %v523_v3 = vadd.f32 %v522_v60, %v384_v37 }
  0xb3   : > { %v568_v31 = vmul.f32 %v1045_v26, %v1045_v26  ;;  %v569_v37 = vmul.f32 %v1055_v32, %v1055_v32 }
  0xb4   : > { %915 = vst [vmem:[%s1043_s26 + $0x8] sm:$0xff] %v843_v39   ;;  %v593_v5 = vadd.f32 %v592_v62, %v562_v59 }
  0xb5   : > { %919 = vst [vmem:[%s1043_s26 + $0x28] sm:$0xff] %v863_v40  }
  0xb8   : > { %v1075_v42 = vpop.f32.mrf.mxu2  ;;  %v1081_v46 = vpop.f32.mrf.mxu3 }
  0xb9   : > { %v387_v43 = vpop.f32.mrf.mxu0  ;;  %v1077_v44 = vpop.f32.mrf.mxu1  ;;  %v883_v45 = vpack.c.bf16 %v1075_v42, %v1065_v36  ;;  %v903_v47 = vpack.c.bf16 %v1081_v46, %v1071_v41 }
  0xba   : > { %v563_v63 = vmul.f32 %v387_v43, %v387_v43  ;;  %v524_v8 = vadd.f32 %v523_v3, %v387_v43  ;;  %v576_v3 = vmul.f32 %v1053_v30, %v1053_v30 }
  0xbb   : > { %923 = vst [vmem:[%s1043_s26 + $0x48] sm:$0xff] %v883_v45  }
  0xbc   : > { %927 = vst [vmem:[%s1043_s26 + $0x68] sm:$0xff] %v903_v47   ;;  %v594_v9 = vadd.f32 %v593_v5, %v563_v63 }
  0xc0   : > { %v1087_v48 = vpop.f32.mrf.mxu2  ;;  %v1093_v53 = vpop.f32.mrf.mxu3 }
  0xc1   : > { %v389_v49 = vpop.f32.mrf.mxu0  ;;  %v1089_v50 = vpop.f32.mrf.mxu1 }
  0xc2   : > { %v848_v51 = vpack.c.bf16 %v389_v49, %v387_v43  ;;  %v868_v52 = vpack.c.bf16 %v1089_v50, %v1077_v44  ;;  %v564_v6 = vmul.f32 %v389_v49, %v389_v49  ;;  %v525_v11 = vadd.f32 %v524_v8, %v389_v49 }
  0xc3   : > { %v578_v8 = vmul.f32 %v1075_v42, %v1075_v42 }
  0xc4   : > { %916 = vst [vmem:[%s1043_s26 + $0x10] sm:$0xff] %v848_v51   ;;  %v595_v12 = vadd.f32 %v594_v9, %v564_v6 }
  0xc5   : > { %920 = vst [vmem:[%s1043_s26 + $0x30] sm:$0xff] %v868_v52   ;;  %v571_v52 = vmul.f32 %v1077_v44, %v1077_v44 }
  0xc8   : > { %v1097_v61 = vpop.f32.mrf.mxu2  ;;  %v1101_v4 = vpop.f32.mrf.mxu3 }
  0xc9   : > { %v392_v0 = vpop.f32.mrf.mxu0  ;;  %v412_v1 = vpop.f32.mrf.mxu1  ;;  %v888_v2 = vpack.c.bf16 %v1097_v61, %v1087_v48  ;;  %v908_v7 = vpack.c.bf16 %v1101_v4, %v1093_v53 }
  0xca   : > { %v565_v10 = vmul.f32 %v392_v0, %v392_v0  ;;  %v526_v13 = vadd.f32 %v525_v11, %v392_v0  ;;  %v573_v59 = vmul.f32 %v412_v1, %v412_v1 }
  0xcb   : > { %924 = vst [vmem:[%s1043_s26 + $0x50] sm:$0xff] %v888_v2  }
  0xcc   : > { %928 = vst [vmem:[%s1043_s26 + $0x70] sm:$0xff] %v908_v7   ;;  %v596_v15 = vadd.f32 %v595_v12, %v565_v10 }
  0xd0   : > { %v432_v14 = vpop.f32.mrf.mxu2  ;;  %v1107_v22 = vpop.f32.mrf.mxu3 }
  0xd1   : > { %v394_v16 = vpop.f32.mrf.mxu0  ;;  %v414_v17 = vpop.f32.mrf.mxu1 }
  0xd2   : > { %v853_v18 = vpack.c.bf16 %v394_v16, %v392_v0  ;;  %v527_v19 = vadd.f32 %v526_v13, %v394_v16  ;;  %v566_v20 = vmul.f32 %v394_v16, %v394_v16  ;;  %v873_v21 = vpack.c.bf16 %v414_v17, %v412_v1 }
  0xd3   : > { %v574_v63 = vmul.f32 %v414_v17, %v414_v17  ;;  %v575_v0 = vmul.f32 %v1036_v24, %v1036_v24  ;;  %v580_v13 = vmul.f32 %v1097_v61, %v1097_v61 }
  0xd4   : > { %917 = vst [vmem:[%s1043_s26 + $0x18] sm:$0xff] %v853_v18   ;;  %v528_v27 = vadd.f32 %v527_v19, %v1034_v23  ;;  %v597_v28 = vadd.f32 %v596_v15, %v566_v20  ;;  %v570_v23 = vmul.f32 %v1067_v38, %v1067_v38 }
  0xd5   : > { %921 = vst [vmem:[%s1043_s26 + $0x38] sm:$0xff] %v873_v21  }
  0xd6   : > { %v529_v33 = vadd.f32 %v528_v27, %v1045_v26  ;;  %v598_v35 = vadd.f32 %v597_v28, %v567_v25 }
  0xd8   : > { %v530_v39 = vadd.f32 %v529_v33, %v1055_v32  ;;  %v599_v40 = vadd.f32 %v598_v35, %v568_v31  ;;  %v434_v43 = vpop.f32.mrf.mxu2  ;;  %v454_v51 = vpop.f32.mrf.mxu3  ;;  %v572_v32 = vmul.f32 %v1089_v50, %v1089_v50  ;;  %v586_v33 = vmul.f32 %v1081_v46, %v1081_v46 }
  0xd9   : > { %v893_v45 = vpack.c.bf16 %v434_v43, %v432_v14  ;;  %v913_v26 = vpack.c.bf16 %v454_v51, %v1107_v22  ;;  %v582_v20 = vmul.f32 %v434_v43, %v434_v43 }
  0xda   : > { %v600_v47 = vadd.f32 %v599_v40, %v569_v37  ;;  %v531_v49 = vadd.f32 %v530_v39, %v1067_v38 }
  0xdb   : > { %925 = vst [vmem:[%s1043_s26 + $0x58] sm:$0xff] %v893_v45  }
  0xdc   : > { %v532_v54 = vadd.f32 %v531_v49, %v1077_v44  ;;  %v601_v55 = vadd.f32 %v600_v47, %v570_v23  ;;  %929 = vst [vmem:[%s1043_s26 + $0x78] sm:$0xff] %v913_v26   ;;  %v589_v47 = vmul.f32 %v1107_v22, %v1107_v22  ;;  %v590_v26 = vmul.f32 %v454_v51, %v454_v51 }
  0xde   : > { %v533_v56 = vadd.f32 %v532_v54, %v1089_v50  ;;  %v602_v57 = vadd.f32 %v601_v55, %v571_v52  ;;  %v577_v50 = vmul.f32 %v1065_v36, %v1065_v36 }
  0xe0   : > { %v534_v58 = vadd.f32 %v533_v56, %v412_v1  ;;  %v603_v38 = vadd.f32 %v602_v57, %v572_v32 }
  0xe2   : > { %v604_v60 = vadd.f32 %v603_v38, %v573_v59  ;;  %v535_v62 = vadd.f32 %v534_v58, %v414_v17  ;;  %v581_v17 = vmul.f32 %v432_v14, %v432_v14 }
  0xe4   : > { %v536_v2 = vadd.f32 %v535_v62, %v1036_v24  ;;  %v605_v44 = vadd.f32 %v604_v60, %v574_v63  ;;  %v579_v24 = vmul.f32 %v1087_v48, %v1087_v48 }
  0xe6   : > { %v537_v5 = vadd.f32 %v536_v2, %v1053_v30  ;;  %v606_v6 = vadd.f32 %v605_v44, %v575_v0 }
  0xe8   : > { %v538_v1 = vadd.f32 %v537_v5, %v1065_v36  ;;  %v607_v7 = vadd.f32 %v606_v6, %v576_v3 }
  0xea   : > { %v608_v9 = vadd.f32 %v607_v7, %v577_v50  ;;  %v539_v10 = vadd.f32 %v538_v1, %v1075_v42  ;;  %v583_v42 = vmul.f32 %v1049_v29, %v1049_v29 }
  0xec   : > { %v540_v11 = vadd.f32 %v539_v10, %v1087_v48  ;;  %v609_v12 = vadd.f32 %v608_v9, %v578_v8  ;;  %v584_v48 = vmul.f32 %v1059_v34, %v1059_v34 }
  0xee   : > { %v541_v30 = vadd.f32 %v540_v11, %v1097_v61  ;;  %v610_v15 = vadd.f32 %v609_v12, %v579_v24  ;;  %v585_v61 = vmul.f32 %v1071_v41, %v1071_v41 }
  0xf0   : > { %v611_v36 = vadd.f32 %v610_v15, %v580_v13  ;;  %v542_v16 = vadd.f32 %v541_v30, %v432_v14 }
  0xf2   : > { %v612_v18 = vadd.f32 %v611_v36, %v581_v17  ;;  %v543_v19 = vadd.f32 %v542_v16, %v434_v43  ;;  %v588_v43 = vmul.f32 %v1101_v4, %v1101_v4 }
  0xf4   : > { %v544_v21 = vadd.f32 %v543_v19, %v1049_v29  ;;  %v613_v25 = vadd.f32 %v612_v18, %v582_v20  ;;  %v587_v29 = vmul.f32 %v1093_v53, %v1093_v53 }
  0xf6   : > { %v545_v27 = vadd.f32 %v544_v21, %v1059_v34  ;;  %v614_v28 = vadd.f32 %v613_v25, %v583_v42 }
  0xf8   : > { %v546_v14 = vadd.f32 %v545_v27, %v1071_v41  ;;  %v615_v31 = vadd.f32 %v614_v28, %v584_v48 }
  0xfa   : > { %v616_v35 = vadd.f32 %v615_v31, %v585_v61  ;;  %v547_v37 = vadd.f32 %v546_v14, %v1081_v46 }
  0xfc   : > { %v548_v39 = vadd.f32 %v547_v37, %v1093_v53  ;;  %v617_v40 = vadd.f32 %v616_v35, %v586_v33 }
  0xfe   : > { %v549_v34 = vadd.f32 %v548_v39, %v1101_v4  ;;  %v618_v41 = vadd.f32 %v617_v40, %v587_v29 }
 0x100   : > { %v619_v45 = vadd.f32 %v618_v41, %v588_v43  ;;  %v550_v23 = vadd.f32 %v549_v34, %v1107_v22 }
 0x102   : > { %v620_v46 = vadd.f32 %v619_v45, %v589_v47  ;;  %v551_v49 = vadd.f32 %v550_v23, %v454_v51 }
 0x104   : > { %v552_v52 = vrot.slane %v551_v49, 4  ;;  %v621_v54 = vadd.f32 %v620_v46, %v590_v26 }
 0x106   : > { %v553_v53 = vadd.f32 %v552_v52, %v551_v49  ;;  %v622_v55 = vrot.slane %v621_v54, 4 }
 0x108   : > { %v554_v32 = vrot.slane %v553_v53, 2  ;;  %v623_v56 = vadd.f32 %v622_v55, %v621_v54 }
 0x10a   : > { %v555_v57 = vadd.f32 %v554_v32, %v553_v53  ;;  %v624_v58 = vrot.slane %v623_v56, 2 }
 0x10c   : > { %v556_v4 = vrot.slane %v555_v57, 1  ;;  %v625_v59 = vadd.f32 %v624_v58, %v623_v56 }
 0x10e   : > { %v557_v38 = vadd.f32 %v556_v4, %v555_v57  ;;  %v626_v22 = vrot.slane %v625_v59, 1 }
 0x110   : > { %558 = vst [vmem:[%s181_s30] sm:$0x1] %v557_v38  ;;  %v627_v60 = vadd.f32 %v626_v22, %v625_v59 }
 0x112   : > { %628 = vst [vmem:[%s181_s30 + $0x1] sm:$0x1] %v627_v60 }
 0x113 PF: > { %s14_s12 = sadd.s32 1, %s953_s12  }
 0x114   : > { %p11_p4 = scmp.ge.s32.totalorder %s14_s12, 4  }
 0x116   :  { %13 = sbr.rel (!%p11_p4) target bundleno = 1 (0x1), region = 70 }

// kernel: conv_block_forward.3
= control target key start
LH: loop header
LB: loop body
LE: loop exit
PB: predicated region body
PF: predicated region fallthrough
CT: control target
= control target key end

     0   :  { %s3401_s18 = smov 0   ;;  %s4565_s0 = inlined_call_operand.vmem [shape: bf16[2,16,16,128], index: 0, kind: input, shape index: {}]   ;;  %s4566_s1 = inlined_call_operand.vmem [shape: bf16[3,3,128,128], index: 1, kind: input, shape index: {}]   ;;  %s4567_s2 = inlined_call_operand.vmem [shape: f32[1,128], index: 2, kind: input, shape index: {}]   ;;  %s4568_s3 = inlined_call_operand.vmem [shape: f32[1,128], index: 3, kind: input, shape index: {}]   ;;  %s4569_s4 = inlined_call_operand.vmem [shape: f32[2,16,16,128], index: 4, kind: output, shape index: {0}]   ;;  %s4570_s5 = inlined_call_operand.vmem [shape: f32[2,2,128], index: 5, kind: output, shape index: {1}]  }
   0x1 LB: > { %s2742_s19 = sadd.s32 4294967295, %s3367_s18   ;;  %p2746_p0 = scmp.ge.s32.totalorder %s3367_s18, 1  ;;  %s3367_s18 = sphi %s3401_s18, %s16_s18  }
   0x2   : > { %p190_p1 = scmp.lt.s32.totalorder %s3367_s18, 3 }
   0x4   : > { %p191_p2 = pnand %p2746_p0, %p190_p1 }
   0x6   : > { %194 = sbr.rel (%p191_p2) target bundleno = 802 (0x322), region = 36 }
   0xb   : > { %v3187_v0 = vld [vmem:[%s4566_s1 + $0x78] sm:$0xff]  ;;  %p222_p3 = scmp.lt.s32.totalorder %s2742_s19, 1  ;;  %v4571_v1 = vmov 0.0   ;;  %v3186_v2 = vld [vmem:[%s4566_s1 + $0x70] sm:$0xff]  ;;  %v3429_v3 = vld [vmem:[%s4567_s2] ss:$0 sm:$0xff] }
   0xc   : > { %416 = vst [vmem:[#allocation2 + $0x60] sm:$0xff] %v4571_v1  ;;  %3323 = vmatpush.bf16.msra.mxu1 %v3187_v0  ;;  %3324 = vmatpush.bf16.msra.mxu2 %v3187_v0  ;;  %v3185_v4 = vld [vmem:[%s4566_s1 + $0x68] sm:$0xff]  ;;  %v3439_v8 = vld [vmem:[%s4568_s3] ss:$0 sm:$0xff]  ;;  %v3183_v16 = vld [vmem:[%s4566_s1 + $0x58] sm:$0xff]  ;;  %vm625_vm0 = vcmask 1046528  }
   0xd   : > { %s4707_s19 = smov (!%p222_p3, %s2742_s19), 1  ;;  %417 = vst [vmem:[#allocation2 + $0x68] sm:$0xff] %v4571_v1  ;;  %3325 = vmatpush.bf16.msra.mxu3 %v3187_v0  ;;  %819 = vmatpush.bf16.msra.mxu0 %v3187_v0  ;;  %v3184_v11 = vld [vmem:[%s4566_s1 + $0x60] sm:$0xff]  ;;  %v3182_v17 = vld [vmem:[%s4566_s1 + $0x50] sm:$0xff]  ;;  %v3181_v18 = vld [vmem:[%s4566_s1 + $0x48] sm:$0xff]  ;;  %v626_v34 = vrot.slane %v4571_v1, 1 }
   0xe   : > { %s3170_s24 = sshll.u32 %s4707_s19, 7  ;;  %418 = vst [vmem:[#allocation2 + $0x70] sm:$0x3] %v4571_v1  ;;  %v3180_v25 = vld [vmem:[%s4566_s1 + $0x40] sm:$0xff]  ;;  %v3195_v40 = vld [vmem:[%s4566_s1 + $0xb8] sm:$0xff]  ;;  %v3194_v48 = vld [vmem:[%s4566_s1 + $0xb0] sm:$0xff] }
   0xf   : > { %s3424_s27 = scalar_lea.vmem %s4565_s0, %s3170_s24  ;;  %404 = vst [vmem:[#allocation2] sm:$0xff] %v4571_v1  ;;  %v3203_v42 = vld [vmem:[%s4566_s1 + $0xf8] sm:$0xff]  ;;  %v3202_v51 = vld [vmem:[%s4566_s1 + $0xf0] sm:$0xff]  ;;  %vm1045_vm1 = vcmask 1045504   ;;  %s3171_s20 = sshll.u32 %s4707_s19, 8 }
  0x10   : > { %3326 = vmatpush.bf16.msra.mxu1 %v3186_v2  ;;  %3327 = vmatpush.bf16.msra.mxu2 %v3186_v2  ;;  %v3310_v5 = vld [vmem:[%s3424_s27 + $0x18] sm:$0xff]   ;;  %406 = vst [vmem:[#allocation2 + $0x10] sm:$0x3] %v4571_v1  ;;  %v3311_v38 = vld [vmem:[%s3424_s27 + $0x20] sm:$0xff]   ;;  %v3178_v52 = vld [vmem:[%s4566_s1 + $0x30] sm:$0xff]  ;;  %s4460_s23 = scalar_lea.vmem %s4569_s4, %s3171_s20  ;;  %s2751_s24 = sshll.u32 %s4707_s19, 1 }
  0x11   : > { %3328 = vmatpush.bf16.msra.mxu3 %v3186_v2  ;;  %820 = vmatpush.bf16.msra.mxu0 %v3186_v2  ;;  %v3258_v6 = vunpack.c.l.bf16 %v3310_v5  ;;  %v3259_v7 = vunpack.c.h.bf16 %v3310_v5  ;;  %407 = vst [vmem:[#allocation2 + $0x18] sm:$0xff] %v4571_v1  ;;  %v3314_v29 = vld [vmem:[%s3424_s27 + $0x38] sm:$0xff]   ;;  %v3262_v49 = vunpack.c.l.bf16 %v3311_v38  ;;  %v3315_v50 = vld [vmem:[%s3424_s27 + $0x40] sm:$0xff]   ;;  %v3263_v54 = vunpack.c.h.bf16 %v3311_v38  ;;  %s235_s28 = scalar_lea.vmem %s4570_s5, %s2751_s24 }
  0x12   : > { %408 = vst [vmem:[#allocation2 + $0x20] sm:$0xff] %v4571_v1  ;;  %v3318_v30 = vld [vmem:[%s3424_s27 + $0x58] sm:$0xff]   ;;  %v3274_v31 = vunpack.c.l.bf16 %v3314_v29  ;;  %v3275_v33 = vunpack.c.h.bf16 %v3314_v29  ;;  %v3278_v57 = vunpack.c.l.bf16 %v3315_v50  ;;  %v3319_v58 = vld [vmem:[%s3424_s27 + $0x60] sm:$0xff]   ;;  %v3279_v61 = vunpack.c.h.bf16 %v3315_v50  ;;  %v3308_v29 = vld [vmem:[%s3424_s27 + $0x8] sm:$0xff]  }
  0x13   : > { %v310_v9 = vmul.f32 %v3429_v3, %v3258_v6  ;;  %v311_v10 = vmul.f32 %v3429_v3, %v3259_v7  ;;  %409 = vst [vmem:[#allocation2 + $0x28] sm:$0x3] %v4571_v1  ;;  %v3290_v36 = vunpack.c.l.bf16 %v3318_v30  ;;  %v3179_v43 = vld [vmem:[%s4566_s1 + $0x38] sm:$0xff]  ;;  %v3291_v45 = vunpack.c.h.bf16 %v3318_v30  ;;  %v3245_v62 = vld [vmem:[%s3424_s27] sm:$0xff]  }
  0x14   : > { %3329 = vmatpush.bf16.msra.mxu1 %v3185_v4  ;;  %3330 = vmatpush.bf16.msra.mxu2 %v3185_v4  ;;  %410 = vst [vmem:[#allocation2 + $0x30] sm:$0xff] %v4571_v1  ;;  %v318_v39 = vmul.f32 %v3429_v3, %v3274_v31  ;;  %v319_v44 = vmul.f32 %v3429_v3, %v3275_v33  ;;  %v3211_v46 = vld [vmem:[%s4566_s1 + $0x138] sm:$0xff]  ;;  %v3294_v2 = vunpack.c.l.bf16 %v3319_v58  ;;  %v3250_v38 = vunpack.c.l.bf16 %v3308_v29 }
  0x15   : > { %3331 = vmatpush.bf16.msra.mxu3 %v3185_v4  ;;  %821 = vmatpush.bf16.msra.mxu0 %v3185_v4  ;;  %v346_v12 = vadd.f32 %v3439_v8, %v310_v9  ;;  %v347_v13 = vadd.f32 %v3439_v8, %v311_v10  ;;  %411 = vst [vmem:[#allocation2 + $0x38] sm:$0xff] %v4571_v1  ;;  %v3295_v4 = vunpack.c.h.bf16 %v3319_v58  ;;  %v3246_v9 = vunpack.c.l.bf16 %v3245_v62  ;;  %v3200_v58 = vld [vmem:[%s4566_s1 + $0xe0] sm:$0xff] }
  0x16   : > { %412 = vst [vmem:[#allocation2 + $0x40] sm:$0x3] %v4571_v1  ;;  %v326_v47 = vmul.f32 %v3429_v3, %v3290_v36  ;;  %v354_v53 = vadd.f32 %v3439_v8, %v318_v39  ;;  %v3548_v55 = vadd.f32 %v3439_v8, %v319_v44  ;;  %v327_v56 = vmul.f32 %v3429_v3, %v3291_v45 }
  0x17   : > { %v378_v14 = vmax.f32 %v346_v12, 0.0  ;;  %v379_v15 = vmax.f32 %v347_v13, 0.0  ;;  %413 = vst [vmem:[#allocation2 + $0x48] sm:$0xff] %v4571_v1  ;;  %v3506_v32 = vld [vmem:[#allocation2 + $0x10] sm:$0x3]  ;;  %v312_v60 = vmul.f32 %v3429_v3, %v3262_v49  ;;  %v313_v0 = vmul.f32 %v3429_v3, %v3263_v54 }
  0x18   : > { %3332 = vmatpush.bf16.msra.mxu1 %v3184_v11  ;;  %3333 = vmatpush.bf16.msra.mxu2 %v3184_v11  ;;  %414 = vst [vmem:[#allocation2 + $0x50] sm:$0xff] %v4571_v1  ;;  %v629_v35 = vrot.slane %v3506_v32, 1  ;;  %v3554_v59 = vadd.f32 %v3439_v8, %v326_v47  ;;  %v386_v63 = vmax.f32 %v354_v53, 0.0  ;;  %v387_v5 = vmax.f32 %v3548_v55, 0.0  ;;  %v3201_v47 = vld [vmem:[%s4566_s1 + $0xe8] sm:$0xff] }
  0x19   : > { %3334 = vmatpush.bf16.msra.mxu3 %v3184_v11  ;;  %822 = vmatpush.bf16.msra.mxu0 %v3184_v11  ;;  %465 = vst [vmem:[#allocation2 + $0x61] sm:$0xff] %v378_v14  ;;  %v363_v6 = vadd.f32 %v3439_v8, %v327_v56  ;;  %v320_v7 = vmul.f32 %v3429_v3, %v3278_v57  ;;  %v3247_v13 = vunpack.c.h.bf16 %v3245_v62  ;;  %v3312_v14 = vld [vmem:[%s3424_s27 + $0x28] sm:$0xff]   ;;  %v3192_v57 = vld [vmem:[%s4566_s1 + $0xa0] sm:$0xff] }
  0x1a   : > { %466 = vst [vmem:[#allocation2 + $0x69] sm:$0xff] %v379_v15  ;;  %v630_v37 = vsel %vm625_vm0, %v626_v34, %v629_v35  ;;  %v394_v10 = vmax.f32 %v3554_v59, 0.0  ;;  %v348_v11 = vadd.f32 %v3439_v8, %v312_v60  ;;  %v321_v12 = vmul.f32 %v3429_v3, %v3279_v61  ;;  %v3316_v15 = vld [vmem:[%s3424_s27 + $0x48] sm:$0xff]   ;;  %v3176_v62 = vld [vmem:[%s4566_s1 + $0x20] sm:$0xff] }
  0x1b   : > { %415 = vst [vmem:[#allocation2 + $0x58] sm:$0x3] %v4571_v1  ;;  %v738_v41 = vpack.c.bf16 %v630_v37, %v626_v34  ;;  %v395_v30 = vmax.f32 %v363_v6, 0.0  ;;  %v356_v31 = vadd.f32 %v3439_v8, %v320_v7  ;;  %v304_v33 = vmul.f32 %v3429_v3, %v3246_v9  ;;  %v3209_v61 = vld [vmem:[%s4566_s1 + $0x128] sm:$0xff] }
  0x1c   : > { %3335 = vmatpush.bf16.msra.mxu1 %v3183_v16  ;;  %3336 = vmatpush.bf16.msra.mxu2 %v3183_v16  ;;  %419 = vst [vmem:[#allocation2 + $0x78] sm:$0xff] %v4571_v1  ;;  %v357_v35 = vadd.f32 %v3439_v8, %v321_v12  ;;  %v305_v36 = vmul.f32 %v3429_v3, %v3247_v13  ;;  %v380_v39 = vmax.f32 %v348_v11, 0.0  ;;  %v3251_v60 = vunpack.c.h.bf16 %v3308_v29 }
  0x1d   : > { %3337 = vmatpush.bf16.msra.mxu3 %v3183_v16  ;;  %823 = vmatpush.bf16.msra.mxu0 %v3183_v16  ;;  %420 = vst [vmem:[#allocation2 + $0x80] sm:$0xff] %v4571_v1  ;;  %v3320_v16 = vld [vmem:[%s3424_s27 + $0x68] sm:$0xff]   ;;  %v388_v50 = vmax.f32 %v356_v31, 0.0  ;;  %v306_v54 = vmul.f32 %v3429_v3, %v3250_v38 }
  0x1e   : > { %421 = vst [vmem:[#allocation2 + $0x88] sm:$0x3] %v4571_v1  ;;  %v3299_v34 = vunpack.c.h.bf16 %v3320_v16  ;;  %v389_v55 = vmax.f32 %v357_v35, 0.0  ;;  %v341_v56 = vadd.f32 %v3439_v8, %v305_v36  ;;  %v307_v12 = vmul.f32 %v3429_v3, %v3251_v60  ;;  %v3313_v36 = vld [vmem:[%s3424_s27 + $0x30] sm:$0xff]  }
  0x1f   : > { %422 = vst [vmem:[#allocation2 + $0x90] sm:$0xff] %v4571_v1  ;;  %v3633_v9 = vadd.f32 %v3439_v8, %v306_v54 }
  0x20   : > { %3338 = vmatpush.bf16.msra.mxu1 %v3182_v17  ;;  %3339 = vmatpush.bf16.msra.mxu2 %v3182_v17  ;;  %v3470_v19 = vld [vmem:[#allocation2 + $0x60] sm:$0xff]  ;;  %423 = vst [vmem:[#allocation2 + $0x98] sm:$0xff] %v4571_v1  ;;  %v331_v53 = vmul.f32 %v3429_v3, %v3299_v34  ;;  %v373_v11 = vmax.f32 %v341_v56, 0.0  ;;  %v3658_v35 = vadd.f32 %v3439_v8, %v307_v12 }
  0x21   : > { %3340 = vmatpush.bf16.msra.mxu3 %v3182_v17  ;;  %824 = vmatpush.bf16.msra.mxu0 %v3182_v17  ;;  %v3473_v20 = vld [vmem:[#allocation2 + $0x68] sm:$0xff]  ;;  %v3475_v21 = vld [vmem:[#allocation2 + $0x70] sm:$0x3]  ;;  %v646_v22 = vrot.slane %v3470_v19, 1  ;;  %424 = vst [vmem:[#allocation2 + $0xa0] sm:$0x3] %v4571_v1  ;;  %v3266_v17 = vunpack.c.l.bf16 %v3312_v14 }
  0x22   : > { %v647_v23 = vrot.slane %v3473_v20, 1  ;;  %v649_v24 = vrot.slane %v3475_v21, 1  ;;  %425 = vst [vmem:[#allocation2 + $0xa8] sm:$0xff] %v4571_v1  ;;  %v3630_v7 = vadd.f32 %v3439_v8, %v331_v53  ;;  %v375_v56 = vmax.f32 %v3658_v35, 0.0 }
  0x23   : > { %426 = vst [vmem:[#allocation2 + $0xb0] sm:$0xff] %v4571_v1  ;;  %v314_v37 = vmul.f32 %v3429_v3, %v3266_v17 }
  0x24   : > { %3341 = vmatpush.bf16.msra.mxu1 %v3181_v18  ;;  %3342 = vmatpush.bf16.msra.mxu2 %v3181_v18  ;;  %v648_v26 = vsel %vm625_vm0, %v646_v22, %v647_v23  ;;  %v650_v27 = vsel %vm625_vm0, %v647_v23, %v649_v24  ;;  %427 = vst [vmem:[#allocation2 + $0xb8] sm:$0x3] %v4571_v1  ;;  %v3282_v22 = vunpack.c.l.bf16 %v3316_v15  ;;  %v3283_v23 = vunpack.c.h.bf16 %v3316_v15 }
  0x25   : > { %3343 = vmatpush.bf16.msra.mxu3 %v3181_v18  ;;  %825 = vmatpush.bf16.msra.mxu0 %v3181_v18  ;;  %428 = vst [vmem:[#allocation2 + $0xc0] sm:$0xff] %v4571_v1  ;;  %v3491_v28 = vpack.c.bf16 %v650_v27, %v648_v26  ;;  %v3267_v18 = vunpack.c.h.bf16 %v3312_v14  ;;  %v349_v24 = vadd.f32 %v3439_v8, %v313_v0  ;;  %v3298_v27 = vunpack.c.l.bf16 %v3320_v16 }
  0x26   : > { %429 = vst [vmem:[#allocation2 + $0xc8] sm:$0xff] %v4571_v1  ;;  %v329_v26 = vmul.f32 %v3429_v3, %v3295_v4  ;;  %v350_v59 = vadd.f32 %v3439_v8, %v314_v37  ;;  %v399_v29 = vmax.f32 %v3630_v7, 0.0  ;;  %v3191_v7 = vld [vmem:[%s4566_s1 + $0x98] sm:$0xff] }
  0x27   : > { %430 = vst [vmem:[#allocation2 + $0xd0] sm:$0x3] %v4571_v1  ;;  %v330_v49 = vmul.f32 %v3429_v3, %v3298_v27 }
  0x28   : > { %3344 = vmatpush.bf16.msra.mxu1 %v3180_v25  ;;  %3345 = vmatpush.bf16.msra.mxu2 %v3180_v25  ;;  %431 = vst [vmem:[#allocation2 + $0xd8] sm:$0xff] %v4571_v1  ;;  %v365_v45 = vadd.f32 %v3439_v8, %v329_v26  ;;  %v382_v14 = vmax.f32 %v350_v59, 0.0 }
  0x29   : > { %3346 = vmatpush.bf16.msra.mxu3 %v3180_v25  ;;  %826 = vmatpush.bf16.msra.mxu0 %v3180_v25  ;;  %432 = vst [vmem:[#allocation2 + $0xe0] sm:$0xff] %v4571_v1  ;;  %v328_v25 = vmul.f32 %v3429_v3, %v3294_v2 }
  0x2a   : > { %433 = vst [vmem:[#allocation2 + $0xe8] sm:$0x3] %v4571_v1  ;;  %v397_v6 = vmax.f32 %v365_v45, 0.0 }
  0x2b   : > { %847 = vmatmul.bf16.vlgmr.msra.gmra.mxu1 %v3491_v28  ;;  %434 = vst [vmem:[#allocation2 + $0xf0] sm:$0xff] %v4571_v1  ;;  %v364_v44 = vadd.f32 %v3439_v8, %v328_v25 }
  0x2c   : > { %435 = vst [vmem:[#allocation2 + $0xf8] sm:$0xff] %v4571_v1  ;;  %1239 = vmatpush.bf16.msrb.mxu2 %v3195_v40  ;;  %827 = vmatmul.bf16.vlgmr.msra.gmra.mxu0 %v738_v41  ;;  %v315_v40 = vmul.f32 %v3429_v3, %v3267_v18  ;;  %v322_v41 = vmul.f32 %v3429_v3, %v3282_v22 }
  0x2d   : > { %436 = vst [vmem:[#allocation2 + $0x100] sm:$0x3] %v4571_v1  ;;  %1426 = vmatpush.bf16.msrb.mxu3 %v3203_v42  ;;  %956 = vmatpush.bf16.msrb.mxu1 %v3179_v43  ;;  %v323_v42 = vmul.f32 %v3429_v3, %v3283_v23  ;;  %v381_v43 = vmax.f32 %v349_v24, 0.0  ;;  %v396_v4 = vmax.f32 %v364_v44, 0.0 }
  0x2e   : > { %437 = vst [vmem:[#allocation2 + $0x108] sm:$0xff] %v4571_v1  ;;  %1623 = vmatpush.bf16.msrb.mxu0 %v3211_v46  ;;  %v3193_v46 = vld [vmem:[%s4566_s1 + $0xa8] sm:$0xff]  ;;  %v3621_v0 = vadd.f32 %v3439_v8, %v322_v41 }
  0x2f   : > { %438 = vst [vmem:[#allocation2 + $0x110] sm:$0xff] %v4571_v1  ;;  %v3624_v2 = vadd.f32 %v3439_v8, %v323_v42 }
  0x30   : > { %439 = vst [vmem:[#allocation2 + $0x118] sm:$0x3] %v4571_v1  ;;  %1240 = vmatpush.bf16.msrb.mxu2 %v3194_v48  ;;  %v3210_v48 = vld [vmem:[%s4566_s1 + $0x130] sm:$0xff]  ;;  %v390_v16 = vmax.f32 %v3621_v0, 0.0 }
  0x31   : > { %440 = vst [vmem:[#allocation2 + $0x120] sm:$0xff] %v4571_v1  ;;  %1427 = vmatpush.bf16.msrb.mxu3 %v3202_v51  ;;  %957 = vmatpush.bf16.msrb.mxu1 %v3178_v52  ;;  %v340_v51 = vadd.f32 %v3439_v8, %v304_v33  ;;  %v3177_v52 = vld [vmem:[%s4566_s1 + $0x28] sm:$0xff]  ;;  %v391_v17 = vmax.f32 %v3624_v2, 0.0  ;;  %v3317_v0 = vld [vmem:[%s3424_s27 + $0x50] sm:$0xff]  }
  0x32   : > { %441 = vst [vmem:[#allocation2 + $0x128] sm:$0xff] %v4571_v1  ;;  %1624 = vmatpush.bf16.msrb.mxu0 %v3210_v48 }
  0x33   : > { %442 = vst [vmem:[#allocation2 + $0x130] sm:$0x3] %v4571_v1 }
  0x34   : > { %443 = vst [vmem:[#allocation2 + $0x138] sm:$0xff] %v4571_v1  ;;  %1241 = vmatpush.bf16.msrb.mxu2 %v3193_v46  ;;  %v3270_v46 = vunpack.c.l.bf16 %v3313_v36 }
  0x35   : > { %444 = vst [vmem:[#allocation2 + $0x140] sm:$0xff] %v4571_v1  ;;  %1428 = vmatpush.bf16.msrb.mxu3 %v3201_v47  ;;  %958 = vmatpush.bf16.msrb.mxu1 %v3177_v52  ;;  %v3271_v47 = vunpack.c.h.bf16 %v3313_v36 }
  0x36   : > { %445 = vst [vmem:[#allocation2 + $0x148] sm:$0x3] %v4571_v1  ;;  %1625 = vmatpush.bf16.msrb.mxu0 %v3209_v61 }
  0x37   : > { %446 = vst [vmem:[#allocation2 + $0x150] sm:$0xff] %v4571_v1 }
  0x38   : > { %447 = vst [vmem:[#allocation2 + $0x158] sm:$0xff] %v4571_v1  ;;  %1242 = vmatpush.bf16.msrb.mxu2 %v3192_v57  ;;  %v316_v57 = vmul.f32 %v3429_v3, %v3270_v46 }
  0x39   : > { %448 = vst [vmem:[#allocation2 + $0x160] sm:$0x3] %v4571_v1  ;;  %1429 = vmatpush.bf16.msrb.mxu3 %v3200_v58  ;;  %959 = vmatpush.bf16.msrb.mxu1 %v3176_v62  ;;  %v317_v58 = vmul.f32 %v3429_v3, %v3271_v47 }
  0x3a   : > { %449 = vst [vmem:[#allocation2 + $0x168] sm:$0xff] %v4571_v1 }
  0x3b   : > { %450 = vst [vmem:[#allocation2 + $0x170] sm:$0xff] %v4571_v1 }
  0x3c   : > { %451 = vst [vmem:[#allocation2 + $0x178] sm:$0x3] %v4571_v1  ;;  %1243 = vmatpush.bf16.msrb.mxu2 %v3191_v7 }
  0x3d   : > { %452 = vst [vmem:[#allocation2 + $0x180] sm:$0xff] %v4571_v1 }
  0x3e   : > { %453 = vst [vmem:[#allocation2 + $0x188] sm:$0xff] %v4571_v1 }
  0x3f   : > { %454 = vst [vmem:[#allocation2 + $0x190] sm:$0x3] %v4571_v1 }
  0x40   : > { %457 = vst [vmem:[#allocation2 + $0x1a8] sm:$0x3] %v4571_v1  ;;  %v3204_v1 = vld [vmem:[%s4566_s1 + $0x100] sm:$0xff] }
  0x41   : > { %473 = vst [vmem:[#allocation2 + $0xc1] sm:$0xff] %v386_v63  ;;  %v351_v63 = vadd.f32 %v3439_v8, %v315_v40 }
  0x42   : > { %474 = vst [vmem:[#allocation2 + $0xc9] sm:$0xff] %v387_v5  ;;  %v3627_v5 = vadd.f32 %v3439_v8, %v330_v49 }
  0x43   : > { %481 = vst [vmem:[#allocation2 + $0x121] sm:$0xff] %v394_v10  ;;  %v372_v10 = vmax.f32 %v340_v51, 0.0  ;;  %v383_v15 = vmax.f32 %v351_v63, 0.0 }
  0x44   : > { %482 = vst [vmem:[#allocation2 + $0x129] sm:$0xff] %v395_v30  ;;  %v398_v24 = vmax.f32 %v3627_v5, 0.0  ;;  %v374_v30 = vmax.f32 %v3633_v9, 0.0  ;;  %v352_v9 = vadd.f32 %v3439_v8, %v316_v57 }
  0x45   : > { %467 = vst [vmem:[#allocation2 + $0x79] sm:$0xff] %v380_v39 }
  0x46   : > { %468 = vst [vmem:[#allocation2 + $0x81] sm:$0xff] %v381_v43  ;;  %v384_v46 = vmax.f32 %v352_v9, 0.0 }
  0x47   : > { %475 = vst [vmem:[#allocation2 + $0xd9] sm:$0xff] %v388_v50 }
  0x48   : > { %v3636_v13 = vld [vmem:[#allocation2 + $0xc0] sm:$0xff]  ;;  %476 = vst [vmem:[#allocation2 + $0xe1] sm:$0xff] %v389_v55 }
  0x49   : > { %v3640_v18 = vld [vmem:[#allocation2 + $0xc8] sm:$0xff]  ;;  %v3642_v22 = vld [vmem:[#allocation2 + $0xd0] sm:$0x3]  ;;  %v666_v23 = vrot.slane %v3636_v13, 1  ;;  %483 = vst [vmem:[#allocation2 + $0x139] sm:$0xff] %v396_v4 }
  0x4a   : > { %v667_v25 = vrot.slane %v3640_v18, 1  ;;  %v669_v26 = vrot.slane %v3642_v22, 1  ;;  %v3648_v27 = vld [vmem:[#allocation2 + $0x120] sm:$0xff]  ;;  %484 = vst [vmem:[#allocation2 + $0x141] sm:$0xff] %v397_v6 }
  0x4b   : > { %4613 = vst [vmem:[#allocation3_spill] sm:$0xff] %v3648_v27  ;;  %v3652_v31 = vld [vmem:[#allocation2 + $0x128] sm:$0xff]  ;;  %v3654_v33 = vld [vmem:[#allocation2 + $0x130] sm:$0x3]  ;;  %v686_v34 = vrot.slane %v3648_v27, 1 }
  0x4c   : > { %4614 = vst [vmem:[#allocation4_spill] sm:$0xff] %v3652_v31  ;;  %v668_v37 = vsel %vm625_vm0, %v666_v23, %v667_v25  ;;  %v670_v38 = vsel %vm625_vm0, %v667_v25, %v669_v26  ;;  %v687_v39 = vrot.slane %v3652_v31, 1  ;;  %v689_v40 = vrot.slane %v3654_v33, 1  ;;  %v3665_v41 = vld [vmem:[#allocation2 + $0x78] sm:$0xff] }
  0x4d   : > { %4615 = vst [vmem:[#allocation5_spill] sm:$0xff] %v3654_v33  ;;  %v3667_v42 = vpack.c.bf16 %v670_v38, %v668_v37  ;;  %v3669_v43 = vld [vmem:[#allocation2 + $0x80] sm:$0xff]  ;;  %v3671_v44 = vld [vmem:[#allocation2 + $0x88] sm:$0x3]  ;;  %v651_v45 = vrot.slane %v3665_v41, 1  ;;  %v353_v25 = vadd.f32 %v3439_v8, %v317_v58  ;;  %v3286_v26 = vunpack.c.l.bf16 %v3317_v0  ;;  %v3198_v37 = vld [vmem:[%s4566_s1 + $0xd0] sm:$0xff] }
  0x4e   : > { %459 = vst [vmem:[#allocation2 + $0x19] sm:$0xff] %v372_v10  ;;  %v688_v48 = vsel %vm625_vm0, %v686_v34, %v687_v39  ;;  %v690_v49 = vsel %vm625_vm0, %v687_v39, %v689_v40  ;;  %v652_v50 = vrot.slane %v3669_v43, 1  ;;  %v654_v51 = vrot.slane %v3671_v44, 1  ;;  %v3678_v52 = vld [vmem:[#allocation2 + $0xd8] sm:$0xff] }
  0x4f   : > { %460 = vst [vmem:[#allocation2 + $0x21] sm:$0xff] %v373_v11  ;;  %867 = vmatmul.bf16.vlgmr.msra.gmra.mxu2 %v3667_v42  ;;  %v3681_v53 = vpack.c.bf16 %v690_v49, %v688_v48  ;;  %v3683_v54 = vld [vmem:[#allocation2 + $0xe0] sm:$0xff]  ;;  %v3685_v55 = vld [vmem:[#allocation2 + $0xe8] sm:$0x3]  ;;  %v671_v61 = vrot.slane %v3678_v52, 1  ;;  %v324_v47 = vmul.f32 %v3429_v3, %v3286_v26 }
  0x50   : > { %4616 = vst [vmem:[#allocation6_spill] sm:$0xff] %v3667_v42  ;;  %v653_v59 = vsel %vm625_vm0, %v651_v45, %v652_v50  ;;  %v655_v60 = vsel %vm625_vm0, %v652_v50, %v654_v51  ;;  %v672_v62 = vrot.slane %v3683_v54, 1  ;;  %v3694_v63 = vld [vmem:[#allocation2 + $0x138] sm:$0xff]  ;;  %v674_v4 = vrot.slane %v3685_v55, 1  ;;  %v3174_v51 = vld [vmem:[%s4566_s1 + $0x10] sm:$0xff] }
  0x51   : > { %469 = vst [vmem:[#allocation2 + $0x91] sm:$0xff] %v382_v14  ;;  %887 = vmatmul.bf16.vlgmr.msra.gmra.mxu3 %v3681_v53  ;;  %v3698_v2 = vpack.c.bf16 %v655_v60, %v653_v59  ;;  %v3701_v5 = vld [vmem:[#allocation2 + $0x140] sm:$0xff]  ;;  %v3703_v6 = vld [vmem:[#allocation2 + $0x148] sm:$0x3]  ;;  %v691_v10 = vrot.slane %v3694_v63, 1  ;;  %v3199_v14 = vld [vmem:[%s4566_s1 + $0xd8] sm:$0xff] }
  0x52   : > { %470 = vst [vmem:[#allocation2 + $0x99] sm:$0xff] %v383_v15  ;;  %v692_v11 = vrot.slane %v3701_v5, 1  ;;  %v3208_v15 = vld [vmem:[%s4566_s1 + $0x120] sm:$0xff]  ;;  %1430 = vmatpush.bf16.msrb.mxu3 %v3199_v14  ;;  %v694_v38 = vrot.slane %v3703_v6, 1  ;;  %v3207_v45 = vld [vmem:[%s4566_s1 + $0x118] sm:$0xff]  ;;  %v673_v48 = vsel %vm625_vm0, %v671_v61, %v672_v62  ;;  %v675_v57 = vsel %vm625_vm0, %v672_v62, %v674_v4 }
  0x53   : > { %4617 = vst [vmem:[#allocation7_spill] sm:$0xff] %v3681_v53  ;;  %852 = vmatmul.bf16.gmra.mxu1 %v3698_v2  ;;  %1626 = vmatpush.bf16.msrb.mxu0 %v3208_v15  ;;  %v385_v59 = vmax.f32 %v353_v25, 0.0  ;;  %v360_v4 = vadd.f32 %v3439_v8, %v324_v47 }
  0x54   : > { %477 = vst [vmem:[#allocation2 + $0xf1] sm:$0xff] %v390_v16  ;;  %v693_v61 = vsel %vm625_vm0, %v691_v10, %v692_v11  ;;  %v695_v62 = vsel %vm625_vm0, %v692_v11, %v694_v38  ;;  %v3768_v10 = vpack.c.bf16 %v675_v57, %v673_v48 }
  0x55   : > { %4618 = vst [vmem:[#allocation8_spill] sm:$0xff] %v3694_v63  ;;  %v3711_v12 = vld [vmem:[#allocation2 + $0x18] sm:$0xff]  ;;  %v392_v26 = vmax.f32 %v360_v4, 0.0  ;;  %v3776_v11 = vpack.c.bf16 %v695_v62, %v693_v61 }
  0x56   : > { %478 = vst [vmem:[#allocation2 + $0xf9] sm:$0xff] %v391_v17  ;;  %v3720_v16 = vld [vmem:[#allocation2 + $0x20] sm:$0xff]  ;;  %v3722_v17 = vld [vmem:[#allocation2 + $0x28] sm:$0x3]  ;;  %v631_v23 = vrot.slane %v3711_v12, 1  ;;  %1431 = vmatpush.bf16.msrb.mxu3 %v3198_v37 }
  0x57   : > { %4619 = vst [vmem:[#allocation9_spill] sm:$0xff] %v3698_v2  ;;  %v632_v34 = vrot.slane %v3720_v16, 1  ;;  %v634_v35 = vrot.slane %v3722_v17, 1  ;;  %1627 = vmatpush.bf16.msrb.mxu0 %v3207_v45 }
  0x58   : > { %4620 = vst [vmem:[#allocation10_spill] sm:$0xff] %v3701_v5  ;;  %v3731_v36 = vld [vmem:[#allocation2 + $0x90] sm:$0xff]  ;;  %v1054_v5 = vrot.slane %v3722_v17, 2 }
  0x59   : > { %4621 = vst [vmem:[#allocation11_spill] sm:$0xff] %v3703_v6  ;;  %v3740_v39 = vld [vmem:[#allocation2 + $0x98] sm:$0xff]  ;;  %v3742_v40 = vld [vmem:[#allocation2 + $0xa0] sm:$0x3]  ;;  %v633_v49 = vsel %vm625_vm0, %v631_v23, %v632_v34  ;;  %v635_v50 = vsel %vm625_vm0, %v632_v34, %v634_v35  ;;  %v1052_v6 = vrot.slane %v3720_v16, 2 }
  0x5a   : > { %485 = vst [vmem:[#allocation2 + $0x151] sm:$0xff] %v398_v24  ;;  %v3175_v24 = vld [vmem:[%s4566_s1 + $0x18] sm:$0xff]  ;;  %v3756_v58 = vpack.c.bf16 %v635_v50, %v633_v49  ;;  %v657_v7 = vrot.slane %v3740_v39, 1  ;;  %v659_v9 = vrot.slane %v3742_v40, 1 }
  0x5b   : > { %486 = vst [vmem:[#allocation2 + $0x159] sm:$0xff] %v399_v29  ;;  %v3287_v29 = vunpack.c.h.bf16 %v3317_v0  ;;  %960 = vmatpush.bf16.msrb.mxu1 %v3175_v24  ;;  %v656_v0 = vrot.slane %v3731_v36, 1 }
  0x5c   : > { %461 = vst [vmem:[#allocation2 + $0x31] sm:$0xff] %v374_v30  ;;  %v3190_v30 = vld [vmem:[%s4566_s1 + $0x90] sm:$0xff]  ;;  %832 = vmatmul.bf16.gmra.mxu0 %v3756_v58  ;;  %v660_v35 = vsel %vm625_vm0, %v657_v7, %v659_v9 }
  0x5d   : > { %462 = vst [vmem:[#allocation2 + $0x39] sm:$0xff] %v375_v56  ;;  %v3321_v56 = vld [vmem:[%s3424_s27 + $0x70] sm:$0xff]   ;;  %1244 = vmatpush.bf16.msrb.mxu2 %v3190_v30  ;;  %v325_v60 = vmul.f32 %v3429_v3, %v3287_v29  ;;  %v658_v34 = vsel %vm625_vm0, %v656_v0, %v657_v7  ;;  %v3784_v47 = vld [vmem:[#allocation2 + $0xf8] sm:$0xff] }
  0x5e   : > { %471 = vst [vmem:[#allocation2 + $0xa9] sm:$0xff] %v384_v46  ;;  %v3302_v14 = vunpack.c.l.bf16 %v3321_v56  ;;  %v3309_v29 = vld [vmem:[%s3424_s27 + $0x10] sm:$0xff]   ;;  %v3303_v38 = vunpack.c.h.bf16 %v3321_v56  ;;  %v3789_v57 = vpack.c.bf16 %v660_v35, %v658_v34  ;;  %v677_v9 = vrot.slane %v3784_v47, 1 }
  0x5f   : > { %961 = vmatpush.bf16.msrb.mxu1 %v3174_v51  ;;  %472 = vst [vmem:[#allocation2 + $0xb1] sm:$0xff] %v385_v59  ;;  %v361_v25 = vadd.f32 %v3439_v8, %v325_v60  ;;  %v3782_v46 = vld [vmem:[#allocation2 + $0xf0] sm:$0xff]  ;;  %v3254_v50 = vunpack.c.l.bf16 %v3309_v29  ;;  %v3255_v51 = vunpack.c.h.bf16 %v3309_v29  ;;  %872 = vmatmul.bf16.gmra.mxu2 %v3768_v10  ;;  %v3793_v60 = vld [vmem:[#allocation2 + $0x100] sm:$0x3] }
  0x60   : > { %4622 = vst [vmem:[#allocation12_spill] sm:$0xff] %v3768_v10  ;;  %v332_v45 = vmul.f32 %v3429_v3, %v3302_v14  ;;  %v333_v59 = vmul.f32 %v3429_v3, %v3303_v38  ;;  %v676_v7 = vrot.slane %v3782_v46, 1  ;;  %v3189_v14 = vld [vmem:[%s4566_s1 + $0x88] sm:$0xff] }
  0x61   : > { %4623 = vst [vmem:[#allocation13_spill] sm:$0xff] %v3776_v11  ;;  %v393_v37 = vmax.f32 %v361_v25, 0.0  ;;  %v308_v61 = vmul.f32 %v3429_v3, %v3254_v50  ;;  %v309_v0 = vmul.f32 %v3429_v3, %v3255_v51  ;;  %892 = vmatmul.bf16.gmra.mxu3 %v3776_v11  ;;  %v3197_v25 = vld [vmem:[%s4566_s1 + $0xc8] sm:$0xff]  ;;  %v3206_v3 = vld [vmem:[%s4566_s1 + $0x110] sm:$0xff]  ;;  %1245 = vmatpush.bf16.msrb.mxu2 %v3189_v14  ;;  %v3172_v14 = vld [vmem:[%s4566_s1] sm:$0xff] }
  0x62   : > { %479 = vst [vmem:[#allocation2 + $0x109] sm:$0xff] %v392_v26  ;;  %v368_v56 = vadd.f32 %v3439_v8, %v332_v45  ;;  %v369_v62 = vadd.f32 %v3439_v8, %v333_v59  ;;  %v3810_v26 = vld [vmem:[#allocation2 + $0x150] sm:$0xff]  ;;  %v3173_v38 = vld [vmem:[%s4566_s1 + $0x8] sm:$0xff]  ;;  %v3820_v45 = vld [vmem:[#allocation2 + $0x158] sm:$0xff]  ;;  %1432 = vmatpush.bf16.msrb.mxu3 %v3197_v25  ;;  %1628 = vmatpush.bf16.msrb.mxu0 %v3206_v3 }
  0x63   : > { %v3766_v15 = vld [vmem:[#allocation2 + $0x30] sm:$0xff]  ;;  %4624 = vst [vmem:[#allocation14_spill] sm:$0xff] %v3789_v57  ;;  %v344_v35 = vadd.f32 %v3439_v8, %v308_v61  ;;  %857 = vmatmul.bf16.gmra.mxu1 %v3789_v57  ;;  %v3822_v50 = vld [vmem:[#allocation2 + $0x160] sm:$0x3]  ;;  %v3205_v61 = vld [vmem:[%s4566_s1 + $0x108] sm:$0xff]  ;;  %v696_v25 = vrot.slane %v3810_v26, 1  ;;  %v1055_v11 = vsel %vm1045_vm1, %v1052_v6, %v1054_v5 }
  0x64   : > { %v3770_v23 = vld [vmem:[#allocation2 + $0x38] sm:$0xff]  ;;  %v3772_v24 = vld [vmem:[#allocation2 + $0x40] sm:$0x3]  ;;  %v636_v30 = vrot.slane %v3766_v15, 1  ;;  %480 = vst [vmem:[#allocation2 + $0x111] sm:$0xff] %v393_v37  ;;  %v400_v4 = vmax.f32 %v368_v56, 0.0  ;;  %v345_v37 = vadd.f32 %v3439_v8, %v309_v0  ;;  %962 = vmatpush.bf16.msrb.mxu1 %v3173_v38 }
  0x65   : > { %v637_v48 = vrot.slane %v3770_v23, 1  ;;  %v639_v49 = vrot.slane %v3772_v24, 1  ;;  %4625 = vst [vmem:[#allocation15_spill] sm:$0xff] %v3810_v26  ;;  %v401_v51 = vmax.f32 %v369_v62, 0.0  ;;  %v3828_v8 = vld [vmem:[#allocation2 + $0xa8] sm:$0xff]  ;;  %v3196_v56 = vld [vmem:[%s4566_s1 + $0xc0] sm:$0xff] }
  0x66   : > { %4626 = vst [vmem:[#allocation16_spill] sm:$0xff] %v3820_v45  ;;  %v377_v59 = vmax.f32 %v345_v37, 0.0  ;;  %v3838_v62 = vld [vmem:[#allocation2 + $0xb0] sm:$0xff]  ;;  %v697_v3 = vrot.slane %v3820_v45, 1  ;;  %v661_v37 = vrot.slane %v3828_v8, 1  ;;  %1433 = vmatpush.bf16.msrb.mxu3 %v3196_v56  ;;  %1629 = vmatpush.bf16.msrb.mxu0 %v3205_v61 }
  0x67   : > { %v638_v29 = vsel %vm625_vm0, %v636_v30, %v637_v48  ;;  %v640_v34 = vsel %vm625_vm0, %v637_v48, %v639_v49  ;;  %4627 = vst [vmem:[#allocation17_spill] sm:$0xff] %v3822_v50  ;;  %v3188_v30 = vld [vmem:[%s4566_s1 + $0x80] sm:$0xff]  ;;  %v679_v48 = vrot.slane %v3793_v60, 1  ;;  %v376_v49 = vmax.f32 %v344_v35, 0.0 }
  0x68   : > { %487 = vst [vmem:[#allocation2 + $0x169] sm:$0xff] %v400_v4  ;;  %v3836_v0 = vpack.c.bf16 %v640_v34, %v638_v29  ;;  %v3840_v4 = vld [vmem:[#allocation2 + $0xb8] sm:$0x3]  ;;  %v699_v35 = vrot.slane %v3822_v50, 1  ;;  %v678_v29 = vsel %vm625_vm0, %v676_v7, %v677_v9  ;;  %1246 = vmatpush.bf16.msrb.mxu2 %v3188_v30  ;;  %v662_v38 = vrot.slane %v3838_v62, 1  ;;  %963 = vmatpush.bf16.msrb.mxu1 %v3172_v14 }
  0x69   : > { %488 = vst [vmem:[#allocation2 + $0x171] sm:$0xff] %v401_v51  ;;  %v680_v34 = vsel %vm625_vm0, %v677_v9, %v679_v48  ;;  %v664_v51 = vrot.slane %v3840_v4, 1  ;;  %v698_v7 = vsel %vm625_vm0, %v696_v25, %v697_v3 }
  0x6a   : > { %463 = vst [vmem:[#allocation2 + $0x49] sm:$0xff] %v376_v49  ;;  %v700_v30 = vsel %vm625_vm0, %v697_v3, %v699_v35  ;;  %v3859_v9 = vpack.c.bf16 %v680_v34, %v678_v29  ;;  %v663_v48 = vsel %vm625_vm0, %v661_v37, %v662_v38  ;;  %1630 = vmatpush.bf16.msrb.mxu0 %v3204_v1  ;;  %v3877_v29 = vld [vmem:[#allocation2 + $0x108] sm:$0xff]  ;;  %v3227_v37 = vld [vmem:[%s4566_s1 + $0x1b8] sm:$0xff] }
  0x6b   : > { %464 = vst [vmem:[#allocation2 + $0x51] sm:$0xff] %v377_v59  ;;  %v665_v49 = vsel %vm625_vm0, %v662_v38, %v664_v51  ;;  %v3863_v59 = vpack.c.bf16 %v700_v30, %v698_v7  ;;  %v3879_v1 = vld [vmem:[#allocation2 + $0x110] sm:$0xff]  ;;  %v3881_v34 = vld [vmem:[#allocation2 + $0x118] sm:$0x3] }
  0x6c   : > { %837 = vmatmul.bf16.gmra.mxu0 %v3836_v0  ;;  %v3873_v25 = vpack.c.bf16 %v665_v49, %v663_v48  ;;  %v3235_v38 = vld [vmem:[%s4566_s1 + $0x1f8] sm:$0xff]  ;;  %2004 = vmatpush.bf16.msra.mxu2 %v3227_v37 }
  0x6d   : > { %4628 = vst [vmem:[#allocation18_spill] sm:$0xff] %v3863_v59  ;;  %v3219_v51 = vld [vmem:[%s4566_s1 + $0x178] sm:$0xff]  ;;  %2201 = vmatpush.bf16.msra.mxu3 %v3235_v38 }
  0x6e   : > { %4629 = vst [vmem:[#allocation19_spill] sm:$0xff] %v3873_v25  ;;  %v3243_v49 = vld [vmem:[%s4566_s1 + $0x238] sm:$0xff]  ;;  %1817 = vmatpush.bf16.msra.mxu1 %v3219_v51 }
  0x6f   : > { %877 = vmatmul.bf16.gmra.mxu2 %v3859_v9  ;;  %v3893_v7 = vld [vmem:[#allocation2 + $0x168] sm:$0xff]  ;;  %2395 = vmatpush.bf16.msra.mxu0 %v3243_v49  ;;  %v1059_v49 = vrot.slane %v3772_v24, 2  ;;  %v3234_v24 = vld [vmem:[%s4566_s1 + $0x1f0] sm:$0xff] }
  0x70   : > { %v3901_v45 = vld [vmem:[#allocation2 + $0x170] sm:$0xff]  ;;  %v3903_v26 = vld [vmem:[#allocation2 + $0x178] sm:$0x3]  ;;  %v701_v33 = vrot.slane %v3893_v7, 1 }
  0x71   : > { %v3865_v56 = vld [vmem:[#allocation2 + $0x48] sm:$0xff]  ;;  %897 = vmatmul.bf16.gmra.mxu3 %v3863_v59  ;;  %v1051_v59 = vrot.slane %v3711_v12, 2  ;;  %v702_v17 = vrot.slane %v3901_v45, 1  ;;  %v704_v31 = vrot.slane %v3903_v26, 1 }
  0x72   : > { %v3867_v61 = vld [vmem:[#allocation2 + $0x50] sm:$0xff]  ;;  %v3869_v50 = vld [vmem:[#allocation2 + $0x58] sm:$0x3]  ;;  %v641_v14 = vrot.slane %v3865_v56, 1  ;;  %2202 = vmatpush.bf16.msra.mxu3 %v3234_v24 }
  0x73   : > { %v642_v3 = vrot.slane %v3867_v61, 1  ;;  %v644_v35 = vrot.slane %v3869_v50, 1  ;;  %862 = vmatmul.bf16.gmra.mxu1 %v3873_v25  ;;  %v1053_v37 = vsel %vm1045_vm1, %v1051_v59, %v1052_v6  ;;  %v703_v51 = vsel %vm625_vm0, %v701_v33, %v702_v17 }
  0x74   : > { %v3918_v27 = vpack.c.bf16 %v1055_v11, %v1053_v37  ;;  %v705_v59 = vsel %vm625_vm0, %v702_v17, %v704_v31  ;;  %v3370_v6 = vmov 0.0|0.0   ;;  %v1056_v11 = vrot.slane %v3766_v15, 2 }
  0x75   : > { %v643_v30 = vsel %vm625_vm0, %v641_v14, %v642_v3  ;;  %v645_v48 = vsel %vm625_vm0, %v642_v3, %v644_v35  ;;  %v681_v14 = vrot.slane %v3877_v29, 1  ;;  %v682_v3 = vrot.slane %v3879_v1, 1 }
  0x76   : > { %v684_v35 = vrot.slane %v3881_v34, 1  ;;  %v3911_v63 = vpack.c.bf16 %v645_v48, %v643_v30  ;;  %v3927_v5 = vpack.c.bf16 %v705_v59, %v703_v51  ;;  %v1057_v48 = vrot.slane %v3770_v23, 2  ;;  %v3218_v51 = vld [vmem:[%s4566_s1 + $0x170] sm:$0xff] }
  0x77   : > { %v683_v53 = vsel %vm625_vm0, %v681_v14, %v682_v3  ;;  %v1049_v33 = vrot.slane %v3506_v32, 2  ;;  %v4631_v14 = vmov 0.0   ;;  %v3226_v32 = vld [vmem:[%s4566_s1 + $0x1b0] sm:$0xff]  ;;  %v1064_v59 = vrot.slane %v3869_v50, 2  ;;  %1818 = vmatpush.bf16.msra.mxu1 %v3218_v51 }
  0x78   : > { %v685_v38 = vsel %vm625_vm0, %v682_v3, %v684_v35  ;;  %4630 = vst [vmem:[#allocation20_spill] sm:$0xff] %v3927_v5  ;;  %v1046_v31 = vrot.slane %v4631_v14, 2  ;;  %v1060_v3 = vsel %vm1045_vm1, %v1057_v48, %v1059_v49  ;;  %2005 = vmatpush.bf16.msra.mxu2 %v3226_v32  ;;  %v3966_v49 = vpack.c.bf16 %v3770_v23, %v3766_v15  ;;  %v3225_v15 = vld [vmem:[%s4566_s1 + $0x1a8] sm:$0xff] }
  0x79   : > { %v3925_v30 = vpack.c.bf16 %v685_v38, %v683_v53  ;;  %v1058_v53 = vsel %vm1045_vm1, %v1056_v11, %v1057_v48  ;;  %v546_v38 = vpack.c.bf16 %v3720_v16, %v3711_v12  ;;  %v1061_v12 = vrot.slane %v3865_v56, 2  ;;  %v3233_v23 = vld [vmem:[%s4566_s1 + $0x1e8] sm:$0xff] }
  0x7a   : > { %v3938_v35 = vpack.c.bf16 %v1060_v3, %v1058_v53  ;;  %v1050_v37 = vsel %vm1045_vm1, %v1046_v31, %v1049_v33  ;;  %v1062_v16 = vrot.slane %v3867_v61, 2  ;;  %v3974_v50 = vpack.c.bf16 %v3867_v61, %v3865_v56  ;;  %2203 = vmatpush.bf16.msra.mxu3 %v3233_v23  ;;  %v3217_v56 = vld [vmem:[%s4566_s1 + $0x168] sm:$0xff]  ;;  %v3240_v23 = vld [vmem:[%s4566_s1 + $0x220] sm:$0xff] }
  0x7b   : > { %v1158_v17 = vpack.c.bf16 %v1050_v37, %v1046_v31  ;;  %v3241_v61 = vld [vmem:[%s4566_s1 + $0x228] sm:$0xff]  ;;  %1819 = vmatpush.bf16.msra.mxu1 %v3217_v56  ;;  %v3996_v14 = vpack.c.bf16 %v3473_v20, %v3470_v19  ;;  %v1066_v53 = vrot.slane %v3470_v19, 2  ;;  %v1067_v3 = vrot.slane %v3473_v20, 2  ;;  %v3224_v20 = vld [vmem:[%s4566_s1 + $0x1a0] sm:$0xff] }
  0x7c   : > { %842 = vmatmul.bf16.gmra.mxu0 %v3911_v63  ;;  %v1065_v11 = vsel %vm1045_vm1, %v1062_v16, %v1064_v59  ;;  %2006 = vmatpush.bf16.msra.mxu2 %v3225_v15  ;;  %v1069_v37 = vrot.slane %v3475_v21, 2  ;;  %v3232_v21 = vld [vmem:[%s4566_s1 + $0x1e0] sm:$0xff]  ;;  %v1071_v59 = vrot.slane %v3665_v41, 2 }
  0x7d   : > { %v3216_v15 = vld [vmem:[%s4566_s1 + $0x160] sm:$0xff] }
  0x7e   : > { %v1070_v32 = vsel %vm1045_vm1, %v1067_v3, %v1069_v37  ;;  %2204 = vmatpush.bf16.msra.mxu3 %v3232_v21  ;;  %v4058_v37 = vpack.c.bf16 %v3740_v39, %v3731_v36 }
  0x7f   : > { %882 = vmatmul.bf16.gmra.mxu2 %v3925_v30  ;;  %1820 = vmatpush.bf16.msra.mxu1 %v3216_v15 }
  0x80   : > { %2007 = vmatpush.bf16.msra.mxu2 %v3224_v20  ;;  %4635 = vst [vmem:[#allocation24_spill] sm:$0xff] %v4058_v37 }
  0x81   : > { %902 = vmatmul.bf16.gmra.mxu3 %v3927_v5 }
  0x83   : > { %964 = vmatmul.bf16.vlgmr.msrb.gmra.mxu1 %v3370_v6  ;;  %v1063_v6 = vsel %vm1045_vm1, %v1061_v12, %v1062_v16 }
  0x84   : > { %v3961_v48 = vpack.c.bf16 %v1065_v11, %v1063_v6  ;;  %v1072_v6 = vrot.slane %v3669_v43, 2  ;;  %v1074_v11 = vrot.slane %v3671_v44, 2 }
  0x8c   : > { %1631 = vmatmul.bf16.vlgmr.msrb.gmra.mxu0 %v3756_v58  ;;  %v3242_v58 = vld [vmem:[%s4566_s1 + $0x230] sm:$0xff] }
  0x8d   : > { %2396 = vmatpush.bf16.msra.mxu0 %v3242_v58  ;;  %v4017_v58 = vpack.c.bf16 %v3669_v43, %v3665_v41  ;;  %v1075_v41 = vsel %vm1045_vm1, %v1072_v6, %v1074_v11  ;;  %v1079_v11 = vrot.slane %v3742_v40, 2 }
  0x8f   : > { %1247 = vmatmul.bf16.vlgmr.msrb.gmra.mxu2 %v1158_v17  ;;  %4632 = vst [vmem:[#allocation21_spill] sm:$0xff] %v4017_v58 }
  0x91   : > { %1434 = vmatmul.bf16.vlgmr.msrb.gmra.mxu3 %v546_v38  ;;  %2397 = vmatpush.bf16.msra.mxu0 %v3241_v61  ;;  %v1073_v61 = vsel %vm1045_vm1, %v1071_v59, %v1072_v6  ;;  %v1076_v59 = vrot.slane %v3731_v36, 2  ;;  %v1077_v6 = vrot.slane %v3740_v39, 2  ;;  %v4089_v36 = vpack.c.bf16 %v3838_v62, %v3828_v8 }
  0x93   : > { %969 = vmatmul.bf16.gmra.mxu1 %v546_v38  ;;  %v1068_v38 = vsel %vm1045_vm1, %v1066_v53, %v1067_v3  ;;  %v4052_v53 = vpack.c.bf16 %v1075_v41, %v1073_v61  ;;  %v1080_v61 = vsel %vm1045_vm1, %v1077_v6, %v1079_v11  ;;  %4639 = vst [vmem:[#allocation28_spill] sm:$0xff] %v4089_v36 }
  0x94   : > { %v4011_v24 = vpack.c.bf16 %v1070_v32, %v1068_v38 }
  0x95   : > { %2398 = vmatpush.bf16.msra.mxu0 %v3240_v23  ;;  %v1078_v23 = vsel %vm1045_vm1, %v1076_v59, %v1077_v6  ;;  %v3223_v59 = vld [vmem:[%s4566_s1 + $0x198] sm:$0xff] }
  0x96   : > { %v3231_v6 = vld [vmem:[%s4566_s1 + $0x1d8] sm:$0xff]  ;;  %2008 = vmatpush.bf16.msra.mxu2 %v3223_v59 }
  0x97   : > { %2205 = vmatpush.bf16.msra.mxu3 %v3231_v6 }
  0x9c   : > { %1636 = vmatmul.bf16.gmra.mxu0 %v3836_v0 }
  0x9f   : > { %1252 = vmatmul.bf16.gmra.mxu2 %v3918_v27 }
  0xa1   : > { %1439 = vmatmul.bf16.gmra.mxu3 %v3966_v49 }
  0xa3   : > { %974 = vmatmul.bf16.gmra.mxu1 %v3966_v49 }
  0xa8   : > { %v3992_v33 = vpop.f32.mrf.mxu1 }
  0xa9   : > { %v4000_v31 = vpop.f32.mrf.mxu0 }
  0xac   : > { %1641 = vmatmul.bf16.gmra.mxu0 %v3911_v63 }
  0xaf   : > { %1257 = vmatmul.bf16.gmra.mxu2 %v3938_v35 }
  0xb0   : > { %v4006_v17 = vpop.f32.mrf.mxu1 }
  0xb1   : > { %1444 = vmatmul.bf16.gmra.mxu3 %v3974_v50  ;;  %v4013_v51 = vpop.f32.mrf.mxu0 }
  0xb3   : > { %979 = vmatmul.bf16.gmra.mxu1 %v3974_v50 }
  0xbc   : > { %1646 = vmatmul.bf16.gmra.mxu0 %v3491_v28 }
  0xbf   : > { %1262 = vmatmul.bf16.gmra.mxu2 %v3961_v48 }
  0xc1   : > { %1449 = vmatmul.bf16.gmra.mxu3 %v3996_v14 }
  0xc3   : > { %984 = vmatmul.bf16.gmra.mxu1 %v3996_v14 }
  0xcc   : > { %1651 = vmatmul.bf16.gmra.mxu0 %v3698_v2 }
  0xcf   : > { %1267 = vmatmul.bf16.gmra.mxu2 %v4011_v24 }
  0xd0   : > { %v4020_v19 = vpop.f32.mrf.mxu1 }
  0xd1   : > { %1454 = vmatmul.bf16.gmra.mxu3 %v4017_v58 }
  0xd2   : > { %v4029_v12 = vpop.f32.mrf.mxu2 }
  0xd3   : > { %989 = vmatmul.bf16.gmra.mxu1 %v4017_v58 }
  0xd4   : > { %v4032_v16 = vpop.f32.mrf.mxu3 }
  0xd5   : > { %4633 = vst [vmem:[#allocation22_spill] sm:$0xff] %v4032_v16  ;;  %v3215_v16 = vld [vmem:[%s4566_s1 + $0x158] sm:$0xff] }
  0xd6   : > { %1821 = vmatpush.bf16.msra.mxu1 %v3215_v16 }
  0xd8   : > { %v4047_v43 = vpop.f32.mrf.mxu1 }
  0xd9   : > { %v4043_v56 = vpop.f32.mrf.mxu0 }
  0xda   : > { %v4050_v44 = vpop.f32.mrf.mxu2 }
  0xdc   : > { %1656 = vmatmul.bf16.gmra.mxu0 %v3789_v57  ;;  %v4054_v3 = vpop.f32.mrf.mxu3  ;;  %v4083_v57 = vpack.c.bf16 %v1080_v61, %v1078_v23  ;;  %v1081_v61 = vrot.slane %v3828_v8, 2 }
  0xdd   : > { %4634 = vst [vmem:[#allocation23_spill] sm:$0xff] %v4054_v3 }
  0xde   : > { %4637 = vst [vmem:[#allocation26_spill] sm:$0xff] %v4083_v57 }
  0xdf   : > { %1272 = vmatmul.bf16.gmra.mxu2 %v4052_v53 }
  0xe0   : > { %v4063_v32 = vpop.f32.mrf.mxu1 }
  0xe1   : > { %v4060_v38 = vpop.f32.mrf.mxu0  ;;  %1459 = vmatmul.bf16.gmra.mxu3 %v4058_v37 }
  0xe2   : > { %v4066_v20 = vpop.f32.mrf.mxu2 }
  0xe3   : > { %994 = vmatmul.bf16.gmra.mxu1 %v4058_v37  ;;  %v3239_v37 = vld [vmem:[%s4566_s1 + $0x218] sm:$0xff] }
  0xe4   : > { %v4069_v21 = vpop.f32.mrf.mxu3  ;;  %2399 = vmatpush.bf16.msra.mxu0 %v3239_v37 }
  0xe5   : > { %4636 = vst [vmem:[#allocation25_spill] sm:$0xff] %v4069_v21 }
  0xe8   : > { %v4078_v41 = vpop.f32.mrf.mxu1 }
  0xe9   : > { %v4074_v15 = vpop.f32.mrf.mxu0 }
  0xea   : > { %v4081_v3 = vpop.f32.mrf.mxu2 }
  0xec   : > { %1661 = vmatmul.bf16.gmra.mxu0 %v3873_v25  ;;  %v4085_v21 = vpop.f32.mrf.mxu3  ;;  %v1084_v25 = vrot.slane %v3840_v4, 2 }
  0xed   : > { %4638 = vst [vmem:[#allocation27_spill] sm:$0xff] %v4085_v21  ;;  %v1082_v21 = vrot.slane %v3838_v62, 2 }
  0xef   : > { %1277 = vmatmul.bf16.gmra.mxu2 %v4083_v57  ;;  %v1083_v59 = vsel %vm1045_vm1, %v1081_v61, %v1082_v21  ;;  %v1085_v8 = vsel %vm1045_vm1, %v1082_v21, %v1084_v25  ;;  %v1086_v61 = vrot.slane %v3636_v13, 2 }
  0xf0   : > { %v4094_v40 = vpop.f32.mrf.mxu1  ;;  %v4126_v6 = vpack.c.bf16 %v1085_v8, %v1083_v59  ;;  %v1087_v59 = vrot.slane %v3640_v18, 2  ;;  %v1089_v8 = vrot.slane %v3642_v22, 2 }
  0xf1   : > { %v4091_v39 = vpop.f32.mrf.mxu0  ;;  %1464 = vmatmul.bf16.gmra.mxu3 %v4089_v36 }
  0xf2   : > { %v4103_v11 = vpop.f32.mrf.mxu2  ;;  %4641 = vst [vmem:[#allocation30_spill] sm:$0xff] %v4126_v6 }
  0xf3   : > { %999 = vmatmul.bf16.gmra.mxu1 %v4089_v36  ;;  %v4132_v36 = vpack.c.bf16 %v3640_v18, %v3636_v13  ;;  %v4158_v13 = vpack.c.bf16 %v3683_v54, %v3678_v52 }
  0xf4   : > { %v4106_v23 = vpop.f32.mrf.mxu3 }
  0xf5   : > { %4640 = vst [vmem:[#allocation29_spill] sm:$0xff] %v4106_v23 }
  0xf6   : > { %4643 = vst [vmem:[#allocation32_spill] sm:$0xff] %v4132_v36 }
  0xf7   : > { %4648 = vst [vmem:[#allocation37_spill] sm:$0xff] %v4158_v13 }
  0xf8   : > { %v4121_v62 = vpop.f32.mrf.mxu1 }
  0xf9   : > { %v4117_v57 = vpop.f32.mrf.mxu0 }
  0xfa   : > { %v4124_v4 = vpop.f32.mrf.mxu2 }
  0xfc   : > { %1666 = vmatmul.bf16.gmra.mxu0 %v3667_v42  ;;  %v4128_v23 = vpop.f32.mrf.mxu3  ;;  %v1088_v42 = vsel %vm1045_vm1, %v1086_v61, %v1087_v59 }
  0xfd   : > { %4642 = vst [vmem:[#allocation31_spill] sm:$0xff] %v4128_v23 }
  0xff   : > { %1282 = vmatmul.bf16.gmra.mxu2 %v4126_v6  ;;  %v1090_v6 = vsel %vm1045_vm1, %v1087_v59, %v1089_v8 }
 0x100   : > { %v965_v37 = vpop.f32.mrf.mxu1 }
 0x101   : > { %v4134_v16 = vpop.f32.mrf.mxu0  ;;  %1469 = vmatmul.bf16.gmra.mxu3 %v4132_v36  ;;  %v966_v61 = vadd.f32 %v965_v37, %v4000_v31  ;;  %v1091_v31 = vrot.slane %v3678_v52, 2  ;;  %v1092_v37 = vrot.slane %v3683_v54, 2 }
 0x102   : > { %v4138_v25 = vpop.f32.mrf.mxu2 }
 0x103   : > { %4644 = vst [vmem:[#allocation33_spill] sm:$0xff] %v4138_v25  ;;  %1004 = vmatmul.bf16.gmra.mxu1 %v4132_v36  ;;  %v4152_v36 = vpack.c.bf16 %v1090_v6, %v1088_v42  ;;  %v3222_v42 = vld [vmem:[%s4566_s1 + $0x190] sm:$0xff]  ;;  %v1093_v52 = vsel %vm1045_vm1, %v1091_v31, %v1092_v37 }
 0x104   : > { %v4141_v21 = vpop.f32.mrf.mxu3  ;;  %2009 = vmatpush.bf16.msra.mxu2 %v3222_v42 }
 0x105   : > { %4645 = vst [vmem:[#allocation34_spill] sm:$0xff] %v4141_v21 }
 0x106   : > { %4646 = vst [vmem:[#allocation35_spill] sm:$0xff] %v4152_v36 }
 0x108   : > { %v967_v2 = vpop.f32.mrf.mxu1 }
 0x109   : > { %v1632_v23 = vpop.f32.mrf.mxu0  ;;  %v968_v25 = vadd.f32 %v967_v2, %v4013_v51  ;;  %v3230_v51 = vld [vmem:[%s4566_s1 + $0x1d0] sm:$0xff] }
 0x10a   : > { %v4150_v58 = vpop.f32.mrf.mxu2  ;;  %2206 = vmatpush.bf16.msra.mxu3 %v3230_v51 }
 0x10c   : > { %1671 = vmatmul.bf16.gmra.mxu0 %v3768_v10  ;;  %v4154_v21 = vpop.f32.mrf.mxu3 }
 0x10d   : > { %4647 = vst [vmem:[#allocation36_spill] sm:$0xff] %v4154_v21  ;;  %v3214_v21 = vld [vmem:[%s4566_s1 + $0x150] sm:$0xff] }
 0x10e   : > { %1822 = vmatpush.bf16.msra.mxu1 %v3214_v21  ;;  %v4190_v21 = vpack.c.bf16 %v3784_v47, %v3782_v46 }
 0x10f   : > { %1287 = vmatmul.bf16.gmra.mxu2 %v4152_v36 }
 0x110   : > { %v970_v22 = vpop.f32.mrf.mxu1 }
 0x111   : > { %v1634_v18 = vpop.f32.mrf.mxu0  ;;  %1474 = vmatmul.bf16.gmra.mxu3 %v4158_v13  ;;  %v971_v2 = vadd.f32 %v970_v22, %v4043_v56  ;;  %v1094_v56 = vrot.slane %v3685_v55, 2 }
 0x112   : > { %v1248_v6 = vpop.f32.mrf.mxu2 }
 0x113   : > { %v1328_v59 = vadd.f32 %v1248_v6, %v966_v61  ;;  %1009 = vmatmul.bf16.gmra.mxu1 %v4158_v13  ;;  %v3238_v61 = vld [vmem:[%s4566_s1 + $0x210] sm:$0xff]  ;;  %v1095_v54 = vsel %vm1045_vm1, %v1092_v37, %v1094_v56 }
 0x114   : > { %v1435_v8 = vpop.f32.mrf.mxu3  ;;  %2400 = vmatpush.bf16.msra.mxu0 %v3238_v61  ;;  %v4186_v10 = vpack.c.bf16 %v1095_v54, %v1093_v52  ;;  %v1097_v61 = vrot.slane %v3784_v47, 2  ;;  %v1099_v52 = vrot.slane %v3793_v60, 2  ;;  %v4211_v60 = vpack.c.bf16 %v3879_v1, %v3877_v29 }
 0x115   : > { %v1515_v22 = vadd.f32 %v1435_v8, %v1328_v59 }
 0x117   : > { %v4180_v42 = vadd.f32 %v1632_v23, %v1515_v22 }
 0x118   : > { %v972_v55 = vpop.f32.mrf.mxu1 }
 0x119   : > { %v1637_v6 = vpop.f32.mrf.mxu0  ;;  %v973_v51 = vadd.f32 %v972_v55, %v4060_v38 }
 0x11a   : > { %v1250_v59 = vpop.f32.mrf.mxu2 }
 0x11b   : > { %v1329_v8 = vadd.f32 %v1250_v59, %v968_v25  ;;  %v1100_v59 = vsel %vm1045_vm1, %v1097_v61, %v1099_v52 }
 0x11c   : > { %1676 = vmatmul.bf16.gmra.mxu0 %v3859_v9  ;;  %v1437_v13 = vpop.f32.mrf.mxu3 }
 0x11d   : > { %v1516_v36 = vadd.f32 %v1437_v13, %v1329_v8  ;;  %v1096_v13 = vrot.slane %v3782_v46, 2 }
 0x11f   : > { %1292 = vmatmul.bf16.gmra.mxu2 %v4186_v10  ;;  %v4193_v31 = vadd.f32 %v1634_v18, %v1516_v36  ;;  %v1098_v18 = vsel %vm1045_vm1, %v1096_v13, %v1097_v61  ;;  %v3229_v13 = vld [vmem:[%s4566_s1 + $0x1c8] sm:$0xff] }
 0x120   : > { %v975_v37 = vpop.f32.mrf.mxu1  ;;  %v4207_v46 = vpack.c.bf16 %v1100_v59, %v1098_v18  ;;  %v1102_v18 = vrot.slane %v3879_v1, 2  ;;  %2207 = vmatpush.bf16.msra.mxu3 %v3229_v13 }
 0x121   : > { %v1639_v23 = vpop.f32.mrf.mxu0  ;;  %1479 = vmatmul.bf16.gmra.mxu3 %v4190_v21  ;;  %v976_v38 = vadd.f32 %v975_v37, %v4074_v15 }
 0x122   : > { %v1253_v56 = vpop.f32.mrf.mxu2 }
 0x123   : > { %v1330_v25 = vadd.f32 %v1253_v56, %v971_v2  ;;  %1014 = vmatmul.bf16.gmra.mxu1 %v4190_v21 }
 0x124   : > { %v1440_v22 = vpop.f32.mrf.mxu3 }
 0x125   : > { %v1517_v54 = vadd.f32 %v1440_v22, %v1330_v25 }
 0x127   : > { %v4201_v36 = vadd.f32 %v1637_v6, %v1517_v54  ;;  %v1101_v54 = vrot.slane %v3877_v29, 2 }
 0x128   : > { %v977_v15 = vpop.f32.mrf.mxu1 }
 0x129   : > { %v1642_v55 = vpop.f32.mrf.mxu0  ;;  %v978_v2 = vadd.f32 %v977_v15, %v4091_v39  ;;  %v3213_v15 = vld [vmem:[%s4566_s1 + $0x148] sm:$0xff]  ;;  %v1103_v29 = vsel %vm1045_vm1, %v1101_v54, %v1102_v18 }
 0x12a   : > { %v1255_v8 = vpop.f32.mrf.mxu2  ;;  %1823 = vmatpush.bf16.msra.mxu1 %v3213_v15  ;;  %v4653_v15 = vld [vmem:[#allocation4_spill] sm:$0xff] }
 0x12b   : > { %v1331_v37 = vadd.f32 %v1255_v8, %v973_v51  ;;  %v3221_v51 = vld [vmem:[%s4566_s1 + $0x188] sm:$0xff] }
 0x12c   : > { %1681 = vmatmul.bf16.gmra.mxu0 %v3925_v30  ;;  %v1442_v47 = vpop.f32.mrf.mxu3  ;;  %2010 = vmatpush.bf16.msra.mxu2 %v3221_v51 }
 0x12d   : > { %v1518_v56 = vadd.f32 %v1442_v47, %v1331_v37  ;;  %v4651_v47 = vld [vmem:[#allocation7_spill] sm:$0xff] }
 0x12f   : > { %1297 = vmatmul.bf16.gmra.mxu2 %v4207_v46  ;;  %v4214_v25 = vadd.f32 %v1639_v23, %v1518_v56 }
 0x130   : > { %v980_v22 = vpop.f32.mrf.mxu1 }
 0x131   : > { %v1644_v6 = vpop.f32.mrf.mxu0  ;;  %4649 = vst [vmem:[#allocation38_spill] sm:$0xff] %v4214_v25  ;;  %1484 = vmatmul.bf16.gmra.mxu3 %v4211_v60  ;;  %v981_v39 = vadd.f32 %v980_v22, %v4117_v57  ;;  %v1104_v57 = vrot.slane %v3881_v34, 2  ;;  %v4661_v25 = vld [vmem:[#allocation10_spill] sm:$0xff] }
 0x132   : > { %v1258_v61 = vpop.f32.mrf.mxu2 }
 0x133   : > { %v1332_v52 = vadd.f32 %v1258_v61, %v976_v38  ;;  %1019 = vmatmul.bf16.gmra.mxu1 %v4211_v60  ;;  %v3237_v38 = vld [vmem:[%s4566_s1 + $0x208] sm:$0xff]  ;;  %v1105_v1 = vsel %vm1045_vm1, %v1102_v18, %v1104_v57 }
 0x134   : > { %v1445_v23 = vpop.f32.mrf.mxu3  ;;  %2401 = vmatpush.bf16.msra.mxu0 %v3237_v38  ;;  %v4240_v13 = vpack.c.bf16 %v1105_v1, %v1103_v29  ;;  %v1107_v29 = vrot.slane %v4653_v15, 2  ;;  %v4656_v1 = vld [vmem:[#allocation5_spill] sm:$0xff] }
 0x135   : > { %v1519_v59 = vadd.f32 %v1445_v23, %v1332_v52  ;;  %v4652_v23 = vld [vmem:[#allocation3_spill] sm:$0xff] }
 0x136   : > { %v4244_v38 = vpack.c.bf16 %v4653_v15, %v4652_v23  ;;  %v4660_v15 = vld [vmem:[#allocation8_spill] sm:$0xff] }
 0x137   : > { %v4234_v37 = vadd.f32 %v1642_v55, %v1519_v59  ;;  %v1106_v59 = vrot.slane %v4652_v23, 2 }
 0x138   : > { %v982_v34 = vpop.f32.mrf.mxu1  ;;  %4654 = vst [vmem:[#allocation3_spill] sm:$0xff] %v4244_v38 }
 0x139   : > { %v1647_v8 = vpop.f32.mrf.mxu0  ;;  %4650 = vst [vmem:[#allocation39_spill] sm:$0xff] %v4234_v37  ;;  %v983_v56 = vadd.f32 %v982_v34, %v4134_v16  ;;  %v1109_v34 = vrot.slane %v4656_v1, 2  ;;  %v4263_v1 = vpack.c.bf16 %v4661_v25, %v4660_v15 }
 0x13a   : > { %v1260_v22 = vpop.f32.mrf.mxu2 }
 0x13b   : > { %v1333_v51 = vadd.f32 %v1260_v22, %v978_v2 }
 0x13c   : > { %1686 = vmatmul.bf16.gmra.mxu0 %v4651_v47  ;;  %v1447_v61 = vpop.f32.mrf.mxu3 }
 0x13d   : > { %v1520_v52 = vadd.f32 %v1447_v61, %v1333_v51 }
 0x13f   : > { %1302 = vmatmul.bf16.gmra.mxu2 %v4240_v13  ;;  %v4247_v54 = vadd.f32 %v1644_v6, %v1520_v52  ;;  %v1108_v6 = vsel %vm1045_vm1, %v1106_v59, %v1107_v29  ;;  %v1110_v52 = vsel %vm1045_vm1, %v1107_v29, %v1109_v34 }
 0x140   : > { %v985_v18 = vpop.f32.mrf.mxu1  ;;  %v4259_v37 = vpack.c.bf16 %v1110_v52, %v1108_v6  ;;  %v3220_v52 = vld [vmem:[%s4566_s1 + $0x180] sm:$0xff] }
 0x141   : > { %v1649_v55 = vpop.f32.mrf.mxu0  ;;  %4655 = vst [vmem:[#allocation4_spill] sm:$0xff] %v4247_v54  ;;  %1489 = vmatmul.bf16.gmra.mxu3 %v4244_v38  ;;  %2011 = vmatpush.bf16.msra.mxu2 %v3220_v52 }
 0x142   : > { %v1263_v57 = vpop.f32.mrf.mxu2  ;;  %4659 = vst [vmem:[#allocation40_spill] sm:$0xff] %v4259_v37 }
 0x143   : > { %v1334_v16 = vadd.f32 %v1263_v57, %v981_v39  ;;  %1024 = vmatmul.bf16.gmra.mxu1 %v4244_v38  ;;  %v4658_v39 = vld [vmem:[#allocation13_spill] sm:$0xff] }
 0x144   : > { %v1450_v2 = vpop.f32.mrf.mxu3 }
 0x145   : > { %v1521_v22 = vadd.f32 %v1450_v2, %v1334_v16  ;;  %v3322_v16 = vld [vmem:[%s3424_s27 + $0x78] sm:$0xff]  }
 0x146   : > { %v3306_v2 = vunpack.c.l.bf16 %v3322_v16 }
 0x147   : > { %v4254_v61 = vadd.f32 %v1647_v8, %v1521_v22  ;;  %v3307_v22 = vunpack.c.h.bf16 %v3322_v16 }
 0x148   : > { %v987_v54 = vpop.f32.mrf.mxu1 }
 0x149   : > { %v1652_v51 = vpop.f32.mrf.mxu0  ;;  %4657 = vst [vmem:[#allocation5_spill] sm:$0xff] %v4254_v61 }
 0x14a   : > { %v1265_v57 = vpop.f32.mrf.mxu2 }
 0x14b   : > { %v1335_v47 = vadd.f32 %v1265_v57, %v983_v56  ;;  %v3358_v56 = vld [vmem:[%s4567_s2] ss:$0 sm:$0xff] }
 0x14c   : > { %1691 = vmatmul.bf16.gmra.mxu0 %v4658_v39  ;;  %v1452_v23 = vpop.f32.mrf.mxu3  ;;  %v334_v34 = vmul.f32 %v3358_v56, %v3306_v2  ;;  %v335_v6 = vmul.f32 %v3358_v56, %v3307_v22  ;;  %v3359_v57 = vld [vmem:[%s4568_s3] ss:$0 sm:$0xff]  ;;  %v1112_v22 = vrot.slane %v4661_v25, 2  ;;  %v4663_v56 = vld [vmem:[#allocation11_spill] sm:$0xff] }
 0x14d   : > { %v1522_v38 = vadd.f32 %v1452_v23, %v1335_v47  ;;  %v986_v47 = vadd.f32 %v985_v18, %v3992_v33  ;;  %v1111_v33 = vrot.slane %v4660_v15, 2 }
 0x14e   : > { %v370_v23 = vadd.f32 %v3359_v57, %v334_v34  ;;  %v371_v16 = vadd.f32 %v3359_v57, %v335_v6  ;;  %v3212_v34 = vld [vmem:[%s4566_s1 + $0x140] sm:$0xff]  ;;  %v4664_v57 = vld [vmem:[#allocation18_spill] sm:$0xff] }
 0x14f   : > { %1307 = vmatmul.bf16.gmra.mxu2 %v4259_v37  ;;  %v4267_v59 = vadd.f32 %v1649_v55, %v1522_v38  ;;  %v3228_v38 = vld [vmem:[%s4566_s1 + $0x1c0] sm:$0xff]  ;;  %1824 = vmatpush.bf16.msra.mxu1 %v3212_v34  ;;  %v1113_v15 = vsel %vm1045_vm1, %v1111_v33, %v1112_v22  ;;  %v4666_v34 = vld [vmem:[#allocation16_spill] sm:$0xff] }
 0x150   : > { %v990_v29 = vpop.f32.mrf.mxu1  ;;  %2208 = vmatpush.bf16.msra.mxu3 %v3228_v38  ;;  %v402_v39 = vmax.f32 %v370_v23, 0.0  ;;  %v403_v61 = vmax.f32 %v371_v16, 0.0  ;;  %v3236_v6 = vld [vmem:[%s4566_s1 + $0x200] sm:$0xff] }
 0x151   : > { %v1654_v8 = vpop.f32.mrf.mxu0  ;;  %4662 = vst [vmem:[#allocation8_spill] sm:$0xff] %v4267_v59  ;;  %1494 = vmatmul.bf16.gmra.mxu3 %v4263_v1  ;;  %v1114_v59 = vrot.slane %v4663_v56, 2  ;;  %2402 = vmatpush.bf16.msra.mxu0 %v3236_v6  ;;  %v4665_v56 = vld [vmem:[#allocation15_spill] sm:$0xff] }
 0x152   : > { %v1268_v55 = vpop.f32.mrf.mxu2  ;;  %489 = vst [vmem:[#allocation2 + $0x181] sm:$0xff] %v402_v39  ;;  %v1116_v6 = vrot.slane %v4665_v56, 2 }
 0x153   : > { %v1336_v2 = vadd.f32 %v1268_v55, %v986_v47  ;;  %1029 = vmatmul.bf16.gmra.mxu1 %v4263_v1  ;;  %490 = vst [vmem:[#allocation2 + $0x189] sm:$0xff] %v403_v61  ;;  %v1115_v52 = vsel %vm1045_vm1, %v1112_v22, %v1114_v59  ;;  %v988_v55 = vadd.f32 %v987_v54, %v4006_v17 }
 0x154   : > { %v1455_v18 = vpop.f32.mrf.mxu3  ;;  %v4303_v61 = vpack.c.bf16 %v4666_v34, %v4665_v56  ;;  %v991_v17 = vadd.f32 %v990_v29, %v4020_v19 }
 0x155   : > { %v1523_v37 = vadd.f32 %v1455_v18, %v1336_v2  ;;  %v4299_v2 = vpack.c.bf16 %v1115_v52, %v1113_v15  ;;  %v1117_v15 = vrot.slane %v4666_v34, 2  ;;  %v4668_v52 = vld [vmem:[#allocation17_spill] sm:$0xff] }
 0x157   : > { %v4293_v25 = vadd.f32 %v1652_v51, %v1523_v37 }
 0x158   : > { %v992_v38 = vpop.f32.mrf.mxu1 }
 0x159   : > { %v1657_v47 = vpop.f32.mrf.mxu0  ;;  %v4322_v34 = vld [vmem:[#allocation2 + $0x180] sm:$0xff] }
 0x15a   : > { %v1270_v23 = vpop.f32.mrf.mxu2 }
 0x15b   : > { %v1337_v16 = vadd.f32 %v1270_v23, %v988_v55  ;;  %v1119_v55 = vrot.slane %v4668_v52, 2  ;;  %v4324_v52 = vld [vmem:[#allocation2 + $0x188] sm:$0xff] }
 0x15c   : > { %1696 = vmatmul.bf16.gmra.mxu0 %v4664_v57  ;;  %v1457_v18 = vpop.f32.mrf.mxu3 }
 0x15d   : > { %v1524_v39 = vadd.f32 %v1457_v18, %v1337_v16  ;;  %v1120_v19 = vsel %vm1045_vm1, %v1117_v15, %v1119_v55 }
 0x15f   : > { %1312 = vmatmul.bf16.gmra.mxu2 %v4299_v2  ;;  %v4306_v59 = vadd.f32 %v1654_v8, %v1524_v39  ;;  %v1118_v8 = vsel %vm1045_vm1, %v1116_v6, %v1117_v15  ;;  %v993_v39 = vadd.f32 %v992_v38, %v4047_v43  ;;  %v4330_v6 = vpack.c.bf16 %v3901_v45, %v3893_v7 }
 0x160   : > { %v995_v51 = vpop.f32.mrf.mxu1  ;;  %v4320_v56 = vpack.c.bf16 %v1120_v19, %v1118_v8  ;;  %v1550_v43 = vrot.slane %v4322_v34, 1  ;;  %v1551_v38 = vrot.slane %v4324_v52, 1 }
 0x161   : > { %v1659_v37 = vpop.f32.mrf.mxu0  ;;  %4667 = vst [vmem:[#allocation10_spill] sm:$0xff] %v4306_v59  ;;  %1499 = vmatmul.bf16.gmra.mxu3 %v4303_v61  ;;  %v996_v19 = vadd.f32 %v995_v51, %v4063_v32  ;;  %v1122_v59 = vrot.slane %v3901_v45, 2 }
 0x162   : > { %v1273_v54 = vpop.f32.mrf.mxu2 }
 0x163   : > { %v1338_v33 = vadd.f32 %v1273_v54, %v991_v17  ;;  %1034 = vmatmul.bf16.gmra.mxu1 %v4303_v61 }
 0x164   : > { %v1460_v22 = vpop.f32.mrf.mxu3 }
 0x165   : > { %v1525_v23 = vadd.f32 %v1460_v22, %v1338_v33  ;;  %v4326_v33 = vld [vmem:[#allocation2 + $0x190] sm:$0x3] }
 0x166   : > { %v1553_v55 = vrot.slane %v4326_v33, 1 }
 0x167   : > { %v4314_v18 = vadd.f32 %v1657_v47, %v1525_v23 }
 0x168   : > { %v997_v29 = vpop.f32.mrf.mxu1 }
 0x169   : > { %v1662_v16 = vpop.f32.mrf.mxu0  ;;  %4669 = vst [vmem:[#allocation11_spill] sm:$0xff] %v4314_v18  ;;  %v1121_v18 = vrot.slane %v3893_v7, 2 }
 0x16a   : > { %v1275_v17 = vpop.f32.mrf.mxu2 }
 0x16b   : > { %v1339_v54 = vadd.f32 %v1275_v17, %v993_v39  ;;  %v1552_v17 = vsel %vm625_vm0, %v1550_v43, %v1551_v38  ;;  %v1123_v43 = vsel %vm1045_vm1, %v1121_v18, %v1122_v59 }
 0x16c   : > { %1701 = vmatmul.bf16.gmra.mxu0 %v3927_v5  ;;  %v1462_v47 = vpop.f32.mrf.mxu3 }
 0x16d   : > { %v1526_v22 = vadd.f32 %v1462_v47, %v1339_v54  ;;  %v1554_v54 = vsel %vm625_vm0, %v1551_v38, %v1553_v55 }
 0x16f   : > { %1317 = vmatmul.bf16.gmra.mxu2 %v4320_v56  ;;  %v4336_v23 = vadd.f32 %v1659_v37, %v1526_v22  ;;  %v1124_v37 = vrot.slane %v3903_v26, 2 }
 0x170   : > { %v1000_v8 = vpop.f32.mrf.mxu1 }
 0x171   : > { %v1664_v15 = vpop.f32.mrf.mxu0  ;;  %4670 = vst [vmem:[#allocation18_spill] sm:$0xff] %v4336_v23  ;;  %1504 = vmatmul.bf16.gmra.mxu3 %v4330_v6  ;;  %v4346_v23 = vpack.c.bf16 %v1554_v54, %v1552_v17  ;;  %v1125_v38 = vsel %vm1045_vm1, %v1122_v59, %v1124_v37  ;;  %v4358_v17 = vpack.c.bf16 %v4324_v52, %v4322_v34 }
 0x172   : > { %v1278_v39 = vpop.f32.mrf.mxu2  ;;  %v4354_v45 = vpack.c.bf16 %v1125_v38, %v1123_v43 }
 0x173   : > { %v1340_v47 = vadd.f32 %v1278_v39, %v996_v19  ;;  %1039 = vmatmul.bf16.gmra.mxu1 %v4330_v6  ;;  %v998_v19 = vadd.f32 %v997_v29, %v4078_v41  ;;  %v1001_v41 = vadd.f32 %v1000_v8, %v4094_v40 }
 0x174   : > { %v1465_v5 = vpop.f32.mrf.mxu3 }
 0x175   : > { %v1527_v22 = vadd.f32 %v1465_v5, %v1340_v47 }
 0x177   : > { %v4348_v51 = vadd.f32 %v1662_v16, %v1527_v22 }
 0x178   : > { %v1002_v55 = vpop.f32.mrf.mxu1 }
 0x179   : > { %v1667_v32 = vpop.f32.mrf.mxu0 }
 0x17a   : > { %v1280_v7 = vpop.f32.mrf.mxu2 }
 0x17b   : > { %v1341_v39 = vadd.f32 %v1280_v7, %v998_v19  ;;  %v1003_v19 = vadd.f32 %v1002_v55, %v4121_v62 }
 0x17c   : > { %1706 = vmatmul.bf16.gmra.mxu0 %v4346_v23  ;;  %v1467_v26 = vpop.f32.mrf.mxu3 }
 0x17d   : > { %v1528_v5 = vadd.f32 %v1467_v26, %v1341_v39 }
 0x17f   : > { %1322 = vmatmul.bf16.gmra.mxu2 %v4354_v45  ;;  %v4361_v18 = vadd.f32 %v1664_v15, %v1528_v5 }
 0x180   : > { %v1005_v59 = vpop.f32.mrf.mxu1 }
 0x181   : > { %v1669_v16 = vpop.f32.mrf.mxu0  ;;  %1509 = vmatmul.bf16.gmra.mxu3 %v4358_v17  ;;  %v1006_v5 = vadd.f32 %v1005_v59, %v4029_v12 }
 0x182   : > { %v1283_v29 = vpop.f32.mrf.mxu2 }
 0x183   : > { %v1342_v54 = vadd.f32 %v1283_v29, %v1001_v41  ;;  %1825 = vmatmul.bf16.vlgmr.msra.gmra.mxu1 %v3918_v27 }
 0x184   : > { %v1470_v47 = vpop.f32.mrf.mxu3 }
 0x185   : > { %v1529_v37 = vadd.f32 %v1470_v47, %v1342_v54 }
 0x187   : > { %v4366_v43 = vadd.f32 %v1667_v32, %v1529_v37 }
 0x188   : > { %v1007_v38 = vpop.f32.mrf.mxu1 }
 0x189   : > { %v1672_v22 = vpop.f32.mrf.mxu0  ;;  %v1008_v37 = vadd.f32 %v1007_v38, %v4050_v44 }
 0x18a   : > { %v1285_v15 = vpop.f32.mrf.mxu2 }
 0x18b   : > { %v1343_v7 = vadd.f32 %v1285_v15, %v1003_v19 }
 0x18c   : > { %2403 = vmatmul.bf16.vlgmr.msra.gmra.mxu0 %v3938_v35  ;;  %v1472_v39 = vpop.f32.mrf.mxu3 }
 0x18d   : > { %v1530_v40 = vadd.f32 %v1472_v39, %v1343_v7 }
 0x18f   : > { %2012 = vmatmul.bf16.vlgmr.msra.gmra.mxu2 %v3966_v49  ;;  %v4371_v26 = vadd.f32 %v1669_v16, %v1530_v40 }
 0x190   : > { %v1010_v27 = vpop.f32.mrf.mxu1 }
 0x191   : > { %v1674_v8 = vpop.f32.mrf.mxu0  ;;  %2209 = vmatmul.bf16.vlgmr.msra.gmra.mxu3 %v3836_v0  ;;  %v1011_v15 = vadd.f32 %v1010_v27, %v4066_v20 }
 0x192   : > { %v1288_v32 = vpop.f32.mrf.mxu2 }
 0x193   : > { %v1344_v41 = vadd.f32 %v1288_v32, %v1006_v5  ;;  %1830 = vmatmul.bf16.gmra.mxu1 %v3938_v35 }
 0x194   : > { %v1475_v62 = vpop.f32.mrf.mxu3 }
 0x195   : > { %v1531_v55 = vadd.f32 %v1475_v62, %v1344_v41 }
 0x197   : > { %v4376_v54 = vadd.f32 %v1672_v22, %v1531_v55 }
 0x198   : > { %v1012_v47 = vpop.f32.mrf.mxu1 }
 0x199   : > { %v1677_v29 = vpop.f32.mrf.mxu0  ;;  %v1013_v32 = vadd.f32 %v1012_v47, %v4081_v3 }
 0x19a   : > { %v1290_v49 = vpop.f32.mrf.mxu2 }
 0x19b   : > { %v1345_v16 = vadd.f32 %v1290_v49, %v1008_v37 }
 0x19c   : > { %2408 = vmatmul.bf16.gmra.mxu0 %v3961_v48  ;;  %v1477_v19 = vpop.f32.mrf.mxu3 }
 0x19d   : > { %v1532_v12 = vadd.f32 %v1477_v19, %v1345_v16 }
 0x19f   : > { %2017 = vmatmul.bf16.gmra.mxu2 %v3974_v50  ;;  %v4381_v0 = vadd.f32 %v1674_v8, %v1532_v12 }
 0x1a0   : > { %v1015_v35 = vpop.f32.mrf.mxu1 }
 0x1a1   : > { %v1679_v59 = vpop.f32.mrf.mxu0  ;;  %2214 = vmatmul.bf16.gmra.mxu3 %v3911_v63  ;;  %v1016_v62 = vadd.f32 %v1015_v35, %v4103_v11 }
 0x1a2   : > { %v1293_v22 = vpop.f32.mrf.mxu2 }
 0x1a3   : > { %v1346_v7 = vadd.f32 %v1293_v22, %v1011_v15  ;;  %1835 = vmatmul.bf16.gmra.mxu1 %v3961_v48  ;;  %v4672_v22 = vld [vmem:[#allocation33_spill] sm:$0xff] }
 0x1a4   : > { %v1480_v44 = vpop.f32.mrf.mxu3 }
 0x1a5   : > { %v1533_v38 = vadd.f32 %v1480_v44, %v1346_v7  ;;  %v4673_v44 = vld [vmem:[#allocation9_spill] sm:$0xff] }
 0x1a7   : > { %v4386_v40 = vadd.f32 %v1677_v29, %v1533_v38 }
 0x1a8   : > { %v1017_v5 = vpop.f32.mrf.mxu1 }
 0x1a9   : > { %v1682_v39 = vpop.f32.mrf.mxu0  ;;  %v1018_v19 = vadd.f32 %v1017_v5, %v4124_v4 }
 0x1aa   : > { %v1295_v50 = vpop.f32.mrf.mxu2 }
 0x1ab   : > { %v1347_v8 = vadd.f32 %v1295_v50, %v1013_v32 }
 0x1ac   : > { %2413 = vmatmul.bf16.gmra.mxu0 %v4011_v24  ;;  %v1482_v41 = vpop.f32.mrf.mxu3 }
 0x1ad   : > { %v1534_v20 = vadd.f32 %v1482_v41, %v1347_v8 }
 0x1af   : > { %2022 = vmatmul.bf16.gmra.mxu2 %v3996_v14  ;;  %v4391_v63 = vadd.f32 %v1679_v59, %v1534_v20  ;;  %v4674_v20 = vld [vmem:[#allocation26_spill] sm:$0xff] }
 0x1b0   : > { %v1020_v48 = vpop.f32.mrf.mxu1 }
 0x1b1   : > { %v1684_v27 = vpop.f32.mrf.mxu0  ;;  %2219 = vmatmul.bf16.gmra.mxu3 %v3491_v28  ;;  %v4671_v28 = vld [vmem:[#allocation21_spill] sm:$0xff]  ;;  %v1021_v7 = vadd.f32 %v1020_v48, %v4672_v22 }
 0x1b2   : > { %v1298_v55 = vpop.f32.mrf.mxu2 }
 0x1b3   : > { %v1348_v29 = vadd.f32 %v1298_v55, %v1016_v62  ;;  %1840 = vmatmul.bf16.gmra.mxu1 %v4011_v24 }
 0x1b4   : > { %v1485_v3 = vpop.f32.mrf.mxu3 }
 0x1b5   : > { %v1535_v47 = vadd.f32 %v1485_v3, %v1348_v29  ;;  %v4675_v3 = vld [vmem:[#allocation24_spill] sm:$0xff] }
 0x1b7   : > { %v4396_v49 = vadd.f32 %v1682_v39, %v1535_v47 }
 0x1b8   : > { %v1022_v16 = vpop.f32.mrf.mxu1 }
 0x1b9   : > { %v1687_v37 = vpop.f32.mrf.mxu0  ;;  %v1023_v41 = vadd.f32 %v1022_v16, %v4150_v58 }
 0x1ba   : > { %v1300_v14 = vpop.f32.mrf.mxu2 }
 0x1bb   : > { %v1349_v12 = vadd.f32 %v1300_v14, %v1018_v19  ;;  %v4676_v19 = vld [vmem:[#allocation22_spill] sm:$0xff] }
 0x1bc   : > { %2418 = vmatmul.bf16.gmra.mxu0 %v4052_v53  ;;  %v1487_v59 = vpop.f32.mrf.mxu3 }
 0x1bd   : > { %v1536_v11 = vadd.f32 %v1487_v59, %v1349_v12  ;;  %v4677_v12 = vld [vmem:[#allocation14_spill] sm:$0xff] }
 0x1bf   : > { %2027 = vmatmul.bf16.gmra.mxu2 %v4671_v28  ;;  %v4401_v15 = vadd.f32 %v1684_v27, %v1536_v11 }
 0x1c0   : > { %v1025_v24 = vpop.f32.mrf.mxu1 }
 0x1c1   : > { %v1689_v35 = vpop.f32.mrf.mxu0  ;;  %2224 = vmatmul.bf16.gmra.mxu3 %v4673_v44  ;;  %v1026_v14 = vadd.f32 %v1025_v24, %v4676_v19 }
 0x1c2   : > { %v1303_v38 = vpop.f32.mrf.mxu2 }
 0x1c3   : > { %v1350_v39 = vadd.f32 %v1303_v38, %v1021_v7  ;;  %1845 = vmatmul.bf16.gmra.mxu1 %v4052_v53  ;;  %v4678_v7 = vld [vmem:[#allocation23_spill] sm:$0xff]  ;;  %v4679_v38 = vld [vmem:[#allocation30_spill] sm:$0xff] }
 0x1c4   : > { %v1490_v4 = vpop.f32.mrf.mxu3 }
 0x1c5   : > { %v1537_v5 = vadd.f32 %v1490_v4, %v1350_v39 }
 0x1c7   : > { %v4406_v50 = vadd.f32 %v1687_v37, %v1537_v5 }
 0x1c8   : > { %v1027_v8 = vpop.f32.mrf.mxu1 }
 0x1c9   : > { %v1692_v32 = vpop.f32.mrf.mxu0  ;;  %v1028_v44 = vadd.f32 %v1027_v8, %v4678_v7 }
 0x1ca   : > { %v1305_v27 = vpop.f32.mrf.mxu2 }
 0x1cb   : > { %v1351_v62 = vadd.f32 %v1305_v27, %v1023_v41  ;;  %v4680_v41 = vld [vmem:[#allocation28_spill] sm:$0xff] }
 0x1cc   : > { %2423 = vmatmul.bf16.gmra.mxu0 %v4674_v20  ;;  %v1492_v55 = vpop.f32.mrf.mxu3 }
 0x1cd   : > { %v1538_v48 = vadd.f32 %v1492_v55, %v1351_v62  ;;  %v4681_v62 = vld [vmem:[#allocation25_spill] sm:$0xff] }
 0x1cf   : > { %2032 = vmatmul.bf16.gmra.mxu2 %v4675_v3  ;;  %v4411_v47 = vadd.f32 %v1689_v35, %v1538_v48  ;;  %v4682_v48 = vld [vmem:[#allocation19_spill] sm:$0xff] }
 0x1d0   : > { %v1030_v53 = vpop.f32.mrf.mxu1 }
 0x1d1   : > { %v1694_v29 = vpop.f32.mrf.mxu0  ;;  %2229 = vmatmul.bf16.gmra.mxu3 %v4677_v12  ;;  %v1031_v55 = vadd.f32 %v1030_v53, %v4681_v62  ;;  %v4687_v62 = vld [vmem:[#allocation6_spill] sm:$0xff] }
 0x1d2   : > { %v1308_v37 = vpop.f32.mrf.mxu2 }
 0x1d3   : > { %v1352_v59 = vadd.f32 %v1308_v37, %v1026_v14  ;;  %1850 = vmatmul.bf16.gmra.mxu1 %v4674_v20 }
 0x1d4   : > { %v1495_v58 = vpop.f32.mrf.mxu3 }
 0x1d5   : > { %v1539_v16 = vadd.f32 %v1495_v58, %v1352_v59  ;;  %v4683_v59 = vld [vmem:[#allocation27_spill] sm:$0xff] }
 0x1d7   : > { %v4416_v28 = vadd.f32 %v1692_v32, %v1539_v16  ;;  %v4684_v16 = vld [vmem:[#allocation35_spill] sm:$0xff] }
 0x1d8   : > { %v1032_v22 = vpop.f32.mrf.mxu1 }
 0x1d9   : > { %v1697_v11 = vpop.f32.mrf.mxu0  ;;  %v1033_v58 = vadd.f32 %v1032_v22, %v4683_v59 }
 0x1da   : > { %v1310_v35 = vpop.f32.mrf.mxu2 }
 0x1db   : > { %v1353_v39 = vadd.f32 %v1310_v35, %v1028_v44 }
 0x1dc   : > { %2428 = vmatmul.bf16.gmra.mxu0 %v4679_v38  ;;  %v1497_v4 = vpop.f32.mrf.mxu3 }
 0x1dd   : > { %v1540_v24 = vadd.f32 %v1497_v4, %v1353_v39  ;;  %v4685_v39 = vld [vmem:[#allocation32_spill] sm:$0xff] }
 0x1df   : > { %2037 = vmatmul.bf16.gmra.mxu2 %v4680_v41  ;;  %v4421_v27 = vadd.f32 %v1694_v29, %v1540_v24  ;;  %v4686_v24 = vld [vmem:[#allocation29_spill] sm:$0xff] }
 0x1e0   : > { %v1035_v20 = vpop.f32.mrf.mxu1 }
 0x1e1   : > { %v1699_v5 = vpop.f32.mrf.mxu0  ;;  %2234 = vmatmul.bf16.gmra.mxu3 %v4682_v48  ;;  %v1036_v41 = vadd.f32 %v1035_v20, %v4686_v24 }
 0x1e2   : > { %v1313_v32 = vpop.f32.mrf.mxu2 }
 0x1e3   : > { %v1354_v3 = vadd.f32 %v1313_v32, %v1031_v55  ;;  %1855 = vmatmul.bf16.gmra.mxu1 %v4679_v38 }
 0x1e4   : > { %v1500_v8 = vpop.f32.mrf.mxu3 }
 0x1e5   : > { %v1541_v19 = vadd.f32 %v1500_v8, %v1354_v3 }
 0x1e7   : > { %v4426_v12 = vadd.f32 %v1697_v11, %v1541_v19  ;;  %v4688_v19 = vld [vmem:[#allocation31_spill] sm:$0xff] }
 0x1e8   : > { %v1037_v37 = vpop.f32.mrf.mxu1 }
 0x1e9   : > { %v1702_v14 = vpop.f32.mrf.mxu0  ;;  %v1038_v59 = vadd.f32 %v1037_v37, %v4688_v19  ;;  %v4692_v19 = vld [vmem:[#allocation36_spill] sm:$0xff] }
 0x1ea   : > { %v1315_v29 = vpop.f32.mrf.mxu2 }
 0x1eb   : > { %v1355_v7 = vadd.f32 %v1315_v29, %v1033_v58 }
 0x1ec   : > { %2433 = vmatmul.bf16.gmra.mxu0 %v4684_v16  ;;  %v1502_v44 = vpop.f32.mrf.mxu3 }
 0x1ed   : > { %v1542_v53 = vadd.f32 %v1502_v44, %v1355_v7  ;;  %v4689_v44 = vld [vmem:[#allocation37_spill] sm:$0xff] }
 0x1ef   : > { %2042 = vmatmul.bf16.gmra.mxu2 %v4685_v39  ;;  %v4431_v4 = vadd.f32 %v1699_v5, %v1542_v53  ;;  %v4690_v39 = vld [vmem:[#allocation34_spill] sm:$0xff] }
 0x1f0   : > { %v1040_v38 = vpop.f32.mrf.mxu1 }
 0x1f1   : > { %v1704_v35 = vpop.f32.mrf.mxu0  ;;  %2239 = vmatmul.bf16.gmra.mxu3 %v4687_v62  ;;  %v1041_v24 = vadd.f32 %v1040_v38, %v4690_v39 }
 0x1f2   : > { %v1318_v11 = vpop.f32.mrf.mxu2 }
 0x1f3   : > { %v1356_v55 = vadd.f32 %v1318_v11, %v1036_v41  ;;  %1860 = vmatmul.bf16.gmra.mxu1 %v4684_v16  ;;  %v4691_v41 = vld [vmem:[#allocation12_spill] sm:$0xff] }
 0x1f4   : > { %v1505_v22 = vpop.f32.mrf.mxu3 }
 0x1f5   : > { %v1543_v48 = vadd.f32 %v1505_v22, %v1356_v55 }
 0x1f7   : > { %v4436_v3 = vadd.f32 %v1702_v14, %v1543_v48 }
 0x1f8   : > { %v1042_v8 = vpop.f32.mrf.mxu1 }
 0x1f9   : > { %v1707_v32 = vpop.f32.mrf.mxu0 }
 0x1fa   : > { %v1320_v5 = vpop.f32.mrf.mxu2 }
 0x1fb   : > { %v1357_v58 = vadd.f32 %v1320_v5, %v1038_v59  ;;  %v1043_v59 = vadd.f32 %v1042_v8, %v4692_v19 }
 0x1fc   : > { %2438 = vmatmul.bf16.gmra.mxu0 %v4186_v10  ;;  %v1507_v29 = vpop.f32.mrf.mxu3 }
 0x1fd   : > { %v1544_v20 = vadd.f32 %v1507_v29, %v1357_v58 }
 0x1ff   : > { %2047 = vmatmul.bf16.gmra.mxu2 %v4689_v44  ;;  %v4441_v53 = vadd.f32 %v1704_v35, %v1544_v20 }
 0x200   : > { %v1826_v16 = vpop.f32.mrf.mxu1 }
 0x201   : > { %v1709_v7 = vpop.f32.mrf.mxu0  ;;  %2244 = vmatmul.bf16.gmra.mxu3 %v4691_v41  ;;  %v1906_v44 = vadd.f32 %v1826_v16, %v4180_v42 }
 0x202   : > { %v1323_v14 = vpop.f32.mrf.mxu2 }
 0x203   : > { %v1358_v62 = vadd.f32 %v1323_v14, %v1041_v24  ;;  %1865 = vmatmul.bf16.gmra.mxu1 %v4186_v10 }
 0x204   : > { %v1510_v37 = vpop.f32.mrf.mxu3 }
 0x205   : > { %v1545_v11 = vadd.f32 %v1510_v37, %v1358_v62 }
 0x207   : > { %v4446_v22 = vadd.f32 %v1707_v32, %v1545_v11 }
 0x208   : > { %v1828_v48 = vpop.f32.mrf.mxu1 }
 0x209   : > { %v2404_v55 = vpop.f32.mrf.mxu0 }
 0x20a   : > { %v1325_v35 = vpop.f32.mrf.mxu2 }
 0x20b   : > { %v1359_v5 = vadd.f32 %v1325_v35, %v1043_v59 }
 0x20c   : > { %2443 = vmatmul.bf16.gmra.mxu0 %v4207_v46  ;;  %v1512_v38 = vpop.f32.mrf.mxu3 }
 0x20d   : > { %v1546_v58 = vadd.f32 %v1512_v38, %v1359_v5 }
 0x20f   : > { %2052 = vmatmul.bf16.gmra.mxu2 %v4190_v21  ;;  %v4451_v20 = vadd.f32 %v1709_v7, %v1546_v58 }
 0x210   : > { %v1831_v10 = vpop.f32.mrf.mxu1 }
 0x211   : > { %v2406_v29 = vpop.f32.mrf.mxu0  ;;  %2249 = vmatmul.bf16.gmra.mxu3 %v3859_v9  ;;  %v1907_v9 = vadd.f32 %v1828_v48, %v4193_v31  ;;  %v1908_v11 = vadd.f32 %v1831_v10, %v4201_v36 }
 0x212   : > { %v2013_v32 = vpop.f32.mrf.mxu2 }
 0x213   : > { %v2093_v39 = vadd.f32 %v2013_v32, %v1906_v44  ;;  %1870 = vmatmul.bf16.gmra.mxu1 %v4207_v46  ;;  %v4693_v32 = vld [vmem:[#allocation38_spill] sm:$0xff] }
 0x214   : > { %v2210_v8 = vpop.f32.mrf.mxu3 }
 0x215   : > { %v2290_v24 = vadd.f32 %v2210_v8, %v2093_v39  ;;  %v4694_v8 = vld [vmem:[#allocation40_spill] sm:$0xff] }
 0x217   : > { %v2484_v7 = vadd.f32 %v2404_v55, %v2290_v24 }
 0x218   : > { %v1833_v41 = vpop.f32.mrf.mxu1 }
 0x219   : > { %v2409_v21 = vpop.f32.mrf.mxu0  ;;  %2516 = vst [vmem:[%s4460_s23] sm:$0xff] %v2484_v7  ;;  %v2586_v59 = vmul.f32 %v2484_v7, %v2484_v7  ;;  %v1909_v39 = vadd.f32 %v1833_v41, %v4693_v32 }
 0x21a   : > { %v2015_v42 = vpop.f32.mrf.mxu2 }
 0x21b   : > { %v2094_v16 = vadd.f32 %v2015_v42, %v1907_v9 }
 0x21c   : > { %2448 = vmatmul.bf16.gmra.mxu0 %v4240_v13  ;;  %v2212_v46 = vpop.f32.mrf.mxu3 }
 0x21d   : > { %v2291_v14 = vadd.f32 %v2212_v46, %v2094_v16  ;;  %v4695_v46 = vld [vmem:[#allocation3_spill] sm:$0xff] }
 0x21f   : > { %v2485_v37 = vadd.f32 %v2406_v29, %v2291_v14  ;;  %2057 = vmatmul.bf16.gmra.mxu2 %v4211_v60 }
 0x220   : > { %v1836_v19 = vpop.f32.mrf.mxu1 }
 0x221   : > { %v2411_v62 = vpop.f32.mrf.mxu0  ;;  %2517 = vst [vmem:[%s4460_s23 + $0x8] sm:$0xff] %v2485_v37  ;;  %v2548_v55 = vadd.f32 %v2485_v37, %v2484_v7  ;;  %v2587_v35 = vmul.f32 %v2485_v37, %v2485_v37  ;;  %2254 = vmatmul.bf16.gmra.mxu3 %v3925_v30 }
 0x222   : > { %v2018_v31 = vpop.f32.mrf.mxu2 }
 0x223   : > { %v2618_v48 = vadd.f32 %v2587_v35, %v2586_v59  ;;  %v2095_v5 = vadd.f32 %v2018_v31, %v1908_v11  ;;  %1875 = vmatmul.bf16.gmra.mxu1 %v4240_v13  ;;  %v4696_v11 = vld [vmem:[#allocation39_spill] sm:$0xff] }
 0x224   : > { %v2215_v38 = vpop.f32.mrf.mxu3  ;;  %v1910_v59 = vadd.f32 %v1836_v19, %v4696_v11 }
 0x225   : > { %v2292_v58 = vadd.f32 %v2215_v38, %v2095_v5 }
 0x227   : > { %v2486_v44 = vadd.f32 %v2409_v21, %v2292_v58 }
 0x228   : > { %v1838_v60 = vpop.f32.mrf.mxu1 }
 0x229   : > { %v2414_v29 = vpop.f32.mrf.mxu0  ;;  %2518 = vst [vmem:[%s4460_s23 + $0x10] sm:$0xff] %v2486_v44  ;;  %v2549_v36 = vadd.f32 %v2548_v55, %v2486_v44  ;;  %v2588_v10 = vmul.f32 %v2486_v44, %v2486_v44  ;;  %v4697_v55 = vld [vmem:[#allocation7_spill] sm:$0xff] }
 0x22a   : > { %v2020_v24 = vpop.f32.mrf.mxu2 }
 0x22b   : > { %v2619_v30 = vadd.f32 %v2618_v48, %v2588_v10  ;;  %v2096_v7 = vadd.f32 %v2020_v24, %v1909_v39 }
 0x22c   : > { %2453 = vmatmul.bf16.gmra.mxu0 %v4694_v8  ;;  %v2217_v9 = vpop.f32.mrf.mxu3 }
 0x22d   : > { %v2293_v42 = vadd.f32 %v2217_v9, %v2096_v7 }
 0x22f   : > { %v2487_v13 = vadd.f32 %v2411_v62, %v2293_v42  ;;  %2062 = vmatmul.bf16.gmra.mxu2 %v4695_v46  ;;  %v4699_v46 = vld [vmem:[#allocation5_spill] sm:$0xff] }
 0x230   : > { %v1841_v21 = vpop.f32.mrf.mxu1 }
 0x231   : > { %v2416_v16 = vpop.f32.mrf.mxu0  ;;  %2519 = vst [vmem:[%s4460_s23 + $0x18] sm:$0xff] %v2487_v13  ;;  %v2550_v14 = vadd.f32 %v2549_v36, %v2487_v13  ;;  %v2589_v37 = vmul.f32 %v2487_v13, %v2487_v13  ;;  %2259 = vmatmul.bf16.gmra.mxu3 %v4697_v55  ;;  %v4698_v36 = vld [vmem:[#allocation4_spill] sm:$0xff] }
 0x232   : > { %v2023_v41 = vpop.f32.mrf.mxu2  ;;  %v1911_v32 = vadd.f32 %v1838_v60, %v4698_v36  ;;  %v1744_v36 = vrot.slane %v4322_v34, 2 }
 0x233   : > { %v2620_v35 = vadd.f32 %v2619_v30, %v2589_v37  ;;  %v2097_v31 = vadd.f32 %v2023_v41, %v1910_v59  ;;  %1880 = vmatmul.bf16.gmra.mxu1 %v4694_v8  ;;  %v4700_v37 = vld [vmem:[#allocation13_spill] sm:$0xff] }
 0x234   : > { %v2220_v48 = vpop.f32.mrf.mxu3 }
 0x235   : > { %v2294_v5 = vadd.f32 %v2220_v48, %v2097_v31 }
 0x237   : > { %v2488_v62 = vadd.f32 %v2414_v29, %v2294_v5  ;;  %v4701_v5 = vld [vmem:[#allocation8_spill] sm:$0xff] }
 0x238   : > { %v1843_v58 = vpop.f32.mrf.mxu1 }
 0x239   : > { %v2419_v38 = vpop.f32.mrf.mxu0  ;;  %2520 = vst [vmem:[%s4460_s23 + $0x20] sm:$0xff] %v2488_v62  ;;  %v2551_v44 = vadd.f32 %v2550_v14, %v2488_v62  ;;  %v2590_v10 = vmul.f32 %v2488_v62, %v2488_v62  ;;  %v1912_v14 = vadd.f32 %v1841_v21, %v4699_v46  ;;  %v1913_v62 = vadd.f32 %v1843_v58, %v4701_v5 }
 0x23a   : > { %v2025_v19 = vpop.f32.mrf.mxu2 }
 0x23b   : > { %v2621_v39 = vadd.f32 %v2620_v35, %v2590_v10  ;;  %v2098_v24 = vadd.f32 %v2025_v19, %v1911_v32 }
 0x23c   : > { %2458 = vmatmul.bf16.gmra.mxu0 %v4299_v2  ;;  %v2222_v30 = vpop.f32.mrf.mxu3 }
 0x23d   : > { %v2295_v7 = vadd.f32 %v2222_v30, %v2098_v24 }
 0x23f   : > { %v2489_v8 = vadd.f32 %v2416_v16, %v2295_v7  ;;  %2067 = vmatmul.bf16.gmra.mxu2 %v4263_v1 }
 0x240   : > { %v1846_v29 = vpop.f32.mrf.mxu1 }
 0x241   : > { %v2421_v9 = vpop.f32.mrf.mxu0  ;;  %2521 = vst [vmem:[%s4460_s23 + $0x28] sm:$0xff] %v2489_v8  ;;  %v2552_v42 = vadd.f32 %v2551_v44, %v2489_v8  ;;  %v2591_v13 = vmul.f32 %v2489_v8, %v2489_v8  ;;  %2264 = vmatmul.bf16.gmra.mxu3 %v4700_v37  ;;  %v1914_v34 = vadd.f32 %v1846_v29, %v4293_v25 }
 0x242   : > { %v2028_v60 = vpop.f32.mrf.mxu2 }
 0x243   : > { %v2622_v11 = vadd.f32 %v2621_v39, %v2591_v13  ;;  %v2099_v59 = vadd.f32 %v2028_v60, %v1912_v14  ;;  %1885 = vmatmul.bf16.gmra.mxu1 %v4299_v2  ;;  %v1745_v2 = vrot.slane %v4324_v52, 2 }
 0x244   : > { %v2225_v55 = vpop.f32.mrf.mxu3 }
 0x245   : > { %v2296_v41 = vadd.f32 %v2225_v55, %v2099_v59  ;;  %v1746_v58 = vsel %vm1045_vm1, %v1744_v36, %v1745_v2  ;;  %v4702_v55 = vld [vmem:[#allocation10_spill] sm:$0xff] }
 0x247   : > { %v2490_v16 = vadd.f32 %v2419_v38, %v2296_v41  ;;  %v1747_v38 = vrot.slane %v4326_v33, 2 }
 0x248   : > { %v1848_v31 = vpop.f32.mrf.mxu1 }
 0x249   : > { %v2424_v35 = vpop.f32.mrf.mxu0  ;;  %2522 = vst [vmem:[%s4460_s23 + $0x30] sm:$0xff] %v2490_v16  ;;  %v2553_v1 = vadd.f32 %v2552_v42, %v2490_v16  ;;  %v2592_v48 = vmul.f32 %v2490_v16, %v2490_v16  ;;  %v1748_v7 = vsel %vm1045_vm1, %v1745_v2, %v1747_v38  ;;  %v1915_v25 = vadd.f32 %v1848_v31, %v4702_v55 }
 0x24a   : > { %v2030_v21 = vpop.f32.mrf.mxu2  ;;  %v4498_v13 = vpack.c.bf16 %v1748_v7, %v1746_v58  ;;  %v4705_v7 = vld [vmem:[#allocation18_spill] sm:$0xff] }
 0x24b   : > { %v2623_v44 = vadd.f32 %v2622_v11, %v2592_v48  ;;  %v2100_v10 = vadd.f32 %v2030_v21, %v1913_v62  ;;  %v4703_v21 = vld [vmem:[#allocation11_spill] sm:$0xff] }
 0x24c   : > { %2463 = vmatmul.bf16.gmra.mxu0 %v4320_v56  ;;  %v2227_v32 = vpop.f32.mrf.mxu3 }
 0x24d   : > { %v2297_v19 = vadd.f32 %v2227_v32, %v2100_v10  ;;  %v4704_v10 = vld [vmem:[#allocation20_spill] sm:$0xff] }
 0x24f   : > { %v2491_v24 = vadd.f32 %v2421_v9, %v2297_v19  ;;  %2072 = vmatmul.bf16.gmra.mxu2 %v4303_v61 }
 0x250   : > { %v1851_v30 = vpop.f32.mrf.mxu1 }
 0x251   : > { %v2426_v39 = vpop.f32.mrf.mxu0  ;;  %2523 = vst [vmem:[%s4460_s23 + $0x38] sm:$0xff] %v2491_v24  ;;  %v2554_v8 = vadd.f32 %v2553_v1, %v2491_v24  ;;  %v2593_v42 = vmul.f32 %v2491_v24, %v2491_v24  ;;  %2269 = vmatmul.bf16.gmra.mxu3 %v4664_v57 }
 0x252   : > { %v2033_v52 = vpop.f32.mrf.mxu2 }
 0x253   : > { %v2624_v33 = vadd.f32 %v2623_v44, %v2593_v42  ;;  %v2101_v9 = vadd.f32 %v2033_v52, %v1914_v34  ;;  %1890 = vmatmul.bf16.gmra.mxu1 %v4320_v56  ;;  %v1916_v44 = vadd.f32 %v1851_v30, %v4703_v21 }
 0x254   : > { %v2230_v61 = vpop.f32.mrf.mxu3 }
 0x255   : > { %v2298_v46 = vadd.f32 %v2230_v61, %v2101_v9  ;;  %v544_v9 = vld [vmem:[#allocation2 + $0x1a8] sm:$0x3]  ;;  %v3360_v61 = vld [vmem:[#allocation2] sm:$0xff] }
 0x257   : > { %v2492_v37 = vadd.f32 %v2424_v35, %v2298_v46  ;;  %v2322_v46 = vrot.slane %v3360_v61, 2 }
 0x258   : > { %v1853_v60 = vpop.f32.mrf.mxu1 }
 0x259   : > { %v2429_v14 = vpop.f32.mrf.mxu0  ;;  %2524 = vst [vmem:[%s4460_s23 + $0x40] sm:$0xff] %v2492_v37  ;;  %v2555_v11 = vadd.f32 %v2554_v8, %v2492_v37  ;;  %v2594_v59 = vmul.f32 %v2492_v37, %v2492_v37  ;;  %v1917_v8 = vadd.f32 %v1853_v60, %v4705_v7  ;;  %v2325_v37 = vrot.slane %v544_v9, 2 }
 0x25a   : > { %v2035_v57 = vpop.f32.mrf.mxu2 }
 0x25b   : > { %v2625_v29 = vadd.f32 %v2624_v33, %v2594_v59  ;;  %v2102_v41 = vadd.f32 %v2035_v57, %v1915_v25  ;;  %v2326_v57 = vsel %vm1045_vm1, %v2322_v46, %v2325_v37 }
 0x25c   : > { %2468 = vmatmul.bf16.gmra.mxu0 %v4354_v45  ;;  %v2232_v16 = vpop.f32.mrf.mxu3 }
 0x25d   : > { %v2299_v1 = vadd.f32 %v2232_v16, %v2102_v41 }
 0x25f   : > { %v2493_v56 = vadd.f32 %v2426_v39, %v2299_v1  ;;  %2077 = vmatmul.bf16.gmra.mxu2 %v4330_v6 }
 0x260   : > { %v1856_v35 = vpop.f32.mrf.mxu1 }
 0x261   : > { %v2431_v48 = vpop.f32.mrf.mxu0  ;;  %2525 = vst [vmem:[%s4460_s23 + $0x48] sm:$0xff] %v2493_v56  ;;  %v2556_v5 = vadd.f32 %v2555_v11, %v2493_v56  ;;  %v2595_v62 = vmul.f32 %v2493_v56, %v2493_v56  ;;  %2274 = vmatmul.bf16.gmra.mxu3 %v4704_v10  ;;  %v1918_v60 = vadd.f32 %v1856_v35, %v4348_v51  ;;  %v2128_v56 = vrot.slane %v3360_v61, 1 }
 0x262   : > { %v2038_v31 = vpop.f32.mrf.mxu2 }
 0x263   : > { %v2626_v36 = vadd.f32 %v2625_v29, %v2595_v62  ;;  %v2103_v2 = vadd.f32 %v2038_v31, %v1916_v44  ;;  %1895 = vmatmul.bf16.gmra.mxu1 %v4354_v45 }
 0x264   : > { %v2235_v32 = vpop.f32.mrf.mxu3 }
 0x265   : > { %v2300_v19 = vadd.f32 %v2235_v32, %v2103_v2 }
 0x267   : > { %v2494_v39 = vadd.f32 %v2429_v14, %v2300_v19 }
 0x268   : > { %v1858_v24 = vpop.f32.mrf.mxu1 }
 0x269   : > { %v2434_v38 = vpop.f32.mrf.mxu0  ;;  %2526 = vst [vmem:[%s4460_s23 + $0x50] sm:$0xff] %v2494_v39  ;;  %v2557_v6 = vadd.f32 %v2556_v5, %v2494_v39  ;;  %v2596_v58 = vmul.f32 %v2494_v39, %v2494_v39  ;;  %v2131_v5 = vrot.slane %v544_v9, 1 }
 0x26a   : > { %v2040_v30 = vpop.f32.mrf.mxu2 }
 0x26b   : > { %v2627_v42 = vadd.f32 %v2626_v36, %v2596_v58  ;;  %v2104_v34 = vadd.f32 %v2040_v30, %v1917_v8  ;;  %v2132_v10 = vsel %vm625_vm0, %v2128_v56, %v2131_v5  ;;  %v1938_v36 = vpack.c.bf16 %v3360_v61, %v3360_v61 }
 0x26c   : > { %2473 = vmatmul.bf16.gmra.mxu0 %v4498_v13  ;;  %v2237_v52 = vpop.f32.mrf.mxu3  ;;  %v2135_v19 = vpack.c.bf16 %v2132_v10, %v2128_v56 }
 0x26d   : > { %v2301_v33 = vadd.f32 %v2237_v52, %v2104_v34 }
 0x26f   : > { %v2495_v14 = vadd.f32 %v2431_v48, %v2301_v33  ;;  %2082 = vmatmul.bf16.gmra.mxu2 %v4358_v17  ;;  %v2329_v48 = vpack.c.bf16 %v2326_v57, %v2322_v46 }
 0x270   : > { %v1861_v11 = vpop.f32.mrf.mxu1 }
 0x271   : > { %v2436_v45 = vpop.f32.mrf.mxu0  ;;  %2527 = vst [vmem:[%s4460_s23 + $0x58] sm:$0xff] %v2495_v14  ;;  %v2558_v59 = vadd.f32 %v2557_v6, %v2495_v14  ;;  %v2597_v55 = vmul.f32 %v2495_v14, %v2495_v14  ;;  %2279 = vmatmul.bf16.gmra.mxu3 %v4346_v23  ;;  %v1919_v23 = vadd.f32 %v1858_v24, %v4361_v18 }
 0x272   : > { %v2043_v25 = vpop.f32.mrf.mxu2  ;;  %v1920_v18 = vadd.f32 %v1861_v11, %v4366_v43 }
 0x273   : > { %v2628_v29 = vadd.f32 %v2627_v42, %v2597_v55  ;;  %v2105_v41 = vadd.f32 %v2043_v25, %v1918_v60  ;;  %1900 = vmatmul.bf16.gmra.mxu1 %v4498_v13 }
 0x274   : > { %v2240_v16 = vpop.f32.mrf.mxu3 }
 0x275   : > { %v2302_v1 = vadd.f32 %v2240_v16, %v2105_v41 }
 0x277   : > { %v2496_v62 = vadd.f32 %v2434_v38, %v2302_v1 }
 0x278   : > { %v1863_v21 = vpop.f32.mrf.mxu1 }
 0x279   : > { %v2439_v17 = vpop.f32.mrf.mxu0  ;;  %2528 = vst [vmem:[%s4460_s23 + $0x60] sm:$0xff] %v2496_v62  ;;  %v2559_v44 = vadd.f32 %v2558_v59, %v2496_v62  ;;  %v2598_v51 = vmul.f32 %v2496_v62, %v2496_v62  ;;  %v1921_v46 = vadd.f32 %v1863_v21, %v4371_v26 }
 0x27a   : > { %v2045_v35 = vpop.f32.mrf.mxu2 }
 0x27b   : > { %v2629_v31 = vadd.f32 %v2628_v29, %v2598_v51  ;;  %v2106_v13 = vadd.f32 %v2045_v35, %v1919_v23 }
 0x27c   : > { %2478 = vmatmul.bf16.gmra.mxu0 %v2329_v48  ;;  %v2242_v2 = vpop.f32.mrf.mxu3 }
 0x27d   : > { %v2303_v32 = vadd.f32 %v2242_v2, %v2106_v13 }
 0x27f   : > { %v2497_v6 = vadd.f32 %v2436_v45, %v2303_v32  ;;  %2087 = vmatmul.bf16.gmra.mxu2 %v1938_v36 }
 0x280   : > { %v1866_v38 = vpop.f32.mrf.mxu1 }
 0x281   : > { %v2441_v39 = vpop.f32.mrf.mxu0  ;;  %2529 = vst [vmem:[%s4460_s23 + $0x68] sm:$0xff] %v2497_v6  ;;  %v2560_v58 = vadd.f32 %v2559_v44, %v2497_v6  ;;  %v2599_v7 = vmul.f32 %v2497_v6, %v2497_v6  ;;  %2284 = vmatmul.bf16.gmra.mxu3 %v2135_v19  ;;  %v1922_v41 = vadd.f32 %v1866_v38, %v4376_v54 }
 0x282   : > { %v2048_v24 = vpop.f32.mrf.mxu2 }
 0x283   : > { %v2630_v8 = vadd.f32 %v2629_v31, %v2599_v7  ;;  %v2107_v30 = vadd.f32 %v2048_v24, %v1920_v18 }
 0x284   : > { %v2245_v42 = vpop.f32.mrf.mxu3 }
 0x285   : > { %v2304_v34 = vadd.f32 %v2245_v42, %v2107_v30 }
 0x287   : > { %v2498_v33 = vadd.f32 %v2439_v17, %v2304_v34 }
 0x288   : > { %v1868_v9 = vpop.f32.mrf.mxu1 }
 0x289   : > { %v2444_v52 = vpop.f32.mrf.mxu0  ;;  %2530 = vst [vmem:[%s4460_s23 + $0x70] sm:$0xff] %v2498_v33  ;;  %v2561_v45 = vadd.f32 %v2560_v58, %v2498_v33  ;;  %v2600_v61 = vmul.f32 %v2498_v33, %v2498_v33  ;;  %v1923_v51 = vadd.f32 %v1868_v9, %v4381_v0 }
 0x28a   : > { %v2050_v37 = vpop.f32.mrf.mxu2 }
 0x28b   : > { %v2631_v14 = vadd.f32 %v2630_v8, %v2600_v61  ;;  %v2108_v59 = vadd.f32 %v2050_v37, %v1921_v46 }
 0x28c   : > { %v2247_v55 = vpop.f32.mrf.mxu3 }
 0x28d   : > { %v2305_v43 = vadd.f32 %v2247_v55, %v2108_v59 }
 0x28f   : > { %v2499_v60 = vadd.f32 %v2441_v39, %v2305_v43 }
 0x290   : > { %v1871_v25 = vpop.f32.mrf.mxu1 }
 0x291   : > { %v2446_v11 = vpop.f32.mrf.mxu0  ;;  %2531 = vst [vmem:[%s4460_s23 + $0x78] sm:$0xff] %v2499_v60  ;;  %v2562_v57 = vadd.f32 %v2561_v45, %v2499_v60  ;;  %v2601_v29 = vmul.f32 %v2499_v60, %v2499_v60  ;;  %v1924_v39 = vadd.f32 %v1871_v25, %v4386_v40 }
 0x292   : > { %v2053_v16 = vpop.f32.mrf.mxu2 }
 0x293   : > { %v2632_v1 = vadd.f32 %v2631_v14, %v2601_v29  ;;  %v2109_v48 = vadd.f32 %v2053_v16, %v1922_v41 }
 0x294   : > { %v2250_v17 = vpop.f32.mrf.mxu3 }
 0x295   : > { %v2306_v56 = vadd.f32 %v2250_v17, %v2109_v48 }
 0x297   : > { %v2500_v5 = vadd.f32 %v2444_v52, %v2306_v56 }
 0x298   : > { %v1873_v62 = vpop.f32.mrf.mxu1 }
 0x299   : > { %v2449_v26 = vpop.f32.mrf.mxu0  ;;  %2532 = vst [vmem:[%s4460_s23 + $0x80] sm:$0xff] %v2500_v5  ;;  %v2563_v21 = vadd.f32 %v2562_v57, %v2500_v5  ;;  %v2602_v44 = vmul.f32 %v2500_v5, %v2500_v5  ;;  %v1925_v34 = vadd.f32 %v1873_v62, %v4391_v63 }
 0x29a   : > { %v2055_v23 = vpop.f32.mrf.mxu2 }
 0x29b   : > { %v2633_v35 = vadd.f32 %v2632_v1, %v2602_v44  ;;  %v2110_v10 = vadd.f32 %v2055_v23, %v1923_v51 }
 0x29c   : > { %v2252_v31 = vpop.f32.mrf.mxu3 }
 0x29d   : > { %v2307_v13 = vadd.f32 %v2252_v31, %v2110_v10 }
 0x29f   : > { %v2501_v36 = vadd.f32 %v2446_v11, %v2307_v13 }
 0x2a0   : > { %v1876_v2 = vpop.f32.mrf.mxu1 }
 0x2a1   : > { %v2451_v54 = vpop.f32.mrf.mxu0  ;;  %2533 = vst [vmem:[%s4460_s23 + $0x88] sm:$0xff] %v2501_v36  ;;  %v2564_v32 = vadd.f32 %v2563_v21, %v2501_v36  ;;  %v2603_v19 = vmul.f32 %v2501_v36, %v2501_v36  ;;  %v1926_v55 = vadd.f32 %v1876_v2, %v4396_v49 }
 0x2a2   : > { %v2058_v6 = vpop.f32.mrf.mxu2 }
 0x2a3   : > { %v2634_v38 = vadd.f32 %v2633_v35, %v2603_v19  ;;  %v2111_v58 = vadd.f32 %v2058_v6, %v1924_v39 }
 0x2a4   : > { %v2255_v7 = vpop.f32.mrf.mxu3 }
 0x2a5   : > { %v2308_v18 = vadd.f32 %v2255_v7, %v2111_v58 }
 0x2a7   : > { %v2502_v24 = vadd.f32 %v2449_v26, %v2308_v18 }
 0x2a8   : > { %v1878_v8 = vpop.f32.mrf.mxu1 }
 0x2a9   : > { %v2454_v0 = vpop.f32.mrf.mxu0  ;;  %2534 = vst [vmem:[%s4460_s23 + $0x90] sm:$0xff] %v2502_v24  ;;  %v2565_v30 = vadd.f32 %v2564_v32, %v2502_v24  ;;  %v2604_v42 = vmul.f32 %v2502_v24, %v2502_v24  ;;  %v1927_v48 = vadd.f32 %v1878_v8, %v4401_v15 }
 0x2aa   : > { %v2060_v52 = vpop.f32.mrf.mxu2 }
 0x2ab   : > { %v2635_v33 = vadd.f32 %v2634_v38, %v2604_v42  ;;  %v2112_v9 = vadd.f32 %v2060_v52, %v1925_v34 }
 0x2ac   : > { %v2257_v45 = vpop.f32.mrf.mxu3 }
 0x2ad   : > { %v2309_v61 = vadd.f32 %v2257_v45, %v2112_v9 }
 0x2af   : > { %v2503_v46 = vadd.f32 %v2451_v54, %v2309_v61 }
 0x2b0   : > { %v1881_v37 = vpop.f32.mrf.mxu1 }
 0x2b1   : > { %v2456_v40 = vpop.f32.mrf.mxu0  ;;  %2535 = vst [vmem:[%s4460_s23 + $0x98] sm:$0xff] %v2503_v46  ;;  %v2566_v14 = vadd.f32 %v2565_v30, %v2503_v46  ;;  %v2605_v59 = vmul.f32 %v2503_v46, %v2503_v46  ;;  %v1928_v35 = vadd.f32 %v1881_v37, %v4406_v50 }
 0x2b2   : > { %v2063_v43 = vpop.f32.mrf.mxu2 }
 0x2b3   : > { %v2636_v11 = vadd.f32 %v2635_v33, %v2605_v59  ;;  %v2113_v60 = vadd.f32 %v2063_v43, %v1926_v55 }
 0x2b4   : > { %v2260_v25 = vpop.f32.mrf.mxu3 }
 0x2b5   : > { %v2310_v57 = vadd.f32 %v2260_v25, %v2113_v60 }
 0x2b7   : > { %v2504_v29 = vadd.f32 %v2454_v0, %v2310_v57 }
 0x2b8   : > { %v1883_v41 = vpop.f32.mrf.mxu1 }
 0x2b9   : > { %v2459_v63 = vpop.f32.mrf.mxu0  ;;  %2536 = vst [vmem:[%s4460_s23 + $0xa0] sm:$0xff] %v2504_v29  ;;  %v2567_v16 = vadd.f32 %v2566_v14, %v2504_v29  ;;  %v2606_v1 = vmul.f32 %v2504_v29, %v2504_v29  ;;  %v1929_v39 = vadd.f32 %v1883_v41, %v4411_v47 }
 0x2ba   : > { %v2065_v17 = vpop.f32.mrf.mxu2 }
 0x2bb   : > { %v2637_v56 = vadd.f32 %v2636_v11, %v2606_v1  ;;  %v2114_v26 = vadd.f32 %v2065_v17, %v1927_v48 }
 0x2bc   : > { %v2262_v5 = vpop.f32.mrf.mxu3 }
 0x2bd   : > { %v2311_v49 = vadd.f32 %v2262_v5, %v2114_v26 }
 0x2bf   : > { %v2505_v21 = vadd.f32 %v2456_v40, %v2311_v49 }
 0x2c0   : > { %v1886_v44 = vpop.f32.mrf.mxu1 }
 0x2c1   : > { %v2461_v62 = vpop.f32.mrf.mxu0  ;;  %2537 = vst [vmem:[%s4460_s23 + $0xa8] sm:$0xff] %v2505_v21  ;;  %v2568_v51 = vadd.f32 %v2567_v16, %v2505_v21  ;;  %v2607_v23 = vmul.f32 %v2505_v21, %v2505_v21  ;;  %v1930_v30 = vadd.f32 %v1886_v44, %v4416_v28 }
 0x2c2   : > { %v2068_v10 = vpop.f32.mrf.mxu2 }
 0x2c3   : > { %v2638_v31 = vadd.f32 %v2637_v56, %v2607_v23  ;;  %v2115_v13 = vadd.f32 %v2068_v10, %v1928_v35 }
 0x2c4   : > { %v2265_v54 = vpop.f32.mrf.mxu3 }
 0x2c5   : > { %v2312_v15 = vadd.f32 %v2265_v54, %v2115_v13 }
 0x2c7   : > { %v2506_v36 = vadd.f32 %v2459_v63, %v2312_v15 }
 0x2c8   : > { %v1888_v38 = vpop.f32.mrf.mxu1 }
 0x2c9   : > { %v2464_v2 = vpop.f32.mrf.mxu0  ;;  %2538 = vst [vmem:[%s4460_s23 + $0xb0] sm:$0xff] %v2506_v36  ;;  %v2569_v32 = vadd.f32 %v2568_v51, %v2506_v36  ;;  %v2608_v19 = vmul.f32 %v2506_v36, %v2506_v36  ;;  %v1931_v37 = vadd.f32 %v1888_v38, %v4421_v27 }
 0x2ca   : > { %v2070_v6 = vpop.f32.mrf.mxu2 }
 0x2cb   : > { %v2639_v58 = vadd.f32 %v2638_v31, %v2608_v19  ;;  %v2116_v7 = vadd.f32 %v2070_v6, %v1929_v39 }
 0x2cc   : > { %v2267_v18 = vpop.f32.mrf.mxu3 }
 0x2cd   : > { %v2313_v50 = vadd.f32 %v2267_v18, %v2116_v7 }
 0x2cf   : > { %v2507_v0 = vadd.f32 %v2461_v62, %v2313_v50 }
 0x2d0   : > { %v1891_v47 = vpop.f32.mrf.mxu1 }
 0x2d1   : > { %2539 = vst [vmem:[%s4460_s23 + $0xb8] sm:$0xff] %v2507_v0  ;;  %v2570_v24 = vadd.f32 %v2569_v32, %v2507_v0  ;;  %v2609_v8 = vmul.f32 %v2507_v0, %v2507_v0  ;;  %v2466_v34 = vpop.f32.mrf.mxu0  ;;  %v1932_v29 = vadd.f32 %v1891_v47, %v4426_v12 }
 0x2d2   : > { %v2073_v42 = vpop.f32.mrf.mxu2 }
 0x2d3   : > { %v2640_v52 = vadd.f32 %v2639_v58, %v2609_v8  ;;  %v2117_v33 = vadd.f32 %v2073_v42, %v1930_v30 }
 0x2d4   : > { %v2270_v9 = vpop.f32.mrf.mxu3 }
 0x2d5   : > { %v2314_v45 = vadd.f32 %v2270_v9, %v2117_v33 }
 0x2d7   : > { %v2508_v61 = vadd.f32 %v2464_v2, %v2314_v45 }
 0x2d8   : > { %v1893_v60 = vpop.f32.mrf.mxu1 }
 0x2d9   : > { %2540 = vst [vmem:[%s4460_s23 + $0xc0] sm:$0xff] %v2508_v61  ;;  %v2571_v40 = vadd.f32 %v2570_v24, %v2508_v61  ;;  %v2610_v46 = vmul.f32 %v2508_v61, %v2508_v61  ;;  %v2469_v11 = vpop.f32.mrf.mxu0  ;;  %v1933_v62 = vadd.f32 %v1893_v60, %v4431_v4 }
 0x2da   : > { %v2075_v14 = vpop.f32.mrf.mxu2 }
 0x2db   : > { %v2641_v59 = vadd.f32 %v2640_v52, %v2610_v46  ;;  %v2118_v55 = vadd.f32 %v2075_v14, %v1931_v37 }
 0x2dc   : > { %v2272_v43 = vpop.f32.mrf.mxu3 }
 0x2dd   : > { %v2315_v28 = vadd.f32 %v2272_v43, %v2118_v55 }
 0x2df   : > { %v2509_v25 = vadd.f32 %v2466_v34, %v2315_v28 }
 0x2e0   : > { %v1896_v26 = vpop.f32.mrf.mxu1 }
 0x2e1   : > { %2541 = vst [vmem:[%s4460_s23 + $0xc8] sm:$0xff] %v2509_v25  ;;  %v2572_v57 = vadd.f32 %v2571_v40, %v2509_v25  ;;  %v2611_v63 = vmul.f32 %v2509_v25, %v2509_v25  ;;  %v2471_v17 = vpop.f32.mrf.mxu0  ;;  %v1934_v54 = vadd.f32 %v1896_v26, %v4436_v3 }
 0x2e2   : > { %v2078_v41 = vpop.f32.mrf.mxu2 }
 0x2e3   : > { %v2642_v16 = vadd.f32 %v2641_v59, %v2611_v63  ;;  %v2119_v1 = vadd.f32 %v2078_v41, %v1932_v29 }
 0x2e4   : > { %v2275_v48 = vpop.f32.mrf.mxu3 }
 0x2e5   : > { %v2316_v27 = vadd.f32 %v2275_v48, %v2119_v1 }
 0x2e7   : > { %v2510_v56 = vadd.f32 %v2469_v11, %v2316_v27 }
 0x2e8   : > { %v1898_v36 = vpop.f32.mrf.mxu1 }
 0x2e9   : > { %2542 = vst [vmem:[%s4460_s23 + $0xd0] sm:$0xff] %v2510_v56  ;;  %v2573_v5 = vadd.f32 %v2572_v57, %v2510_v56  ;;  %v2612_v49 = vmul.f32 %v2510_v56, %v2510_v56  ;;  %v2474_v10 = vpop.f32.mrf.mxu0  ;;  %v1935_v58 = vadd.f32 %v1898_v36, %v4441_v53 }
 0x2ea   : > { %v2080_v21 = vpop.f32.mrf.mxu2 }
 0x2eb   : > { %v2643_v44 = vadd.f32 %v2642_v16, %v2612_v49  ;;  %v2120_v51 = vadd.f32 %v2080_v21, %v1933_v62 }
 0x2ec   : > { %v2277_v23 = vpop.f32.mrf.mxu3 }
 0x2ed   : > { %v2317_v12 = vadd.f32 %v2277_v23, %v2120_v51 }
 0x2ef   : > { %v2511_v35 = vadd.f32 %v2471_v17, %v2317_v12 }
 0x2f0   : > { %v1901_v3 = vpop.f32.mrf.mxu1 }
 0x2f1   : > { %2543 = vst [vmem:[%s4460_s23 + $0xd8] sm:$0xff] %v2511_v35  ;;  %v2574_v31 = vadd.f32 %v2573_v5, %v2511_v35  ;;  %v2613_v13 = vmul.f32 %v2511_v35, %v2511_v35  ;;  %v2476_v7 = vpop.f32.mrf.mxu0  ;;  %v1936_v52 = vadd.f32 %v1901_v3, %v4446_v22 }
 0x2f2   : > { %v2083_v15 = vpop.f32.mrf.mxu2 }
 0x2f3   : > { %v2644_v2 = vadd.f32 %v2643_v44, %v2613_v13  ;;  %v2121_v32 = vadd.f32 %v2083_v15, %v1934_v54 }
 0x2f4   : > { %v2280_v19 = vpop.f32.mrf.mxu3 }
 0x2f5   : > { %v2318_v4 = vadd.f32 %v2280_v19, %v2121_v32 }
 0x2f7   : > { %v2512_v39 = vadd.f32 %v2474_v10, %v2318_v4 }
 0x2f8   : > { %v1903_v40 = vpop.f32.mrf.mxu1 }
 0x2f9   : > { %2544 = vst [vmem:[%s4460_s23 + $0xe0] sm:$0xff] %v2512_v39  ;;  %v2575_v6 = vadd.f32 %v2574_v31, %v2512_v39  ;;  %v2614_v38 = vmul.f32 %v2512_v39, %v2512_v39  ;;  %v2479_v45 = vpop.f32.mrf.mxu0  ;;  %v1937_v59 = vadd.f32 %v1903_v40, %v4451_v20 }
 0x2fa   : > { %v2085_v18 = vpop.f32.mrf.mxu2 }
 0x2fb   : > { %v2645_v50 = vadd.f32 %v2644_v2, %v2614_v38  ;;  %v2122_v0 = vadd.f32 %v2085_v18, %v1935_v58 }
 0x2fc   : > { %v2282_v24 = vpop.f32.mrf.mxu3 }
 0x2fd   : > { %v2319_v8 = vadd.f32 %v2282_v24, %v2122_v0 }
 0x2ff   : > { %v2513_v30 = vadd.f32 %v2476_v7, %v2319_v8 }
 0x301   : > { %2545 = vst [vmem:[%s4460_s23 + $0xe8] sm:$0xff] %v2513_v30  ;;  %v2576_v42 = vadd.f32 %v2575_v6, %v2513_v30  ;;  %v2615_v34 = vmul.f32 %v2513_v30, %v2513_v30  ;;  %v2481_v60 = vpop.f32.mrf.mxu0 }
 0x302   : > { %v2088_v33 = vpop.f32.mrf.mxu2 }
 0x303   : > { %v2646_v9 = vadd.f32 %v2645_v50, %v2615_v34  ;;  %v2123_v47 = vadd.f32 %v2088_v33, %v1936_v52 }
 0x304   : > { %v2285_v53 = vpop.f32.mrf.mxu3 }
 0x305   : > { %v2320_v61 = vadd.f32 %v2285_v53, %v2123_v47 }
 0x307   : > { %v2514_v46 = vadd.f32 %v2479_v45, %v2320_v61 }
 0x309   : > { %2546 = vst [vmem:[%s4460_s23 + $0xf0] sm:$0xff] %v2514_v46  ;;  %v2577_v37 = vadd.f32 %v2576_v42, %v2514_v46  ;;  %v2616_v14 = vmul.f32 %v2514_v46, %v2514_v46 }
 0x30a   : > { %v2090_v55 = vpop.f32.mrf.mxu2 }
 0x30b   : > { %v2647_v43 = vadd.f32 %v2646_v9, %v2616_v14  ;;  %v2124_v11 = vadd.f32 %v2090_v55, %v1937_v59 }
 0x30c   : > { %v2287_v28 = vpop.f32.mrf.mxu3 }
 0x30d   : > { %v2321_v22 = vadd.f32 %v2287_v28, %v2124_v11 }
 0x30f   : > { %v2515_v25 = vadd.f32 %v2481_v60, %v2321_v22 }
 0x311   : > { %2547 = vst [vmem:[%s4460_s23 + $0xf8] sm:$0xff] %v2515_v25  ;;  %v2578_v57 = vadd.f32 %v2577_v37, %v2515_v25  ;;  %v2617_v63 = vmul.f32 %v2515_v25, %v2515_v25 }
 0x313   : > { %v2579_v29 = vrot.slane %v2578_v57, 4  ;;  %v2648_v41 = vadd.f32 %v2647_v43, %v2617_v63 }
 0x315   : > { %v2580_v16 = vadd.f32 %v2579_v29, %v2578_v57  ;;  %v2649_v1 = vrot.slane %v2648_v41, 4 }
 0x317   : > { %v2581_v48 = vrot.slane %v2580_v16, 2  ;;  %v2650_v27 = vadd.f32 %v2649_v1, %v2648_v41 }
 0x319   : > { %v2582_v17 = vadd.f32 %v2581_v48, %v2580_v16  ;;  %v2651_v20 = vrot.slane %v2650_v27, 2 }
 0x31b   : > { %v2583_v56 = vrot.slane %v2582_v17, 1  ;;  %v2652_v26 = vadd.f32 %v2651_v20, %v2650_v27 }
 0x31d   : > { %v2584_v5 = vadd.f32 %v2583_v56, %v2582_v17  ;;  %v2653_v49 = vrot.slane %v2652_v26, 1 }
 0x31f   : > { %2585 = vst [vmem:[%s235_s28] sm:$0x1] %v2584_v5  ;;  %v2654_v62 = vadd.f32 %v2653_v49, %v2652_v26 }
 0x321   : > { %2655 = vst [vmem:[%s235_s28 + $0x1] sm:$0x1] %v2654_v62 }
 0x322 PF: > { %s16_s18 = sadd.s32 1, %s3367_s18  }
 0x323   : > { %p13_p4 = scmp.ge.s32.totalorder %s16_s18, 4  }
 0x325   :  { %15 = sbr.rel (!%p13_p4) target bundleno = 1 (0x1), region = 87 }

</bundles_post_ra>
